<compile_context>
chip_gen: v7x
topology: tpu7x:2x2x1
jax: 0.10.0
libtpu: 0.0.40
codegen_flags: <defaults>
</compile_context>

<pallas_src>
import jax
import jax.numpy as jnp
from jax.experimental import pallas as pl
from jax.experimental.pallas import tpu as pltpu

EPS = 1e-5   # torch.nn.LayerNorm default eps
BG = 0.1     # GatingMechanism bg


# ----------------------------- in-kernel helpers -----------------------------

def _layernorm(x, w, b):
    mu = jnp.mean(x, axis=-1, keepdims=True)
    var = jnp.mean((x - mu) ** 2, axis=-1, keepdims=True)
    return (x - mu) * jax.lax.rsqrt(var + EPS) * w + b


def _gate(wy, ux, ug, bias, x, y, d):
    # GRU-style gating with stacked weights: x = residual, y = sublayer output.
    #   wy   : (D, 3D)  = [Wr | Wz | Wg]
    #   ux   : (D, 2D)  = [Ur | Uz]
    #   ug   : (D, D)
    #   bias : (1, 3D)  = [br+bur | bz+buz | bg+bug]
    yp = jnp.dot(y, wy, preferred_element_type=jnp.float32) + bias        # (N, 3D)
    xp = jnp.dot(x, ux, preferred_element_type=jnp.float32)               # (N, 2D)
    r = jax.nn.sigmoid(yp[:, :d] + xp[:, :d])
    z = jax.nn.sigmoid(yp[:, d:2 * d] + xp[:, d:2 * d] - BG)
    h = jnp.tanh(yp[:, 2 * d:] + jnp.dot(r * x, ug, preferred_element_type=jnp.float32))
    return (1.0 - z) * x + z * h


def _rel_shift(posat, S, T, P):
    """Whole-block Transformer-XL relative shift on (G, S, T) position logits.

    Exact equivalent of the PyTorch zero-pad + view trick, wrapped "junk"
    columns included (mask=None lets them reach the softmax):
        out[i] = [ posat[i, S-1-i:], 0, posat[i+1, :S-2-i] ]
    Implemented as log2(S) conditional lane rotations + one row shift + selects,
    instead of an S-way unrolled slice/concat chain.
    """
    row = jax.lax.broadcasted_iota(jnp.int32, (1, S, T), 1)
    col = jax.lax.broadcasted_iota(jnp.int32, (1, S, T), 2)
    shift = (S - 1) - row                       # per-row left-rotation amount

    a = posat
    for bit in range(max(S - 1, 0).bit_length()):
        step = 1 << bit
        rolled = jnp.concatenate([a[..., step:], a[..., :step]], axis=-1)   # left-rot by step
        take = ((shift >> bit) & 1) == 1
        a = jnp.where(take, rolled, a)
    # a[i, j] == posat[i, (j + S - 1 - i) mod T]

    # The wrapped region reads the NEXT row of the rotated matrix.
    a_up = jnp.concatenate([a[:, 1:, :], a[:, :1, :]], axis=1)
    main = col <= P + row
    zero = col == P + row + 1
    return jnp.where(main, a, jnp.where(zero, jnp.float32(0.0), a_up))


# --------------------------------- kernel ------------------------------------

def _layer_kernel(x_ref, mem_ref, p_ref, u_ref, v_ref,
                  n1w_ref, n1b_ref,
                  wq_ref, wkv_ref, wo_ref,
                  g1wy_ref, g1ux_ref, g1ug_ref, g1b_ref,
                  n2w_ref, n2b_ref,
                  w1_ref, b1_ref, w2_ref, b2_ref,
                  g2wy_ref, g2ux_ref, g2ug_ref, g2b_ref,
                  out_ref,
                  cat_ref):
    f32 = jnp.float32
    H, dh = u_ref.shape
    BB, S, D = x_ref.shape
    P = mem_ref.shape[1]
    T = S + P
    HD = H * dh
    G = H * BB
    scale = 1.0 / (dh ** 0.5)

    x = x_ref[...].reshape(BB * S, D)                     # residual input, (BB*S, D)
    xn = _layernorm(x, n1w_ref[...], n1b_ref[...])        # norm1 -> src2

    # [memory ; src2] per batch row via slice-stores into a VMEM scratch.
    cat_ref[:, :P, :] = mem_ref[...]
    cat_ref[:, P:, :] = xn.reshape(BB, S, D)
    cat = cat_ref[...].reshape(BB * T, D)

    # Fused, lane-dense projections: one MXU matmul each (N = HD / 2*HD).
    q = jnp.dot(xn, wq_ref[...], preferred_element_type=f32)      # (BB*S, HD)
    kv = jnp.dot(cat, wkv_ref[...], preferred_element_type=f32)   # (BB*T, 2*HD)
    p = p_ref[...]                                                 # (T, HD), precomputed

    # Split heads with static lane slices (no H-fold broadcast copies).
    q_h = jnp.stack([q[:, h * dh:(h + 1) * dh] for h in range(H)], axis=0)         # (H, BB*S, dh)
    k_h = jnp.stack([kv[:, h * dh:(h + 1) * dh] for h in range(H)], axis=0)        # (H, BB*T, dh)
    v_h = jnp.stack([kv[:, HD + h * dh:HD + (h + 1) * dh] for h in range(H)], axis=0)
    p_h = jnp.stack([p[:, h * dh:(h + 1) * dh] for h in range(H)], axis=0)         # (H, T, dh)

    u_b = u_ref[...][:, None, :]                                   # (H, 1, dh)
    v_b = v_ref[...][:, None, :]

    qu = (q_h + u_b).reshape(G, S, dh)
    kb = k_h.reshape(G, T, dh)
    content = jnp.einsum('gsd,gtd->gst', qu, kb,
                         preferred_element_type=f32)               # (G, S, T)

    # Position logits: rhs is batch-invariant -> contract with (b s) merged.
    qv = q_h + v_b                                                 # (H, BB*S, dh)
    posat = jnp.einsum('hmd,htd->hmt', qv, p_h,
                       preferred_element_type=f32).reshape(G, S, T)

    pos_shift = _rel_shift(posat, S, T, P)

    # ---- softmax over keys + attention-weighted values -----------------------
    logits = (content + pos_shift) * scale
    m = jnp.max(logits, axis=-1, keepdims=True)
    e = jnp.exp(logits - m)
    attn = e / jnp.sum(e, axis=-1, keepdims=True)      # exact divide (strict parity)

    awv = jnp.einsum('gst,gtd->gsd', attn, v_h.reshape(G, T, dh),
                     preferred_element_type=f32)                   # (G, S, dh)
    awv = awv.reshape(H, BB * S, dh)
    awv_flat = jnp.concatenate([awv[h] for h in range(H)], axis=-1)    # (BB*S, HD)
    mha = jnp.dot(awv_flat, wo_ref[...], preferred_element_type=f32)   # (BB*S, D)

    # ---- gate1 -> norm2 -> position-wise FF -> gate2 --------------------------
    src = _gate(g1wy_ref[...], g1ux_ref[...], g1ug_ref[...], g1b_ref[...], x, mha, D)
    srcn = _layernorm(src, n2w_ref[...], n2b_ref[...])
    hid = jnp.maximum(
        jnp.dot(srcn, w1_ref[...], preferred_element_type=f32) + b1_ref[...], 0.0)
    ff = jnp.dot(hid, w2_ref[...], preferred_element_type=f32) + b2_ref[...]
    out = _gate(g2wy_ref[...], g2ux_ref[...], g2ug_ref[...], g2b_ref[...], src, ff, D)
    out_ref[...] = out.reshape(BB, S, D)


# --------------------------------- wrappers ----------------------------------

def stable_transformer_encoder_layer_xl_batch_major(x_bsd, pos_embs, mems_bpd, u, v,
                                                    params, *, block_b=None):
    """x_bsd:(B,S,D) pos_embs:(T,1,D) mems_bpd:(B,P,D) u,v:(H,dh). Returns (B,S,D)."""
    B, S, D = x_bsd.shape
    Pm = mems_bpd.shape[1]
    T = pos_embs.shape[0]
    H, dh = u.shape
    Fd = params["W1"].shape[1]
    HD = H * dh
    assert T == S + Pm
    assert S % 8 == 0 and Pm % 8 == 0, "pad seq / memory length to a multiple of 8 (f32 sublane tile)"
    BB = B if block_b is None else block_b
    assert B % BB == 0

    # Batch-invariant position projection hoisted out of the kernel (done once).
    p_proj = jnp.dot(pos_embs.reshape(T, D), params["Wp"]).astype(jnp.float32)   # (T, HD)

    # ---- one-time parameter re-layout (plain XLA, outside the kernel) --------
    def stack_gate(gw, gb):
        # gw: (6, D, D) = [Wr, Ur, Wz, Uz, Wg, Ug], gb: (6, D) matching biases.
        wy = jnp.concatenate([gw[0], gw[2], gw[4]], axis=1)        # (D, 3D)
        ux = jnp.concatenate([gw[1], gw[3]], axis=1)               # (D, 2D)
        ug = gw[5]                                                 # (D, D)
        bias = jnp.concatenate(
            [gb[0] + gb[1], gb[2] + gb[3], gb[4] + gb[5]]).reshape(1, 3 * D)
        return wy, ux, ug, bias

    g1wy, g1ux, g1ug, g1b = stack_gate(params["g1w"], params["g1b"])
    g2wy, g2ux, g2ug, g2b = stack_gate(params["g2w"], params["g2b"])

    def rep(shape):        # weight replicated across the batch grid (constant index map)
        nd = len(shape)
        return pl.BlockSpec(shape, lambda g, nd=nd: (0,) * nd)

    layer_call = pl.pallas_call(
        _layer_kernel,
        grid=(B // BB,),
        in_specs=[
            pl.BlockSpec((BB, S, D), lambda g: (g, 0, 0)),          # x
            pl.BlockSpec((BB, Pm, D), lambda g: (g, 0, 0)),         # mems
            rep((T, HD)),                                           # p = pos_embs @ Wp
            rep((H, dh)), rep((H, dh)),                             # u, v
            rep((1, D)), rep((1, D)),                               # norm1 w, b
            rep((D, HD)), rep((D, 2 * HD)), rep((HD, D)),           # Wq, Wkv, Wo (2-D, lane-dense)
            rep((D, 3 * D)), rep((D, 2 * D)), rep((D, D)), rep((1, 3 * D)),   # gate1
            rep((1, D)), rep((1, D)),                               # norm2 w, b
            rep((D, Fd)), rep((1, Fd)), rep((Fd, D)), rep((1, D)),  # FF
            rep((D, 3 * D)), rep((D, 2 * D)), rep((D, D)), rep((1, 3 * D)),   # gate2
        ],
        out_specs=pl.BlockSpec((BB, S, D), lambda g: (g, 0, 0)),
        out_shape=jax.ShapeDtypeStruct((B, S, D), jnp.float32),
        scratch_shapes=[pltpu.VMEM((BB, T, D), jnp.float32)],       # [memory ; src2]
        compiler_params=pltpu.CompilerParams(
            dimension_semantics=("parallel",),                      # batch blocks independent
            vmem_limit_bytes=48 * 1024 * 1024),                     # within v7x 64 MiB; raise on v5e/v6e at scale
    )
    return layer_call(
        x_bsd, mems_bpd, p_proj, u, v,
        params["n1w"], params["n1b"],
        params["Wq"], params["Wkv"], params["Wo"],
        g1wy, g1ux, g1ug, g1b,
        params["n2w"], params["n2b"],
        params["W1"], params["b1"], params["W2"], params["b2"],
        g2wy, g2ux, g2ug, g2b)


def stable_transformer_encoder_layer_xl(x_sbd, pos_embs, mems, u, v, params, *, block_b=None):
    """PyTorch-layout glue: x:(S,B,D), mems:(P,B,D) -> (S,B,D).

    Prefer the batch-major entry point above to avoid these two HBM round-trip
    transposes at the layer boundary (perf-review item)."""
    x_bsd = jnp.transpose(x_sbd, (1, 0, 2))
    mem_bpd = jnp.transpose(mems, (1, 0, 2))
    out = stable_transformer_encoder_layer_xl_batch_major(
        x_bsd, pos_embs, mem_bpd, u, v, params, block_b=block_b)
    return jnp.transpose(out, (1, 0, 2))


# -------------------------- plain-JAX reference check ------------------------

def _reference_forward(x, pos_embs, mems, u, v, P):
    S, B, D = x.shape
    T = pos_embs.shape[0]
    H, dh = u.shape
    scale = 1.0 / (dh ** 0.5)

    def ln(z, w, b):
        mu = z.mean(-1, keepdims=True)
        var = ((z - mu) ** 2).mean(-1, keepdims=True)
        return (z - mu) / jnp.sqrt(var + EPS) * w.reshape(D) + b.reshape(D)

    src2 = ln(x, P["n1w"], P["n1b"])
    iwm = jnp.concatenate([mems, src2], axis=0)
    kv = iwm @ P["Wkv"]
    k, vv = jnp.split(kv, 2, axis=-1)
    q = src2 @ P["Wq"]
    p = (pos_embs @ P["Wp"]).reshape(T, H, dh)
    qh = q.reshape(S, B, H, dh)
    kh = k.reshape(T, B, H, dh)
    vh = vv.reshape(T, B, H, dh)
    content = jnp.einsum("ibhd,jbhd->ijbh", qh + u, kh)
    posat = jnp.einsum("ibhd,jhd->ijbh", qh + v, p)
    zp = jnp.zeros((S, 1, B, H), posat.dtype)
    posat = jnp.concatenate([zp, posat], axis=1).reshape(T + 1, S, B, H)[1:].reshape(S, T, B, H)
    attn = jax.nn.softmax((content + posat) * scale, axis=1)
    awv = jnp.einsum("ijbh,jbhd->ibhd", attn, vh).reshape(S, B, H * dh)
    mha_out = awv @ P["Wo"]

    def gate(gw, gb, xg, yg):
        Wr, Ur, Wz, Uz, Wg, Ug = (gw[i] for i in range(6))
        br, bur, bz, buz, bgg, bug = (gb[i] for i in range(6))
        r = jax.nn.sigmoid(yg @ Wr + br + xg @ Ur + bur)
        z = jax.nn.sigmoid(yg @ Wz + bz + xg @ Uz + buz - BG)
        h = jnp.tanh(yg @ Wg + bgg + (r * xg) @ Ug + bug)
        return (1.0 - z) * xg + z * h

    src = gate(P["g1w"], P["g1b"], x, mha_out)
    src2 = ln(src, P["n2w"], P["n2b"])
    ff = jnp.maximum(src2 @ P["W1"] + P["b1"].reshape(-1), 0.0) @ P["W2"] + P["b2"].reshape(-1)
    return gate(P["g2w"], P["g2b"], src, ff)


# ----------------------------------- main -------------------------------------

if __name__ == "__main__":
    # seq, prev_seq, batch, d_input, heads, d_head_inner, d_ff_inner
    S, Pm, B, D, H, dh, Fd = 16, 16, 4, 128, 4, 32, 256
    T = S + Pm

    key = jax.random.PRNGKey(0)
    ks = jax.random.split(key, 20)
    rnd = lambda k, shape, s=0.05: (jax.random.normal(k, shape) * s).astype(jnp.float32)

    x = jax.random.normal(ks[0], (S, B, D), jnp.float32)
    pos_embs = jax.random.normal(ks[1], (T, 1, D), jnp.float32)
    mems = jax.random.normal(ks[2], (Pm, B, D), jnp.float32)
    u = rnd(ks[3], (H, dh))
    v = rnd(ks[4], (H, dh))

    params = dict(
        n1w=jnp.ones((1, D), jnp.float32), n1b=jnp.zeros((1, D), jnp.float32),
        n2w=jnp.ones((1, D), jnp.float32), n2b=jnp.zeros((1, D), jnp.float32),
        Wq=rnd(ks[5], (D, H * dh)), Wkv=rnd(ks[6], (D, 2 * H * dh)),
        Wp=rnd(ks[7], (D, H * dh)), Wo=rnd(ks[8], (H * dh, D)),
        g1w=rnd(ks[9], (6, D, D)), g1b=rnd(ks[10], (6, D)),
        g2w=rnd(ks[11], (6, D, D)), g2b=rnd(ks[12], (6, D)),
        W1=rnd(ks[13], (D, Fd)), b1=rnd(ks[14], (1, Fd)),
        W2=rnd(ks[15], (Fd, D)), b2=rnd(ks[16], (1, D)),
    )

    out = stable_transformer_encoder_layer_xl(x, pos_embs, mems, u, v, params, block_b=2)
    out = jax.block_until_ready(out)
    assert out.shape == (S, B, D)

    with jax.default_matmul_precision("float32"):
        ref = _reference_forward(x, pos_embs, mems, u, v, params)
    ref = jax.block_until_ready(ref)
    assert bool(jnp.allclose(out, ref, atol=1e-2, rtol=1e-2)), \
        "Pallas output mismatch vs JAX reference"

    print("KERNEL_OK")
</pallas_src>

<mosaic_0001>
module attributes {stable_mosaic.version = 11 : i64} {
  func.func @_layer_kernel(%arg0: i32, %arg1: memref<2x16x128xf32, #tpu.memory_space<vmem>>, %arg2: memref<2x16x128xf32, #tpu.memory_space<vmem>>, %arg3: memref<32x128xf32, #tpu.memory_space<vmem>>, %arg4: memref<4x32xf32, #tpu.memory_space<vmem>>, %arg5: memref<4x32xf32, #tpu.memory_space<vmem>>, %arg6: memref<1x128xf32, #tpu.memory_space<vmem>>, %arg7: memref<1x128xf32, #tpu.memory_space<vmem>>, %arg8: memref<128x128xf32, #tpu.memory_space<vmem>>, %arg9: memref<128x256xf32, #tpu.memory_space<vmem>>, %arg10: memref<128x128xf32, #tpu.memory_space<vmem>>, %arg11: memref<128x384xf32, #tpu.memory_space<vmem>>, %arg12: memref<128x256xf32, #tpu.memory_space<vmem>>, %arg13: memref<128x128xf32, #tpu.memory_space<vmem>>, %arg14: memref<1x384xf32, #tpu.memory_space<vmem>>, %arg15: memref<1x128xf32, #tpu.memory_space<vmem>>, %arg16: memref<1x128xf32, #tpu.memory_space<vmem>>, %arg17: memref<128x256xf32, #tpu.memory_space<vmem>>, %arg18: memref<1x256xf32, #tpu.memory_space<vmem>>, %arg19: memref<256x128xf32, #tpu.memory_space<vmem>>, %arg20: memref<1x128xf32, #tpu.memory_space<vmem>>, %arg21: memref<128x384xf32, #tpu.memory_space<vmem>>, %arg22: memref<128x256xf32, #tpu.memory_space<vmem>>, %arg23: memref<128x128xf32, #tpu.memory_space<vmem>>, %arg24: memref<1x384xf32, #tpu.memory_space<vmem>>, %arg25: memref<2x16x128xf32, #tpu.memory_space<vmem>>, %arg26: memref<2x32x128xf32, #tpu.memory_space<vmem>>) attributes {dimension_semantics = [#tpu.dimension_semantics<parallel>], iteration_bounds = array<i64: 2>, scalar_prefetch = 0 : i64, scratch_operands = 1 : i64, tpu.core_type = #tpu.core_type<tc>, window_params = [{transform_indices = @transform_0, window_bounds = array<i64: 2, 16, 128>}, {transform_indices = @transform_1, window_bounds = array<i64: 2, 16, 128>}, {pipeline_mode = #tpu.pipeline_mode<synchronous>, transform_indices = @transform_2, window_bounds = array<i64: 32, 128>}, {pipeline_mode = #tpu.pipeline_mode<synchronous>, transform_indices = @transform_3, window_bounds = array<i64: 4, 32>}, {pipeline_mode = #tpu.pipeline_mode<synchronous>, transform_indices = @transform_4, window_bounds = array<i64: 4, 32>}, {pipeline_mode = #tpu.pipeline_mode<synchronous>, transform_indices = @transform_5, window_bounds = array<i64: 1, 128>}, {pipeline_mode = #tpu.pipeline_mode<synchronous>, transform_indices = @transform_6, window_bounds = array<i64: 1, 128>}, {pipeline_mode = #tpu.pipeline_mode<synchronous>, transform_indices = @transform_7, window_bounds = array<i64: 128, 128>}, {pipeline_mode = #tpu.pipeline_mode<synchronous>, transform_indices = @transform_8, window_bounds = array<i64: 128, 256>}, {pipeline_mode = #tpu.pipeline_mode<synchronous>, transform_indices = @transform_9, window_bounds = array<i64: 128, 128>}, {pipeline_mode = #tpu.pipeline_mode<synchronous>, transform_indices = @transform_10, window_bounds = array<i64: 128, 384>}, {pipeline_mode = #tpu.pipeline_mode<synchronous>, transform_indices = @transform_11, window_bounds = array<i64: 128, 256>}, {pipeline_mode = #tpu.pipeline_mode<synchronous>, transform_indices = @transform_12, window_bounds = array<i64: 128, 128>}, {pipeline_mode = #tpu.pipeline_mode<synchronous>, transform_indices = @transform_13, window_bounds = array<i64: 1, 384>}, {pipeline_mode = #tpu.pipeline_mode<synchronous>, transform_indices = @transform_14, window_bounds = array<i64: 1, 128>}, {pipeline_mode = #tpu.pipeline_mode<synchronous>, transform_indices = @transform_15, window_bounds = array<i64: 1, 128>}, {pipeline_mode = #tpu.pipeline_mode<synchronous>, transform_indices = @transform_16, window_bounds = array<i64: 128, 256>}, {pipeline_mode = #tpu.pipeline_mode<synchronous>, transform_indices = @transform_17, window_bounds = array<i64: 1, 256>}, {pipeline_mode = #tpu.pipeline_mode<synchronous>, transform_indices = @transform_18, window_bounds = array<i64: 256, 128>}, {pipeline_mode = #tpu.pipeline_mode<synchronous>, transform_indices = @transform_19, window_bounds = array<i64: 1, 128>}, {pipeline_mode = #tpu.pipeline_mode<synchronous>, transform_indices = @transform_20, window_bounds = array<i64: 128, 384>}, {pipeline_mode = #tpu.pipeline_mode<synchronous>, transform_indices = @transform_21, window_bounds = array<i64: 128, 256>}, {pipeline_mode = #tpu.pipeline_mode<synchronous>, transform_indices = @transform_22, window_bounds = array<i64: 128, 128>}, {pipeline_mode = #tpu.pipeline_mode<synchronous>, transform_indices = @transform_23, window_bounds = array<i64: 1, 384>}, {transform_indices = @transform_24, window_bounds = array<i64: 2, 16, 128>}]} {
    %c0 = arith.constant 0 : index
    %c0_0 = arith.constant 0 : index
    %c0_1 = arith.constant 0 : index
    %0 = vector.load %arg1[%c0, %c0_0, %c0_1] : memref<2x16x128xf32, #tpu.memory_space<vmem>>, vector<2x16x128xf32>
    %1 = vector.shape_cast %0 : vector<2x16x128xf32> to vector<32x128xf32>
    %c0_2 = arith.constant 0 : index
    %c0_3 = arith.constant 0 : index
    %2 = vector.load %arg6[%c0_2, %c0_3] : memref<1x128xf32, #tpu.memory_space<vmem>>, vector<1x128xf32>
    %c0_4 = arith.constant 0 : index
    %c0_5 = arith.constant 0 : index
    %3 = vector.load %arg7[%c0_4, %c0_5] : memref<1x128xf32, #tpu.memory_space<vmem>>, vector<1x128xf32>
    %cst = arith.constant dense<0.000000e+00> : vector<32xf32>
    %4 = vector.multi_reduction <add>, %1, %cst [1] : vector<32x128xf32> to vector<32xf32>
    %5 = vector.shape_cast %4 : vector<32xf32> to vector<32x1xf32>
    %cst_6 = arith.constant 1.280000e+02 : f32
    %6 = vector.broadcast %cst_6 : f32 to vector<32x1xf32>
    %7 = arith.divf %5, %6 : vector<32x1xf32>
    %8 = vector.broadcast %7 : vector<32x1xf32> to vector<32x128xf32>
    %9 = arith.subf %1, %8 : vector<32x128xf32>
    %10 = arith.mulf %9, %9 : vector<32x128xf32>
    %cst_7 = arith.constant dense<0.000000e+00> : vector<32xf32>
    %11 = vector.multi_reduction <add>, %10, %cst_7 [1] : vector<32x128xf32> to vector<32xf32>
    %12 = vector.shape_cast %11 : vector<32xf32> to vector<32x1xf32>
    %cst_8 = arith.constant 1.280000e+02 : f32
    %13 = vector.broadcast %cst_8 : f32 to vector<32x1xf32>
    %14 = arith.divf %12, %13 : vector<32x1xf32>
    %15 = vector.broadcast %7 : vector<32x1xf32> to vector<32x128xf32>
    %16 = arith.subf %1, %15 : vector<32x128xf32>
    %cst_9 = arith.constant 9.99999974E-6 : f32
    %17 = vector.broadcast %cst_9 : f32 to vector<32x1xf32>
    %18 = arith.addf %14, %17 : vector<32x1xf32>
    %19 = math.rsqrt %18 : vector<32x1xf32>
    %20 = vector.broadcast %19 : vector<32x1xf32> to vector<32x128xf32>
    %21 = arith.mulf %16, %20 : vector<32x128xf32>
    %22 = vector.broadcast %2 : vector<1x128xf32> to vector<32x128xf32>
    %23 = arith.mulf %21, %22 : vector<32x128xf32>
    %24 = vector.broadcast %3 : vector<1x128xf32> to vector<32x128xf32>
    %25 = arith.addf %23, %24 : vector<32x128xf32>
    %c0_10 = arith.constant 0 : index
    %c0_11 = arith.constant 0 : index
    %c0_12 = arith.constant 0 : index
    %26 = vector.load %arg2[%c0_10, %c0_11, %c0_12] : memref<2x16x128xf32, #tpu.memory_space<vmem>>, vector<2x16x128xf32>
    %c0_13 = arith.constant 0 : index
    %c0_14 = arith.constant 0 : index
    %c0_15 = arith.constant 0 : index
    %27 = vector.load %arg26[%c0_13, %c0_14, %c0_15] : memref<2x32x128xf32, #tpu.memory_space<vmem>>, vector<2x16x128xf32>
    tpu.vector_store %arg26[%c0_13, %c0_14, %c0_15], %26 {strides = array<i32>} : memref<2x32x128xf32, #tpu.memory_space<vmem>>, vector<2x16x128xf32>,
    %28 = vector.shape_cast %25 : vector<32x128xf32> to vector<2x16x128xf32>
    %c0_16 = arith.constant 0 : index
    %c16 = arith.constant 16 : index
    %c0_17 = arith.constant 0 : index
    %29 = vector.load %arg26[%c0_16, %c16, %c0_17] : memref<2x32x128xf32, #tpu.memory_space<vmem>>, vector<2x16x128xf32>
    tpu.vector_store %arg26[%c0_16, %c16, %c0_17], %28 {strides = array<i32>} : memref<2x32x128xf32, #tpu.memory_space<vmem>>, vector<2x16x128xf32>,
    %c0_18 = arith.constant 0 : index
    %c0_19 = arith.constant 0 : index
    %c0_20 = arith.constant 0 : index
    %30 = vector.load %arg26[%c0_18, %c0_19, %c0_20] : memref<2x32x128xf32, #tpu.memory_space<vmem>>, vector<2x32x128xf32>
    %31 = vector.shape_cast %30 : vector<2x32x128xf32> to vector<64x128xf32>
    %c0_21 = arith.constant 0 : index
    %c0_22 = arith.constant 0 : index
    %32 = vector.load %arg8[%c0_21, %c0_22] : memref<128x128xf32, #tpu.memory_space<vmem>>, vector<128x128xf32>
    %cst_23 = arith.constant dense<0.000000e+00> : vector<32x128xf32>
    %33 = tpu.matmul %25, %32, %cst_23 {dimension_numbers = #tpu.dot_dimension_numbers<[1], [0], [0], [1], [0, 0, 1, 1], [], []>} : vector<32x128xf32>, vector<128x128xf32>, vector<32x128xf32> -> vector<32x128xf32>
    %c0_24 = arith.constant 0 : index
    %c0_25 = arith.constant 0 : index
    %34 = vector.load %arg9[%c0_24, %c0_25] : memref<128x256xf32, #tpu.memory_space<vmem>>, vector<128x256xf32>
    %cst_26 = arith.constant dense<0.000000e+00> : vector<64x256xf32>
    %35 = tpu.matmul %31, %34, %cst_26 {dimension_numbers = #tpu.dot_dimension_numbers<[1], [0], [0], [1], [0, 0, 1, 1], [], []>} : vector<64x128xf32>, vector<128x256xf32>, vector<64x256xf32> -> vector<64x256xf32>
    %c0_27 = arith.constant 0 : index
    %c0_28 = arith.constant 0 : index
    %36 = vector.load %arg3[%c0_27, %c0_28] : memref<32x128xf32, #tpu.memory_space<vmem>>, vector<32x128xf32>
    %37 = vector.extract_strided_slice %33 {offsets = [0, 0], sizes = [32, 32], strides = [1, 1]} : vector<32x128xf32> to vector<32x32xf32>
    %38 = vector.extract_strided_slice %33 {offsets = [0, 32], sizes = [32, 32], strides = [1, 1]} : vector<32x128xf32> to vector<32x32xf32>
    %39 = vector.extract_strided_slice %33 {offsets = [0, 64], sizes = [32, 32], strides = [1, 1]} : vector<32x128xf32> to vector<32x32xf32>
    %40 = vector.extract_strided_slice %33 {offsets = [0, 96], sizes = [32, 32], strides = [1, 1]} : vector<32x128xf32> to vector<32x32xf32>
    %41 = vector.shape_cast %37 : vector<32x32xf32> to vector<1x32x32xf32>
    %42 = vector.shape_cast %38 : vector<32x32xf32> to vector<1x32x32xf32>
    %43 = vector.shape_cast %39 : vector<32x32xf32> to vector<1x32x32xf32>
    %44 = vector.shape_cast %40 : vector<32x32xf32> to vector<1x32x32xf32>
    %45 = tpu.concatenate %41, %42, %43, %44 in 0 : vector<1x32x32xf32>, vector<1x32x32xf32>, vector<1x32x32xf32>, vector<1x32x32xf32> -> vector<4x32x32xf32>
    %46 = vector.extract_strided_slice %35 {offsets = [0, 0], sizes = [64, 32], strides = [1, 1]} : vector<64x256xf32> to vector<64x32xf32>
    %47 = vector.extract_strided_slice %35 {offsets = [0, 32], sizes = [64, 32], strides = [1, 1]} : vector<64x256xf32> to vector<64x32xf32>
    %48 = vector.extract_strided_slice %35 {offsets = [0, 64], sizes = [64, 32], strides = [1, 1]} : vector<64x256xf32> to vector<64x32xf32>
    %49 = vector.extract_strided_slice %35 {offsets = [0, 96], sizes = [64, 32], strides = [1, 1]} : vector<64x256xf32> to vector<64x32xf32>
    %50 = vector.shape_cast %46 : vector<64x32xf32> to vector<1x64x32xf32>
    %51 = vector.shape_cast %47 : vector<64x32xf32> to vector<1x64x32xf32>
    %52 = vector.shape_cast %48 : vector<64x32xf32> to vector<1x64x32xf32>
    %53 = vector.shape_cast %49 : vector<64x32xf32> to vector<1x64x32xf32>
    %54 = tpu.concatenate %50, %51, %52, %53 in 0 : vector<1x64x32xf32>, vector<1x64x32xf32>, vector<1x64x32xf32>, vector<1x64x32xf32> -> vector<4x64x32xf32>
    %55 = vector.extract_strided_slice %35 {offsets = [0, 128], sizes = [64, 32], strides = [1, 1]} : vector<64x256xf32> to vector<64x32xf32>
    %56 = vector.extract_strided_slice %35 {offsets = [0, 160], sizes = [64, 32], strides = [1, 1]} : vector<64x256xf32> to vector<64x32xf32>
    %57 = vector.extract_strided_slice %35 {offsets = [0, 192], sizes = [64, 32], strides = [1, 1]} : vector<64x256xf32> to vector<64x32xf32>
    %58 = vector.extract_strided_slice %35 {offsets = [0, 224], sizes = [64, 32], strides = [1, 1]} : vector<64x256xf32> to vector<64x32xf32>
    %59 = vector.shape_cast %55 : vector<64x32xf32> to vector<1x64x32xf32>
    %60 = vector.shape_cast %56 : vector<64x32xf32> to vector<1x64x32xf32>
    %61 = vector.shape_cast %57 : vector<64x32xf32> to vector<1x64x32xf32>
    %62 = vector.shape_cast %58 : vector<64x32xf32> to vector<1x64x32xf32>
    %63 = tpu.concatenate %59, %60, %61, %62 in 0 : vector<1x64x32xf32>, vector<1x64x32xf32>, vector<1x64x32xf32>, vector<1x64x32xf32> -> vector<4x64x32xf32>
    %64 = vector.extract_strided_slice %36 {offsets = [0, 0], sizes = [32, 32], strides = [1, 1]} : vector<32x128xf32> to vector<32x32xf32>
    %65 = vector.extract_strided_slice %36 {offsets = [0, 32], sizes = [32, 32], strides = [1, 1]} : vector<32x128xf32> to vector<32x32xf32>
    %66 = vector.extract_strided_slice %36 {offsets = [0, 64], sizes = [32, 32], strides = [1, 1]} : vector<32x128xf32> to vector<32x32xf32>
    %67 = vector.extract_strided_slice %36 {offsets = [0, 96], sizes = [32, 32], strides = [1, 1]} : vector<32x128xf32> to vector<32x32xf32>
    %68 = vector.shape_cast %64 : vector<32x32xf32> to vector<1x32x32xf32>
    %69 = vector.shape_cast %65 : vector<32x32xf32> to vector<1x32x32xf32>
    %70 = vector.shape_cast %66 : vector<32x32xf32> to vector<1x32x32xf32>
    %71 = vector.shape_cast %67 : vector<32x32xf32> to vector<1x32x32xf32>
    %72 = tpu.concatenate %68, %69, %70, %71 in 0 : vector<1x32x32xf32>, vector<1x32x32xf32>, vector<1x32x32xf32>, vector<1x32x32xf32> -> vector<4x32x32xf32>
    %c0_29 = arith.constant 0 : index
    %c0_30 = arith.constant 0 : index
    %73 = vector.load %arg4[%c0_29, %c0_30] : memref<4x32xf32, #tpu.memory_space<vmem>>, vector<4x32xf32>
    %74 = vector.shape_cast %73 : vector<4x32xf32> to vector<4x1x32xf32>
    %c0_31 = arith.constant 0 : index
    %c0_32 = arith.constant 0 : index
    %75 = vector.load %arg5[%c0_31, %c0_32] : memref<4x32xf32, #tpu.memory_space<vmem>>, vector<4x32xf32>
    %76 = vector.shape_cast %75 : vector<4x32xf32> to vector<4x1x32xf32>
    %77 = vector.broadcast %74 : vector<4x1x32xf32> to vector<4x32x32xf32>
    %78 = arith.addf %45, %77 : vector<4x32x32xf32>
    %79 = vector.shape_cast %78 : vector<4x32x32xf32> to vector<8x16x32xf32>
    %80 = vector.shape_cast %54 : vector<4x64x32xf32> to vector<8x32x32xf32>
    "tpu.trace_start"() <{level = 10 : i32, message = "gsd,gtd->gst"}> : () -> ()
    %cst_33 = arith.constant dense<0.000000e+00> : vector<8x16x32xf32>
    %81 = tpu.matmul %79, %80, %cst_33 {dimension_numbers = #tpu.dot_dimension_numbers<[2], [2], [1], [1], [0, 0, 0, 1, 1, 1], [0], [0]>} : vector<8x16x32xf32>, vector<8x32x32xf32>, vector<8x16x32xf32> -> vector<8x16x32xf32>
    "tpu.trace_stop"() : () -> ()
    %82 = vector.broadcast %76 : vector<4x1x32xf32> to vector<4x32x32xf32>
    %83 = arith.addf %45, %82 : vector<4x32x32xf32>
    "tpu.trace_start"() <{level = 10 : i32, message = "hmd,htd->hmt"}> : () -> ()
    %cst_34 = arith.constant dense<0.000000e+00> : vector<4x32x32xf32>
    %84 = tpu.matmul %83, %72, %cst_34 {dimension_numbers = #tpu.dot_dimension_numbers<[2], [2], [1], [1], [0, 0, 0, 1, 1, 1], [0], [0]>} : vector<4x32x32xf32>, vector<4x32x32xf32>, vector<4x32x32xf32> -> vector<4x32x32xf32>
    "tpu.trace_stop"() : () -> ()
    %85 = vector.shape_cast %84 : vector<4x32x32xf32> to vector<8x16x32xf32>
    %86 = tpu.iota {dimensions = array<i32: 1>} : vector<1x16x32xi32>
    %87 = tpu.iota {dimensions = array<i32: 2>} : vector<1x16x32xi32>
    %c15_i32 = arith.constant 15 : i32
    %88 = vector.broadcast %c15_i32 : i32 to vector<1x16x32xi32>
    %89 = arith.subi %88, %86 : vector<1x16x32xi32>
    %90 = vector.extract_strided_slice %85 {offsets = [0, 0, 1], sizes = [8, 16, 31], strides = [1, 1, 1]} : vector<8x16x32xf32> to vector<8x16x31xf32>
    %91 = vector.extract_strided_slice %85 {offsets = [0, 0, 0], sizes = [8, 16, 1], strides = [1, 1, 1]} : vector<8x16x32xf32> to vector<8x16x1xf32>
    %92 = tpu.concatenate %90, %91 in 2 : vector<8x16x31xf32>, vector<8x16x1xf32> -> vector<8x16x32xf32>
    %c0_i32 = arith.constant 0 : i32
    %93 = vector.broadcast %c0_i32 : i32 to vector<1x16x32xi32>
    %94 = arith.shrsi %89, %93 : vector<1x16x32xi32>
    %c1_i32 = arith.constant 1 : i32
    %95 = vector.broadcast %c1_i32 : i32 to vector<1x16x32xi32>
    %96 = arith.andi %94, %95 : vector<1x16x32xi32>
    %c1_i32_35 = arith.constant 1 : i32
    %97 = vector.broadcast %c1_i32_35 : i32 to vector<1x16x32xi32>
    %98 = arith.cmpi eq, %96, %97 : vector<1x16x32xi32>
    %99 = vector.shape_cast %98 : vector<1x16x32xi1> to vector<1x16x32xi1>
    %100 = vector.broadcast %99 : vector<1x16x32xi1> to vector<8x16x32xi1>
    %101 = arith.select %100, %92, %85 : vector<8x16x32xi1>, vector<8x16x32xf32>
    %102 = vector.extract_strided_slice %101 {offsets = [0, 0, 2], sizes = [8, 16, 30], strides = [1, 1, 1]} : vector<8x16x32xf32> to vector<8x16x30xf32>
    %103 = vector.extract_strided_slice %101 {offsets = [0, 0, 0], sizes = [8, 16, 2], strides = [1, 1, 1]} : vector<8x16x32xf32> to vector<8x16x2xf32>
    %104 = tpu.concatenate %102, %103 in 2 : vector<8x16x30xf32>, vector<8x16x2xf32> -> vector<8x16x32xf32>
    %c1_i32_36 = arith.constant 1 : i32
    %105 = vector.broadcast %c1_i32_36 : i32 to vector<1x16x32xi32>
    %106 = arith.shrsi %89, %105 : vector<1x16x32xi32>
    %c1_i32_37 = arith.constant 1 : i32
    %107 = vector.broadcast %c1_i32_37 : i32 to vector<1x16x32xi32>
    %108 = arith.andi %106, %107 : vector<1x16x32xi32>
    %c1_i32_38 = arith.constant 1 : i32
    %109 = vector.broadcast %c1_i32_38 : i32 to vector<1x16x32xi32>
    %110 = arith.cmpi eq, %108, %109 : vector<1x16x32xi32>
    %111 = vector.shape_cast %110 : vector<1x16x32xi1> to vector<1x16x32xi1>
    %112 = vector.broadcast %111 : vector<1x16x32xi1> to vector<8x16x32xi1>
    %113 = arith.select %112, %104, %101 : vector<8x16x32xi1>, vector<8x16x32xf32>
    %114 = vector.extract_strided_slice %113 {offsets = [0, 0, 4], sizes = [8, 16, 28], strides = [1, 1, 1]} : vector<8x16x32xf32> to vector<8x16x28xf32>
    %115 = vector.extract_strided_slice %113 {offsets = [0, 0, 0], sizes = [8, 16, 4], strides = [1, 1, 1]} : vector<8x16x32xf32> to vector<8x16x4xf32>
    %116 = tpu.concatenate %114, %115 in 2 : vector<8x16x28xf32>, vector<8x16x4xf32> -> vector<8x16x32xf32>
    %c2_i32 = arith.constant 2 : i32
    %117 = vector.broadcast %c2_i32 : i32 to vector<1x16x32xi32>
    %118 = arith.shrsi %89, %117 : vector<1x16x32xi32>
    %c1_i32_39 = arith.constant 1 : i32
    %119 = vector.broadcast %c1_i32_39 : i32 to vector<1x16x32xi32>
    %120 = arith.andi %118, %119 : vector<1x16x32xi32>
    %c1_i32_40 = arith.constant 1 : i32
    %121 = vector.broadcast %c1_i32_40 : i32 to vector<1x16x32xi32>
    %122 = arith.cmpi eq, %120, %121 : vector<1x16x32xi32>
    %123 = vector.shape_cast %122 : vector<1x16x32xi1> to vector<1x16x32xi1>
    %124 = vector.broadcast %123 : vector<1x16x32xi1> to vector<8x16x32xi1>
    %125 = arith.select %124, %116, %113 : vector<8x16x32xi1>, vector<8x16x32xf32>
    %126 = vector.extract_strided_slice %125 {offsets = [0, 0, 8], sizes = [8, 16, 24], strides = [1, 1, 1]} : vector<8x16x32xf32> to vector<8x16x24xf32>
    %127 = vector.extract_strided_slice %125 {offsets = [0, 0, 0], sizes = [8, 16, 8], strides = [1, 1, 1]} : vector<8x16x32xf32> to vector<8x16x8xf32>
    %128 = tpu.concatenate %126, %127 in 2 : vector<8x16x24xf32>, vector<8x16x8xf32> -> vector<8x16x32xf32>
    %c3_i32 = arith.constant 3 : i32
    %129 = vector.broadcast %c3_i32 : i32 to vector<1x16x32xi32>
    %130 = arith.shrsi %89, %129 : vector<1x16x32xi32>
    %c1_i32_41 = arith.constant 1 : i32
    %131 = vector.broadcast %c1_i32_41 : i32 to vector<1x16x32xi32>
    %132 = arith.andi %130, %131 : vector<1x16x32xi32>
    %c1_i32_42 = arith.constant 1 : i32
    %133 = vector.broadcast %c1_i32_42 : i32 to vector<1x16x32xi32>
    %134 = arith.cmpi eq, %132, %133 : vector<1x16x32xi32>
    %135 = vector.shape_cast %134 : vector<1x16x32xi1> to vector<1x16x32xi1>
    %136 = vector.broadcast %135 : vector<1x16x32xi1> to vector<8x16x32xi1>
    %137 = arith.select %136, %128, %125 : vector<8x16x32xi1>, vector<8x16x32xf32>
    %138 = vector.extract_strided_slice %137 {offsets = [0, 1, 0], sizes = [8, 15, 32], strides = [1, 1, 1]} : vector<8x16x32xf32> to vector<8x15x32xf32>
    %139 = vector.extract_strided_slice %137 {offsets = [0, 0, 0], sizes = [8, 1, 32], strides = [1, 1, 1]} : vector<8x16x32xf32> to vector<8x1x32xf32>
    %140 = tpu.concatenate %138, %139 in 1 : vector<8x15x32xf32>, vector<8x1x32xf32> -> vector<8x16x32xf32>
    %c16_i32 = arith.constant 16 : i32
    %141 = vector.broadcast %c16_i32 : i32 to vector<1x16x32xi32>
    %142 = arith.addi %141, %86 : vector<1x16x32xi32>
    %143 = arith.cmpi sle, %87, %142 : vector<1x16x32xi32>
    %c16_i32_43 = arith.constant 16 : i32
    %144 = vector.broadcast %c16_i32_43 : i32 to vector<1x16x32xi32>
    %145 = arith.addi %144, %86 : vector<1x16x32xi32>
    %c1_i32_44 = arith.constant 1 : i32
    %146 = vector.broadcast %c1_i32_44 : i32 to vector<1x16x32xi32>
    %147 = arith.addi %145, %146 : vector<1x16x32xi32>
    %148 = arith.cmpi eq, %87, %147 : vector<1x16x32xi32>
    %cst_45 = arith.constant 0.000000e+00 : f32
    %149 = vector.shape_cast %148 : vector<1x16x32xi1> to vector<1x16x32xi1>
    %150 = vector.broadcast %149 : vector<1x16x32xi1> to vector<8x16x32xi1>
    %151 = vector.broadcast %cst_45 : f32 to vector<8x16x32xf32>
    %152 = arith.select %150, %151, %140 : vector<8x16x32xi1>, vector<8x16x32xf32>
    %153 = vector.shape_cast %143 : vector<1x16x32xi1> to vector<1x16x32xi1>
    %154 = vector.broadcast %153 : vector<1x16x32xi1> to vector<8x16x32xi1>
    %155 = arith.select %154, %137, %152 : vector<8x16x32xi1>, vector<8x16x32xf32>
    %156 = arith.addf %81, %155 : vector<8x16x32xf32>
    %cst_46 = arith.constant 0.176776692 : f32
    %157 = vector.broadcast %cst_46 : f32 to vector<8x16x32xf32>
    %158 = arith.mulf %156, %157 : vector<8x16x32xf32>
    %cst_47 = arith.constant dense<0xFF800000> : vector<8x16xf32>
    %159 = vector.multi_reduction <maximumf>, %158, %cst_47 [2] : vector<8x16x32xf32> to vector<8x16xf32>
    %160 = vector.shape_cast %159 : vector<8x16xf32> to vector<8x16x1xf32>
    %161 = vector.broadcast %160 : vector<8x16x1xf32> to vector<8x16x32xf32>
    %162 = arith.subf %158, %161 : vector<8x16x32xf32>
    %163 = math.exp %162 : vector<8x16x32xf32>
    %cst_48 = arith.constant dense<0.000000e+00> : vector<8x16xf32>
    %164 = vector.multi_reduction <add>, %163, %cst_48 [2] : vector<8x16x32xf32> to vector<8x16xf32>
    %165 = vector.shape_cast %164 : vector<8x16xf32> to vector<8x16x1xf32>
    %166 = vector.broadcast %165 : vector<8x16x1xf32> to vector<8x16x32xf32>
    %167 = arith.divf %163, %166 : vector<8x16x32xf32>
    %168 = vector.shape_cast %63 : vector<4x64x32xf32> to vector<8x32x32xf32>
    "tpu.trace_start"() <{level = 10 : i32, message = "gst,gtd->gsd"}> : () -> ()
    %cst_49 = arith.constant dense<0.000000e+00> : vector<8x16x32xf32>
    %169 = tpu.matmul %167, %168, %cst_49 {dimension_numbers = #tpu.dot_dimension_numbers<[2], [1], [1], [2], [0, 0, 0, 1, 1, 2], [0], [0]>} : vector<8x16x32xf32>, vector<8x32x32xf32>, vector<8x16x32xf32> -> vector<8x16x32xf32>
    "tpu.trace_stop"() : () -> ()
    %170 = vector.shape_cast %169 : vector<8x16x32xf32> to vector<4x32x32xf32>
    %171 = vector.extract_strided_slice %170 {offsets = [0, 0, 0], sizes = [1, 32, 32], strides = [1, 1, 1]} : vector<4x32x32xf32> to vector<1x32x32xf32>
    %172 = vector.shape_cast %171 : vector<1x32x32xf32> to vector<32x32xf32>
    %173 = vector.extract_strided_slice %170 {offsets = [1, 0, 0], sizes = [1, 32, 32], strides = [1, 1, 1]} : vector<4x32x32xf32> to vector<1x32x32xf32>
    %174 = vector.shape_cast %173 : vector<1x32x32xf32> to vector<32x32xf32>
    %175 = vector.extract_strided_slice %170 {offsets = [2, 0, 0], sizes = [1, 32, 32], strides = [1, 1, 1]} : vector<4x32x32xf32> to vector<1x32x32xf32>
    %176 = vector.shape_cast %175 : vector<1x32x32xf32> to vector<32x32xf32>
    %177 = vector.extract_strided_slice %170 {offsets = [3, 0, 0], sizes = [1, 32, 32], strides = [1, 1, 1]} : vector<4x32x32xf32> to vector<1x32x32xf32>
    %178 = vector.shape_cast %177 : vector<1x32x32xf32> to vector<32x32xf32>
    %179 = tpu.concatenate %172, %174, %176, %178 in 1 : vector<32x32xf32>, vector<32x32xf32>, vector<32x32xf32>, vector<32x32xf32> -> vector<32x128xf32>
    %c0_50 = arith.constant 0 : index
    %c0_51 = arith.constant 0 : index
    %180 = vector.load %arg10[%c0_50, %c0_51] : memref<128x128xf32, #tpu.memory_space<vmem>>, vector<128x128xf32>
    %cst_52 = arith.constant dense<0.000000e+00> : vector<32x128xf32>
    %181 = tpu.matmul %179, %180, %cst_52 {dimension_numbers = #tpu.dot_dimension_numbers<[1], [0], [0], [1], [0, 0, 1, 1], [], []>} : vector<32x128xf32>, vector<128x128xf32>, vector<32x128xf32> -> vector<32x128xf32>
    %c0_53 = arith.constant 0 : index
    %c0_54 = arith.constant 0 : index
    %182 = vector.load %arg11[%c0_53, %c0_54] : memref<128x384xf32, #tpu.memory_space<vmem>>, vector<128x384xf32>
    %c0_55 = arith.constant 0 : index
    %c0_56 = arith.constant 0 : index
    %183 = vector.load %arg12[%c0_55, %c0_56] : memref<128x256xf32, #tpu.memory_space<vmem>>, vector<128x256xf32>
    %c0_57 = arith.constant 0 : index
    %c0_58 = arith.constant 0 : index
    %184 = vector.load %arg13[%c0_57, %c0_58] : memref<128x128xf32, #tpu.memory_space<vmem>>, vector<128x128xf32>
    %c0_59 = arith.constant 0 : index
    %c0_60 = arith.constant 0 : index
    %185 = vector.load %arg14[%c0_59, %c0_60] : memref<1x384xf32, #tpu.memory_space<vmem>>, vector<1x384xf32>
    %cst_61 = arith.constant dense<0.000000e+00> : vector<32x384xf32>
    %186 = tpu.matmul %181, %182, %cst_61 {dimension_numbers = #tpu.dot_dimension_numbers<[1], [0], [0], [1], [0, 0, 1, 1], [], []>} : vector<32x128xf32>, vector<128x384xf32>, vector<32x384xf32> -> vector<32x384xf32>
    %187 = vector.broadcast %185 : vector<1x384xf32> to vector<32x384xf32>
    %188 = arith.addf %186, %187 : vector<32x384xf32>
    %cst_62 = arith.constant dense<0.000000e+00> : vector<32x256xf32>
    %189 = tpu.matmul %1, %183, %cst_62 {dimension_numbers = #tpu.dot_dimension_numbers<[1], [0], [0], [1], [0, 0, 1, 1], [], []>} : vector<32x128xf32>, vector<128x256xf32>, vector<32x256xf32> -> vector<32x256xf32>
    %190 = vector.extract_strided_slice %188 {offsets = [0, 0], sizes = [32, 128], strides = [1, 1]} : vector<32x384xf32> to vector<32x128xf32>
    %191 = vector.extract_strided_slice %189 {offsets = [0, 0], sizes = [32, 128], strides = [1, 1]} : vector<32x256xf32> to vector<32x128xf32>
    %192 = arith.addf %190, %191 : vector<32x128xf32>
    %193 = arith.negf %192 : vector<32x128xf32>
    %194 = math.exp %193 : vector<32x128xf32>
    %cst_63 = arith.constant 1.000000e+00 : f32
    %195 = vector.broadcast %cst_63 : f32 to vector<32x128xf32>
    %196 = arith.addf %195, %194 : vector<32x128xf32>
    %197 = arith.divf %195, %196 : vector<32x128xf32>
    %198 = vector.extract_strided_slice %188 {offsets = [0, 128], sizes = [32, 128], strides = [1, 1]} : vector<32x384xf32> to vector<32x128xf32>
    %199 = vector.extract_strided_slice %189 {offsets = [0, 128], sizes = [32, 128], strides = [1, 1]} : vector<32x256xf32> to vector<32x128xf32>
    %200 = arith.addf %198, %199 : vector<32x128xf32>
    %cst_64 = arith.constant 1.000000e-01 : f32
    %201 = vector.broadcast %cst_64 : f32 to vector<32x128xf32>
    %202 = arith.subf %200, %201 : vector<32x128xf32>
    %203 = arith.negf %202 : vector<32x128xf32>
    %204 = math.exp %203 : vector<32x128xf32>
    %cst_65 = arith.constant 1.000000e+00 : f32
    %205 = vector.broadcast %cst_65 : f32 to vector<32x128xf32>
    %206 = arith.addf %205, %204 : vector<32x128xf32>
    %207 = arith.divf %205, %206 : vector<32x128xf32>
    %208 = vector.extract_strided_slice %188 {offsets = [0, 256], sizes = [32, 128], strides = [1, 1]} : vector<32x384xf32> to vector<32x128xf32>
    %209 = arith.mulf %197, %1 : vector<32x128xf32>
    %cst_66 = arith.constant dense<0.000000e+00> : vector<32x128xf32>
    %210 = tpu.matmul %209, %184, %cst_66 {dimension_numbers = #tpu.dot_dimension_numbers<[1], [0], [0], [1], [0, 0, 1, 1], [], []>} : vector<32x128xf32>, vector<128x128xf32>, vector<32x128xf32> -> vector<32x128xf32>
    %211 = arith.addf %208, %210 : vector<32x128xf32>
    %212 = math.tanh %211 : vector<32x128xf32>
    %cst_67 = arith.constant 1.000000e+00 : f32
    %213 = vector.broadcast %cst_67 : f32 to vector<32x128xf32>
    %214 = arith.subf %213, %207 : vector<32x128xf32>
    %215 = arith.mulf %214, %1 : vector<32x128xf32>
    %216 = arith.mulf %207, %212 : vector<32x128xf32>
    %217 = arith.addf %215, %216 : vector<32x128xf32>
    %c0_68 = arith.constant 0 : index
    %c0_69 = arith.constant 0 : index
    %218 = vector.load %arg15[%c0_68, %c0_69] : memref<1x128xf32, #tpu.memory_space<vmem>>, vector<1x128xf32>
    %c0_70 = arith.constant 0 : index
    %c0_71 = arith.constant 0 : index
    %219 = vector.load %arg16[%c0_70, %c0_71] : memref<1x128xf32, #tpu.memory_space<vmem>>, vector<1x128xf32>
    %cst_72 = arith.constant dense<0.000000e+00> : vector<32xf32>
    %220 = vector.multi_reduction <add>, %217, %cst_72 [1] : vector<32x128xf32> to vector<32xf32>
    %221 = vector.shape_cast %220 : vector<32xf32> to vector<32x1xf32>
    %cst_73 = arith.constant 1.280000e+02 : f32
    %222 = vector.broadcast %cst_73 : f32 to vector<32x1xf32>
    %223 = arith.divf %221, %222 : vector<32x1xf32>
    %224 = vector.broadcast %223 : vector<32x1xf32> to vector<32x128xf32>
    %225 = arith.subf %217, %224 : vector<32x128xf32>
    %226 = arith.mulf %225, %225 : vector<32x128xf32>
    %cst_74 = arith.constant dense<0.000000e+00> : vector<32xf32>
    %227 = vector.multi_reduction <add>, %226, %cst_74 [1] : vector<32x128xf32> to vector<32xf32>
    %228 = vector.shape_cast %227 : vector<32xf32> to vector<32x1xf32>
    %cst_75 = arith.constant 1.280000e+02 : f32
    %229 = vector.broadcast %cst_75 : f32 to vector<32x1xf32>
    %230 = arith.divf %228, %229 : vector<32x1xf32>
    %231 = vector.broadcast %223 : vector<32x1xf32> to vector<32x128xf32>
    %232 = arith.subf %217, %231 : vector<32x128xf32>
    %cst_76 = arith.constant 9.99999974E-6 : f32
    %233 = vector.broadcast %cst_76 : f32 to vector<32x1xf32>
    %234 = arith.addf %230, %233 : vector<32x1xf32>
    %235 = math.rsqrt %234 : vector<32x1xf32>
    %236 = vector.broadcast %235 : vector<32x1xf32> to vector<32x128xf32>
    %237 = arith.mulf %232, %236 : vector<32x128xf32>
    %238 = vector.broadcast %218 : vector<1x128xf32> to vector<32x128xf32>
    %239 = arith.mulf %237, %238 : vector<32x128xf32>
    %240 = vector.broadcast %219 : vector<1x128xf32> to vector<32x128xf32>
    %241 = arith.addf %239, %240 : vector<32x128xf32>
    %c0_77 = arith.constant 0 : index
    %c0_78 = arith.constant 0 : index
    %242 = vector.load %arg17[%c0_77, %c0_78] : memref<128x256xf32, #tpu.memory_space<vmem>>, vector<128x256xf32>
    %cst_79 = arith.constant dense<0.000000e+00> : vector<32x256xf32>
    %243 = tpu.matmul %241, %242, %cst_79 {dimension_numbers = #tpu.dot_dimension_numbers<[1], [0], [0], [1], [0, 0, 1, 1], [], []>} : vector<32x128xf32>, vector<128x256xf32>, vector<32x256xf32> -> vector<32x256xf32>
    %c0_80 = arith.constant 0 : index
    %c0_81 = arith.constant 0 : index
    %244 = vector.load %arg18[%c0_80, %c0_81] : memref<1x256xf32, #tpu.memory_space<vmem>>, vector<1x256xf32>
    %245 = vector.broadcast %244 : vector<1x256xf32> to vector<32x256xf32>
    %246 = arith.addf %243, %245 : vector<32x256xf32>
    %cst_82 = arith.constant 0.000000e+00 : f32
    %247 = vector.broadcast %cst_82 : f32 to vector<32x256xf32>
    %248 = arith.maximumf %246, %247 : vector<32x256xf32>
    %c0_83 = arith.constant 0 : index
    %c0_84 = arith.constant 0 : index
    %249 = vector.load %arg19[%c0_83, %c0_84] : memref<256x128xf32, #tpu.memory_space<vmem>>, vector<256x128xf32>
    %cst_85 = arith.constant dense<0.000000e+00> : vector<32x128xf32>
    %250 = tpu.matmul %248, %249, %cst_85 {dimension_numbers = #tpu.dot_dimension_numbers<[1], [0], [0], [1], [0, 0, 1, 1], [], []>} : vector<32x256xf32>, vector<256x128xf32>, vector<32x128xf32> -> vector<32x128xf32>
    %c0_86 = arith.constant 0 : index
    %c0_87 = arith.constant 0 : index
    %251 = vector.load %arg20[%c0_86, %c0_87] : memref<1x128xf32, #tpu.memory_space<vmem>>, vector<1x128xf32>
    %252 = vector.broadcast %251 : vector<1x128xf32> to vector<32x128xf32>
    %253 = arith.addf %250, %252 : vector<32x128xf32>
    %c0_88 = arith.constant 0 : index
    %c0_89 = arith.constant 0 : index
    %254 = vector.load %arg21[%c0_88, %c0_89] : memref<128x384xf32, #tpu.memory_space<vmem>>, vector<128x384xf32>
    %c0_90 = arith.constant 0 : index
    %c0_91 = arith.constant 0 : index
    %255 = vector.load %arg22[%c0_90, %c0_91] : memref<128x256xf32, #tpu.memory_space<vmem>>, vector<128x256xf32>
    %c0_92 = arith.constant 0 : index
    %c0_93 = arith.constant 0 : index
    %256 = vector.load %arg23[%c0_92, %c0_93] : memref<128x128xf32, #tpu.memory_space<vmem>>, vector<128x128xf32>
    %c0_94 = arith.constant 0 : index
    %c0_95 = arith.constant 0 : index
    %257 = vector.load %arg24[%c0_94, %c0_95] : memref<1x384xf32, #tpu.memory_space<vmem>>, vector<1x384xf32>
    %cst_96 = arith.constant dense<0.000000e+00> : vector<32x384xf32>
    %258 = tpu.matmul %253, %254, %cst_96 {dimension_numbers = #tpu.dot_dimension_numbers<[1], [0], [0], [1], [0, 0, 1, 1], [], []>} : vector<32x128xf32>, vector<128x384xf32>, vector<32x384xf32> -> vector<32x384xf32>
    %259 = vector.broadcast %257 : vector<1x384xf32> to vector<32x384xf32>
    %260 = arith.addf %258, %259 : vector<32x384xf32>
    %cst_97 = arith.constant dense<0.000000e+00> : vector<32x256xf32>
    %261 = tpu.matmul %217, %255, %cst_97 {dimension_numbers = #tpu.dot_dimension_numbers<[1], [0], [0], [1], [0, 0, 1, 1], [], []>} : vector<32x128xf32>, vector<128x256xf32>, vector<32x256xf32> -> vector<32x256xf32>
    %262 = vector.extract_strided_slice %260 {offsets = [0, 0], sizes = [32, 128], strides = [1, 1]} : vector<32x384xf32> to vector<32x128xf32>
    %263 = vector.extract_strided_slice %261 {offsets = [0, 0], sizes = [32, 128], strides = [1, 1]} : vector<32x256xf32> to vector<32x128xf32>
    %264 = arith.addf %262, %263 : vector<32x128xf32>
    %265 = arith.negf %264 : vector<32x128xf32>
    %266 = math.exp %265 : vector<32x128xf32>
    %cst_98 = arith.constant 1.000000e+00 : f32
    %267 = vector.broadcast %cst_98 : f32 to vector<32x128xf32>
    %268 = arith.addf %267, %266 : vector<32x128xf32>
    %269 = arith.divf %267, %268 : vector<32x128xf32>
    %270 = vector.extract_strided_slice %260 {offsets = [0, 128], sizes = [32, 128], strides = [1, 1]} : vector<32x384xf32> to vector<32x128xf32>
    %271 = vector.extract_strided_slice %261 {offsets = [0, 128], sizes = [32, 128], strides = [1, 1]} : vector<32x256xf32> to vector<32x128xf32>
    %272 = arith.addf %270, %271 : vector<32x128xf32>
    %cst_99 = arith.constant 1.000000e-01 : f32
    %273 = vector.broadcast %cst_99 : f32 to vector<32x128xf32>
    %274 = arith.subf %272, %273 : vector<32x128xf32>
    %275 = arith.negf %274 : vector<32x128xf32>
    %276 = math.exp %275 : vector<32x128xf32>
    %cst_100 = arith.constant 1.000000e+00 : f32
    %277 = vector.broadcast %cst_100 : f32 to vector<32x128xf32>
    %278 = arith.addf %277, %276 : vector<32x128xf32>
    %279 = arith.divf %277, %278 : vector<32x128xf32>
    %280 = vector.extract_strided_slice %260 {offsets = [0, 256], sizes = [32, 128], strides = [1, 1]} : vector<32x384xf32> to vector<32x128xf32>
    %281 = arith.mulf %269, %217 : vector<32x128xf32>
    %cst_101 = arith.constant dense<0.000000e+00> : vector<32x128xf32>
    %282 = tpu.matmul %281, %256, %cst_101 {dimension_numbers = #tpu.dot_dimension_numbers<[1], [0], [0], [1], [0, 0, 1, 1], [], []>} : vector<32x128xf32>, vector<128x128xf32>, vector<32x128xf32> -> vector<32x128xf32>
    %283 = arith.addf %280, %282 : vector<32x128xf32>
    %284 = math.tanh %283 : vector<32x128xf32>
    %cst_102 = arith.constant 1.000000e+00 : f32
    %285 = vector.broadcast %cst_102 : f32 to vector<32x128xf32>
    %286 = arith.subf %285, %279 : vector<32x128xf32>
    %287 = arith.mulf %286, %217 : vector<32x128xf32>
    %288 = arith.mulf %279, %284 : vector<32x128xf32>
    %289 = arith.addf %287, %288 : vector<32x128xf32>
    %290 = vector.shape_cast %289 : vector<32x128xf32> to vector<2x16x128xf32>
    %c0_103 = arith.constant 0 : index
    %c0_104 = arith.constant 0 : index
    %c0_105 = arith.constant 0 : index
    %291 = vector.load %arg25[%c0_103, %c0_104, %c0_105] : memref<2x16x128xf32, #tpu.memory_space<vmem>>, vector<2x16x128xf32>
    tpu.vector_store %arg25[%c0_103, %c0_104, %c0_105], %290 {strides = array<i32>} : memref<2x16x128xf32, #tpu.memory_space<vmem>>, vector<2x16x128xf32>,
    return
  }
  func.func @transform_0(%arg0: i32) -> (i32, i32, i32) {
    %c0_i32 = arith.constant 0 : i32
    %c0_i32_0 = arith.constant 0 : i32
    %c0_i32_1 = arith.constant 0 : i32
    return %arg0, %c0_i32, %c0_i32_0 : i32, i32, i32
  }
  func.func @transform_1(%arg0: i32) -> (i32, i32, i32) {
    %c0_i32 = arith.constant 0 : i32
    %c0_i32_0 = arith.constant 0 : i32
    %c0_i32_1 = arith.constant 0 : i32
    return %arg0, %c0_i32, %c0_i32_0 : i32, i32, i32
  }
  func.func @transform_2(%arg0: i32) -> (i32, i32) {
    %c0_i32 = arith.constant 0 : i32
    %c0_i32_0 = arith.constant 0 : i32
    %c0_i32_1 = arith.constant 0 : i32
    return %c0_i32, %c0_i32_0 : i32, i32
  }
  func.func @transform_3(%arg0: i32) -> (i32, i32) {
    %c0_i32 = arith.constant 0 : i32
    %c0_i32_0 = arith.constant 0 : i32
    %c0_i32_1 = arith.constant 0 : i32
    return %c0_i32, %c0_i32_0 : i32, i32
  }
  func.func @transform_4(%arg0: i32) -> (i32, i32) {
    %c0_i32 = arith.constant 0 : i32
    %c0_i32_0 = arith.constant 0 : i32
    %c0_i32_1 = arith.constant 0 : i32
    return %c0_i32, %c0_i32_0 : i32, i32
  }
  func.func @transform_5(%arg0: i32) -> (i32, i32) {
    %c0_i32 = arith.constant 0 : i32
    %c0_i32_0 = arith.constant 0 : i32
    %c0_i32_1 = arith.constant 0 : i32
    return %c0_i32, %c0_i32_0 : i32, i32
  }
  func.func @transform_6(%arg0: i32) -> (i32, i32) {
    %c0_i32 = arith.constant 0 : i32
    %c0_i32_0 = arith.constant 0 : i32
    %c0_i32_1 = arith.constant 0 : i32
    return %c0_i32, %c0_i32_0 : i32, i32
  }
  func.func @transform_7(%arg0: i32) -> (i32, i32) {
    %c0_i32 = arith.constant 0 : i32
    %c0_i32_0 = arith.constant 0 : i32
    %c0_i32_1 = arith.constant 0 : i32
    return %c0_i32, %c0_i32_0 : i32, i32
  }
  func.func @transform_8(%arg0: i32) -> (i32, i32) {
    %c0_i32 = arith.constant 0 : i32
    %c0_i32_0 = arith.constant 0 : i32
    %c0_i32_1 = arith.constant 0 : i32
    return %c0_i32, %c0_i32_0 : i32, i32
  }
  func.func @transform_9(%arg0: i32) -> (i32, i32) {
    %c0_i32 = arith.constant 0 : i32
    %c0_i32_0 = arith.constant 0 : i32
    %c0_i32_1 = arith.constant 0 : i32
    return %c0_i32, %c0_i32_0 : i32, i32
  }
  func.func @transform_10(%arg0: i32) -> (i32, i32) {
    %c0_i32 = arith.constant 0 : i32
    %c0_i32_0 = arith.constant 0 : i32
    %c0_i32_1 = arith.constant 0 : i32
    return %c0_i32, %c0_i32_0 : i32, i32
  }
  func.func @transform_11(%arg0: i32) -> (i32, i32) {
    %c0_i32 = arith.constant 0 : i32
    %c0_i32_0 = arith.constant 0 : i32
    %c0_i32_1 = arith.constant 0 : i32
    return %c0_i32, %c0_i32_0 : i32, i32
  }
  func.func @transform_12(%arg0: i32) -> (i32, i32) {
    %c0_i32 = arith.constant 0 : i32
    %c0_i32_0 = arith.constant 0 : i32
    %c0_i32_1 = arith.constant 0 : i32
    return %c0_i32, %c0_i32_0 : i32, i32
  }
  func.func @transform_13(%arg0: i32) -> (i32, i32) {
    %c0_i32 = arith.constant 0 : i32
    %c0_i32_0 = arith.constant 0 : i32
    %c0_i32_1 = arith.constant 0 : i32
    return %c0_i32, %c0_i32_0 : i32, i32
  }
  func.func @transform_14(%arg0: i32) -> (i32, i32) {
    %c0_i32 = arith.constant 0 : i32
    %c0_i32_0 = arith.constant 0 : i32
    %c0_i32_1 = arith.constant 0 : i32
    return %c0_i32, %c0_i32_0 : i32, i32
  }
  func.func @transform_15(%arg0: i32) -> (i32, i32) {
    %c0_i32 = arith.constant 0 : i32
    %c0_i32_0 = arith.constant 0 : i32
    %c0_i32_1 = arith.constant 0 : i32
    return %c0_i32, %c0_i32_0 : i32, i32
  }
  func.func @transform_16(%arg0: i32) -> (i32, i32) {
    %c0_i32 = arith.constant 0 : i32
    %c0_i32_0 = arith.constant 0 : i32
    %c0_i32_1 = arith.constant 0 : i32
    return %c0_i32, %c0_i32_0 : i32, i32
  }
  func.func @transform_17(%arg0: i32) -> (i32, i32) {
    %c0_i32 = arith.constant 0 : i32
    %c0_i32_0 = arith.constant 0 : i32
    %c0_i32_1 = arith.constant 0 : i32
    return %c0_i32, %c0_i32_0 : i32, i32
  }
  func.func @transform_18(%arg0: i32) -> (i32, i32) {
    %c0_i32 = arith.constant 0 : i32
    %c0_i32_0 = arith.constant 0 : i32
    %c0_i32_1 = arith.constant 0 : i32
    return %c0_i32, %c0_i32_0 : i32, i32
  }
  func.func @transform_19(%arg0: i32) -> (i32, i32) {
    %c0_i32 = arith.constant 0 : i32
    %c0_i32_0 = arith.constant 0 : i32
    %c0_i32_1 = arith.constant 0 : i32
    return %c0_i32, %c0_i32_0 : i32, i32
  }
  func.func @transform_20(%arg0: i32) -> (i32, i32) {
    %c0_i32 = arith.constant 0 : i32
    %c0_i32_0 = arith.constant 0 : i32
    %c0_i32_1 = arith.constant 0 : i32
    return %c0_i32, %c0_i32_0 : i32, i32
  }
  func.func @transform_21(%arg0: i32) -> (i32, i32) {
    %c0_i32 = arith.constant 0 : i32
    %c0_i32_0 = arith.constant 0 : i32
    %c0_i32_1 = arith.constant 0 : i32
    return %c0_i32, %c0_i32_0 : i32, i32
  }
  func.func @transform_22(%arg0: i32) -> (i32, i32) {
    %c0_i32 = arith.constant 0 : i32
    %c0_i32_0 = arith.constant 0 : i32
    %c0_i32_1 = arith.constant 0 : i32
    return %c0_i32, %c0_i32_0 : i32, i32
  }
  func.func @transform_23(%arg0: i32) -> (i32, i32) {
    %c0_i32 = arith.constant 0 : i32
    %c0_i32_0 = arith.constant 0 : i32
    %c0_i32_1 = arith.constant 0 : i32
    return %c0_i32, %c0_i32_0 : i32, i32
  }
  func.func @transform_24(%arg0: i32) -> (i32, i32, i32) {
    %c0_i32 = arith.constant 0 : i32
    %c0_i32_0 = arith.constant 0 : i32
    %c0_i32_1 = arith.constant 0 : i32
    return %arg0, %c0_i32, %c0_i32_0 : i32, i32, i32
  }
}

</mosaic_0001>

<bundles_post_ra>
// kernel: tpu_custom_call.1
= control target key start
LH: loop header
LB: loop body
LE: loop exit
PB: predicated region body
PF: predicated region fallthrough
CT: control target
= control target key end

     0   :  { %s11164_s0 = inlined_call_operand.hbm [shape: f32[4,16,128], index: 0, kind: input, shape index: {}]   ;;  %s11165_s1 = inlined_call_operand.hbm [shape: f32[4,16,128], index: 1, kind: input, shape index: {}]   ;;  %s11166_s2 = inlined_call_operand.hbm [shape: f32[32,128], index: 2, kind: input, shape index: {}]   ;;  %s11167_s3 = inlined_call_operand.vmem [shape: f32[4,32], index: 3, kind: input, shape index: {}]   ;;  %s11168_s4 = inlined_call_operand.vmem [shape: f32[4,32], index: 4, kind: input, shape index: {}]   ;;  %s11169_s5 = inlined_call_operand.vmem [shape: f32[1,128], index: 5, kind: input, shape index: {}]   ;;  %s11170_s6 = inlined_call_operand.vmem [shape: f32[1,128], index: 6, kind: input, shape index: {}]   ;;  %s11171_s7 = inlined_call_operand.hbm [shape: f32[128,128], index: 7, kind: input, shape index: {}]   ;;  %s11172_s8 = inlined_call_operand.hbm [shape: f32[128,256], index: 8, kind: input, shape index: {}]   ;;  %s11173_s9 = inlined_call_operand.hbm [shape: f32[128,128], index: 9, kind: input, shape index: {}]   ;;  %s11174_s10 = inlined_call_operand.hbm [shape: f32[128,384], index: 10, kind: input, shape index: {}]   ;;  %s11175_s11 = inlined_call_operand.hbm [shape: f32[128,256], index: 11, kind: input, shape index: {}]   ;;  %s11176_s12 = inlined_call_operand.hbm [shape: f32[128,128], index: 12, kind: input, shape index: {}]   ;;  %s11177_s13 = inlined_call_operand.vmem [shape: f32[1,384], index: 13, kind: input, shape index: {}]   ;;  %s11178_s14 = inlined_call_operand.vmem [shape: f32[1,128], index: 14, kind: input, shape index: {}]   ;;  %s11179_s15 = inlined_call_operand.vmem [shape: f32[1,128], index: 15, kind: input, shape index: {}]   ;;  %s11180_s16 = inlined_call_operand.hbm [shape: f32[128,256], index: 16, kind: input, shape index: {}]   ;;  %s11181_s17 = inlined_call_operand.vmem [shape: f32[1,256], index: 17, kind: input, shape index: {}]   ;;  %s11182_s18 = inlined_call_operand.hbm [shape: f32[256,128], index: 18, kind: input, shape index: {}]   ;;  %s11183_s19 = inlined_call_operand.vmem [shape: f32[1,128], index: 19, kind: input, shape index: {}]   ;;  %s11184_s20 = inlined_call_operand.hbm [shape: f32[128,384], index: 20, kind: input, shape index: {}]   ;;  %s11185_s21 = inlined_call_operand.hbm [shape: f32[128,256], index: 21, kind: input, shape index: {}]   ;;  %s11186_s22 = inlined_call_operand.hbm [shape: f32[128,128], index: 22, kind: input, shape index: {}]   ;;  %s11187_s23 = inlined_call_operand.vmem [shape: f32[1,384], index: 23, kind: input, shape index: {}]   ;;  %s11188_s24 = inlined_call_operand.hbm [shape: f32[4,16,128], index: 24, kind: output, shape index: {}]  }
   0x1   :  { %11221 = sst [smem:[#allocation41_spill]] %s11164_s0 }
   0x2   :  { %11222 = sst [smem:[#allocation42_spill]] %s11165_s1 }
   0x3   :  { %11223 = sst [smem:[#allocation43_spill]] %s11166_s2 }
   0x4   :  { %11224 = sst [smem:[#allocation44_spill]] %s11167_s3 }
   0x5   :  { %11225 = sst [smem:[#allocation45_spill]] %s11168_s4 }
   0x6   :  { %11226 = sst [smem:[#allocation46_spill]] %s11169_s5 }
   0x7   :  { %11227 = sst [smem:[#allocation47_spill]] %s11170_s6 }
   0x8   :  { %11228 = sst [smem:[#allocation48_spill]] %s11171_s7 }
   0x9   :  { %11229 = sst [smem:[#allocation49_spill]] %s11172_s8 }
   0xa   :  { %11230 = sst [smem:[#allocation50_spill]] %s11173_s9 }
   0xb   :  { %11231 = sst [smem:[#allocation51_spill]] %s11174_s10 }
   0xc   :  { %11232 = sst [smem:[#allocation52_spill]] %s11175_s11 }
   0xd   :  { %11233 = sst [smem:[#allocation53_spill]] %s11176_s12 }
   0xe   :  { %11234 = sst [smem:[#allocation54_spill]] %s11177_s13 }
   0xf   :  { %11235 = sst [smem:[#allocation55_spill]] %s11178_s14 }
  0x10   :  { %11236 = sst [smem:[#allocation56_spill]] %s11179_s15 }
  0x11   :  { %11237 = sst [smem:[#allocation57_spill]] %s11180_s16 }
  0x12   :  { %11238 = sst [smem:[#allocation58_spill]] %s11181_s17 }
  0x13   :  { %11239 = sst [smem:[#allocation59_spill]] %s11182_s18 }
  0x14   :  { %11240 = sst [smem:[#allocation60_spill]] %s11183_s19 }
  0x15   :  { %11241 = sst [smem:[#allocation61_spill]] %s11187_s23 }
  0x16   :  { %11242 = sst [smem:[#allocation62_spill]] %s11188_s24 }
  0x17   :  { %29 = vsyncpa [#allocation4], 0 }
  0x18   :  { %31 = vsyncpa [#allocation4 + $0x1], 0 }
  0x19   :  { %32 = vsyncpa [#allocation7], 0 }
  0x1a   :  { %34 = vsyncpa [#allocation7 + $0x1], 0 }
  0x1b   :  { %35 = vsyncpa [#allocation10], 0 }
  0x1c   :  { %36 = vsyncpa [#allocation13], 0 }
  0x1d   :  { %37 = vsyncpa [#allocation16], 0 }
  0x1e   :  { %38 = vsyncpa [#allocation19], 0 }
  0x1f   :  { %39 = vsyncpa [#allocation22], 0 }
  0x20   :  { %40 = vsyncpa [#allocation25], 0 }
  0x21   :  { %41 = vsyncpa [#allocation5], 0 }
  0x22   :  { %43 = vsyncpa [#allocation5 + $0x1], 0  ;;  %s8980_s5 = smov 0   ;;  %s8982_s26 = smov 0  }
  0x23   :  { %s8984_s27 = smov 0   ;;  %s8986_s28 = smov 0  }
  0x24 LB: > { %s8819_s6 = smov [#allocation8]   ;;  %s9001_s29 = sadd.s32 4294967295, %s8817_s28   ;;  %s8817_s28 = sphi %s8986_s28, %s11326_s28   ;;  %s8813_s27 = sphi %s8984_s27, %s11325_s27   ;;  %s8809_s26 = sphi %s8982_s26, %s11324_s26   ;;  %s8805_s5 = sphi %s8980_s5, %s11323_s5  }
  0x25   : > { %s606_s2 = sshll.u32 %s8819_s6, 4  ;;  %11243 = sst [smem:[#allocation37_spill]] %s9001_s29  ;;  %s9006_s2 = int_to_ptr.vmem [resolvable:$true] %s606_s2 }
  0x26   : > { %p6185_p0 = scmp.ge.s32.totalorder %s8817_s28, 1  ;;  %p11200_p1 = scmp.eq.s32.totalorder %s9001_s29, 0 }
  0x27   : > { %p594_p2 = scmp.lt.s32.totalorder %s8817_s28, 3  ;;  %s8820_s7 = smov [#allocation9]  }
  0x28   : > { %s631_s30 = sshll.u32 %s8820_s7, 4  ;;  %s8821_s25 = smov [#allocation12]   ;;  %s9021_s30 = int_to_ptr.vmem [resolvable:$true] %s631_s30 }
  0x29   : > { %p9008_p3 = pnand %p6185_p0, %p594_p2  ;;  %s657_s8 = sshll.u32 %s8821_s25, 4  ;;  %s9023_s8 = int_to_ptr.vmem [resolvable:$true] %s657_s8 }
  0x2a   : > { %s11247_s6 = sld [smem:[#allocation43_spill]] }
  0x2b   : > { %s11244_s0 = scalar_select %p9008_p3, 1, 0 }
  0x2c   : > { %p7840_p5 = pneg %p9008_p3 }
  0x2d   : > { %11245 = sst [smem:[#allocation38_spill]] %s11244_s0 }
  0x2e   : > { %p9017_p6 = pnand %p7840_p5, %p11200_p1 }
  0x30   : > { %s8323_s24 = scalar_lea.hbm %s11247_s6, 512  ;;  %p9033_p8 = pneg %p9017_p6 }
  0x31   : > { %p8324_p7 = scmp.ne.s32.totalorder %s11247_s6, %s8323_s24  ;;  %p8330_p11 = scmp.lt.u32.totalorder %s8323_s24, %s11247_s6 }
  0x33   : > { %p8326_p9 = pnand %p9033_p8, %p8324_p7 }
  0x35   : > { %p8327_p10 = pneg %p8326_p9 }
  0x37   : > { %p8332_p12 = pnand %p8330_p11, %p8327_p10 }
  0x39   : > { %8335 = shalt.err (!%p8332_p12)
}
  0x3a   : > { %s8336_s19 = scalar_lea.vmem %s9006_s2, 512  ;;  %p8344_p5 = scmp.lt.s32.totalorder %s9006_s2, %s9006_s2 }
  0x3b   : > { %p8337_p13 = scmp.ne.s32.totalorder %s9006_s2, %s8336_s19  ;;  %p8345_p4 = scmp.lt.s32.totalorder %s8336_s19, %s8336_s19 }
  0x3d   : > { %p8339_p0 = pnand %p8337_p13, %p9033_p8  ;;  %p8346_p7 = por %p8345_p4, %p8344_p5 }
  0x3f   : > { %p8340_p2 = pneg %p8339_p0 }
  0x41   : > { %p8347_p9 = pnand %p8346_p7, %p8340_p2 }
  0x43   : > { %8350 = shalt.err (!%p8347_p9)
}
  0x44   : > { %s11202_s23 = smov 128   ;;  %s11204_s17 = smov 8  }
  0x45   : > { %7843 = dma.hbm_to_vmem [thread:$0]  (!%p9017_p6), %s11247_s6, 512, %s9006_s2, [#allocation7], %s11202_s23, %s11202_s23, %s11204_s17  }
  0x46   : > { %s11249_s15 = sld [smem:[#allocation48_spill]] }
  0x4c   : > { %s8351_s19 = scalar_lea.hbm %s11249_s15, 2048 }
  0x4d   : > { %p8352_p4 = scmp.ne.s32.totalorder %s11249_s15, %s8351_s19  ;;  %p8358_p12 = scmp.lt.u32.totalorder %s8351_s19, %s11249_s15 }
  0x4f   : > { %p8354_p10 = pnand %p8352_p4, %p9033_p8 }
  0x51   : > { %p8355_p11 = pneg %p8354_p10 }
  0x53   : > { %p8360_p13 = pnand %p8358_p12, %p8355_p11 }
  0x55   : > { %8363 = shalt.err (!%p8360_p13)
}
  0x56   : > { %s8364_s2 = scalar_lea.vmem %s9021_s30, 2048  ;;  %p8372_p7 = scmp.lt.s32.totalorder %s9021_s30, %s9021_s30 }
  0x57   : > { %p8365_p0 = scmp.ne.s32.totalorder %s9021_s30, %s8364_s2  ;;  %p8373_p9 = scmp.lt.s32.totalorder %s8364_s2, %s8364_s2 }
  0x59   : > { %p8367_p2 = pnand %p8365_p0, %p9033_p8  ;;  %p8374_p4 = por %p8373_p9, %p8372_p7 }
  0x5b   : > { %p8368_p5 = pneg %p8367_p2 }
  0x5d   : > { %p8375_p10 = pnand %p8374_p4, %p8368_p5 }
  0x5f   : > { %8378 = shalt.err (!%p8375_p10)
}
  0x60   : > { %7846 = dma.hbm_to_vmem [thread:$0]  (!%p9017_p6), %s11249_s15, 2048, %s9021_s30, [#allocation10], %s11202_s23, %s11202_s23, %s11204_s17  }
  0x61   : > { %s11250_s9 = sld [smem:[#allocation50_spill]] }
  0x67   : > { %s8379_s24 = scalar_lea.hbm %s11250_s9, 2048 }
  0x68   : > { %p8380_p11 = scmp.ne.s32.totalorder %s11250_s9, %s8379_s24  ;;  %p8386_p0 = scmp.lt.u32.totalorder %s8379_s24, %s11250_s9 }
  0x6a   : > { %p8382_p12 = pnand %p8380_p11, %p9033_p8 }
  0x6c   : > { %p8383_p13 = pneg %p8382_p12 }
  0x6e   : > { %p8388_p2 = pnand %p8386_p0, %p8383_p13 }
  0x70   : > { %8391 = shalt.err (!%p8388_p2)
}
  0x71   : > { %s8392_s30 = scalar_lea.vmem %s9023_s8, 2048  ;;  %p8400_p4 = scmp.lt.s32.totalorder %s9023_s8, %s9023_s8 }
  0x72   : > { %p8393_p5 = scmp.ne.s32.totalorder %s9023_s8, %s8392_s30  ;;  %p8401_p10 = scmp.lt.s32.totalorder %s8392_s30, %s8392_s30 }
  0x74   : > { %p8395_p7 = pnand %p8393_p5, %p9033_p8  ;;  %p8402_p11 = por %p8401_p10, %p8400_p4 }
  0x76   : > { %p8396_p9 = pneg %p8395_p7 }
  0x78   : > { %p8403_p12 = pnand %p8402_p11, %p8396_p9 }
  0x7a   : > { %8406 = shalt.err (!%p8403_p12)
}
  0x7b   : > { %7852 = dma.hbm_to_vmem [thread:$0]  (!%p9017_p6), %s11250_s9, 2048, %s9023_s8, [#allocation13], %s11202_s23, %s11202_s23, %s11204_s17  }
  0x7c   : > { %s8824_s14 = smov [#allocation15]   ;;  %s8825_s0 = smov [#allocation18]  }
  0x7d   : > { %s683_s29 = sshll.u32 %s8824_s14, 4  ;;  %s718_s24 = sshll.u32 %s8825_s0, 4  ;;  %s684_s29 = int_to_ptr.vmem [resolvable:$true] %s683_s29  ;;  %s719_s24 = int_to_ptr.vmem [resolvable:$true] %s718_s24 }
  0x7e   : > { %s11251_s11 = sld [smem:[#allocation52_spill]] }
  0x84   : > { %s8407_s25 = scalar_lea.hbm %s11251_s11, 4096 }
  0x85   : > { %p8408_p13 = scmp.ne.s32.totalorder %s11251_s11, %s8407_s25  ;;  %p8414_p5 = scmp.lt.u32.totalorder %s8407_s25, %s11251_s11 }
  0x87   : > { %p8410_p0 = pnand %p8408_p13, %p9033_p8 }
  0x89   : > { %p8411_p2 = pneg %p8410_p0 }
  0x8b   : > { %p8416_p7 = pnand %p8414_p5, %p8411_p2 }
  0x8d   : > { %8419 = shalt.err (!%p8416_p7)
}
  0x8e   : > { %s8420_s8 = scalar_lea.vmem %s684_s29, 4096  ;;  %p8428_p11 = scmp.lt.s32.totalorder %s684_s29, %s684_s29 }
  0x8f   : > { %p8421_p9 = scmp.ne.s32.totalorder %s684_s29, %s8420_s8  ;;  %p8429_p12 = scmp.lt.s32.totalorder %s8420_s8, %s8420_s8 }
  0x91   : > { %p8423_p4 = pnand %p8421_p9, %p9033_p8  ;;  %p8430_p1 = por %p8429_p12, %p8428_p11 }
  0x93   : > { %p8424_p10 = pneg %p8423_p4 }
  0x95   : > { %p8431_p3 = pnand %p8430_p1, %p8424_p10 }
  0x97   : > { %8434 = shalt.err (!%p8431_p3)
}
  0x98   : > { %s11206_s13 = smov 256   ;;  %s11210_s14 = smov 16  }
  0x99   : > { %7858 = dma.hbm_to_vmem [thread:$0]  (!%p9017_p6), %s11251_s11, 4096, %s684_s29, [#allocation16], %s11206_s13, %s11206_s13, %s11210_s14  }
  0x9a   : > { %s11252_s16 = sld [smem:[#allocation57_spill]] }
  0xa0   : > { %s8435_s25 = scalar_lea.hbm %s11252_s16, 4096 }
  0xa1   : > { %p8436_p1 = scmp.ne.s32.totalorder %s11252_s16, %s8435_s25  ;;  %p8442_p0 = scmp.lt.u32.totalorder %s8435_s25, %s11252_s16 }
  0xa3   : > { %p8438_p3 = pnand %p8436_p1, %p9033_p8 }
  0xa5   : > { %p8439_p13 = pneg %p8438_p3 }
  0xa7   : > { %p8444_p2 = pnand %p8442_p0, %p8439_p13 }
  0xa9   : > { %8447 = shalt.err (!%p8444_p2)
}
  0xaa   : > { %s8448_s6 = scalar_lea.vmem %s719_s24, 4096  ;;  %p8456_p4 = scmp.lt.s32.totalorder %s719_s24, %s719_s24 }
  0xab   : > { %p8449_p5 = scmp.ne.s32.totalorder %s719_s24, %s8448_s6  ;;  %p8457_p10 = scmp.lt.s32.totalorder %s8448_s6, %s8448_s6 }
  0xad   : > { %p8451_p7 = pnand %p8449_p5, %p9033_p8  ;;  %p8458_p11 = por %p8457_p10, %p8456_p4 }
  0xaf   : > { %p8452_p9 = pneg %p8451_p7 }
  0xb1   : > { %p8459_p12 = pnand %p8458_p11, %p8452_p9 }
  0xb3   : > { %8462 = shalt.err (!%p8459_p12)
}
  0xb4   : > { %7864 = dma.hbm_to_vmem [thread:$0]  (!%p9017_p6), %s11252_s16, 4096, %s719_s24, [#allocation19], %s11206_s13, %s11206_s13, %s11210_s14  }
  0xb5   : > { %s8828_s4 = smov [#allocation21]   ;;  %s8829_s25 = smov [#allocation11]  }
  0xb6   : > { %s750_s1 = sshll.u32 %s8828_s4, 4  ;;  %s644_s19 = sshll.u32 %s8829_s25, 4  ;;  %s751_s1 = int_to_ptr.vmem [resolvable:$true] %s750_s1  ;;  %s645_s19 = int_to_ptr.vmem [resolvable:$true] %s644_s19 }
  0xb7   : > { %s8463_s8 = scalar_lea.hbm %s11184_s20, 6144 }
  0xb8   : > { %p8464_p1 = scmp.ne.s32.totalorder %s11184_s20, %s8463_s8  ;;  %p8470_p0 = scmp.lt.u32.totalorder %s8463_s8, %s11184_s20 }
  0xba   : > { %p8466_p3 = pnand %p8464_p1, %p9033_p8 }
  0xbc   : > { %p8467_p13 = pneg %p8466_p3 }
  0xbe   : > { %p8472_p2 = pnand %p8470_p0, %p8467_p13 }
  0xc0   : > { %8475 = shalt.err (!%p8472_p2)
}
  0xc1   : > { %s8476_s24 = scalar_lea.vmem %s751_s1, 6144  ;;  %p8484_p4 = scmp.lt.s32.totalorder %s751_s1, %s751_s1 }
  0xc2   : > { %p8477_p5 = scmp.ne.s32.totalorder %s751_s1, %s8476_s24  ;;  %p8485_p10 = scmp.lt.s32.totalorder %s8476_s24, %s8476_s24 }
  0xc4   : > { %p8479_p7 = pnand %p8477_p5, %p9033_p8  ;;  %p8486_p11 = por %p8485_p10, %p8484_p4 }
  0xc6   : > { %p8480_p9 = pneg %p8479_p7 }
  0xc8   : > { %p8487_p12 = pnand %p8486_p11, %p8480_p9 }
  0xca   : > { %8490 = shalt.err (!%p8487_p12)
}
  0xcb   : > { %s11208_s23 = smov 384   ;;  %s11209_s0 = smov 24  }
  0xcc   : > { %7870 = dma.hbm_to_vmem [thread:$0]  (!%p9017_p6), %s11184_s20, 6144, %s751_s1, [#allocation22], %s11208_s23, %s11208_s23, %s11209_s0  }
  0xcd   : > { %s11253_s2 = sld [smem:[#allocation49_spill]] }
  0xd3   : > { %s8491_s8 = scalar_lea.hbm %s11253_s2, 4096 }
  0xd4   : > { %p8492_p1 = scmp.ne.s32.totalorder %s11253_s2, %s8491_s8  ;;  %p8498_p0 = scmp.lt.u32.totalorder %s8491_s8, %s11253_s2 }
  0xd6   : > { %p8494_p3 = pnand %p8492_p1, %p9033_p8 }
  0xd8   : > { %p8495_p13 = pneg %p8494_p3 }
  0xda   : > { %p8500_p2 = pnand %p8498_p0, %p8495_p13 }
  0xdc   : > { %8503 = shalt.err (!%p8500_p2)
}
  0xdd   : > { %s8504_s17 = scalar_lea.vmem %s645_s19, 4096  ;;  %p8512_p4 = scmp.lt.s32.totalorder %s645_s19, %s645_s19 }
  0xde   : > { %p8505_p5 = scmp.ne.s32.totalorder %s645_s19, %s8504_s17  ;;  %p8513_p10 = scmp.lt.s32.totalorder %s8504_s17, %s8504_s17 }
  0xe0   : > { %p8507_p7 = pnand %p8505_p5, %p9033_p8  ;;  %p8514_p11 = por %p8513_p10, %p8512_p4 }
  0xe2   : > { %p8508_p9 = pneg %p8507_p7 }
  0xe4   : > { %p8515_p12 = pnand %p8514_p11, %p8508_p9 }
  0xe6   : > { %8518 = shalt.err (!%p8515_p12)
}
  0xe7   : > { %s11254_s1 = smov 256   ;;  %s8832_s25 = smov [#allocation14]  }
  0xe8   : > { %7849 = dma.hbm_to_vmem [thread:$0]  (!%p9017_p6), %s11253_s2, 4096, %s645_s19, [#allocation10], %s11254_s1, %s11254_s1, %s11210_s14  }
  0xe9   : > { %s670_s30 = sshll.u32 %s8832_s25, 4  ;;  %s8833_s8 = smov [#allocation17]   ;;  %s671_s30 = int_to_ptr.vmem [resolvable:$true] %s670_s30 }
  0xea   : > { %s696_s6 = sshll.u32 %s8833_s8, 4  ;;  %s11255_s10 = sld [smem:[#allocation51_spill]]  ;;  %s697_s6 = int_to_ptr.vmem [resolvable:$true] %s696_s6 }
  0xf0   : > { %s8519_s17 = scalar_lea.hbm %s11255_s10, 6144 }
  0xf1   : > { %p8520_p1 = scmp.ne.s32.totalorder %s11255_s10, %s8519_s17  ;;  %p8526_p0 = scmp.lt.u32.totalorder %s8519_s17, %s11255_s10 }
  0xf3   : > { %p8522_p3 = pnand %p8520_p1, %p9033_p8 }
  0xf5   : > { %p8523_p13 = pneg %p8522_p3 }
  0xf7   : > { %p8528_p2 = pnand %p8526_p0, %p8523_p13 }
  0xf9   : > { %8531 = shalt.err (!%p8528_p2)
}
  0xfa   : > { %s8532_s19 = scalar_lea.vmem %s671_s30, 6144  ;;  %p8540_p4 = scmp.lt.s32.totalorder %s671_s30, %s671_s30 }
  0xfb   : > { %p8533_p5 = scmp.ne.s32.totalorder %s671_s30, %s8532_s19  ;;  %p8541_p10 = scmp.lt.s32.totalorder %s8532_s19, %s8532_s19 }
  0xfd   : > { %p8535_p7 = pnand %p8533_p5, %p9033_p8  ;;  %p8542_p11 = por %p8541_p10, %p8540_p4 }
  0xff   : > { %p8536_p9 = pneg %p8535_p7 }
 0x101   : > { %p8543_p12 = pnand %p8542_p11, %p8536_p9 }
 0x103   : > { %8546 = shalt.err (!%p8543_p12)
}
 0x104   : > { %s11256_s23 = smov 24   ;;  %s11257_s0 = smov 384  }
 0x105   : > { %7855 = dma.hbm_to_vmem [thread:$0]  (!%p9017_p6), %s11255_s10, 6144, %s671_s30, [#allocation13], %s11257_s0, %s11257_s0, %s11256_s23  }
 0x106   : > { %s11258_s12 = sld [smem:[#allocation53_spill]] }
 0x10c   : > { %s8547_s29 = scalar_lea.hbm %s11258_s12, 2048 }
 0x10d   : > { %p8548_p1 = scmp.ne.s32.totalorder %s11258_s12, %s8547_s29  ;;  %p8554_p0 = scmp.lt.u32.totalorder %s8547_s29, %s11258_s12 }
 0x10f   : > { %p8550_p3 = pnand %p8548_p1, %p9033_p8 }
 0x111   : > { %p8551_p13 = pneg %p8550_p3 }
 0x113   : > { %p8556_p2 = pnand %p8554_p0, %p8551_p13 }
 0x115   : > { %8559 = shalt.err (!%p8556_p2)
}
 0x116   : > { %s8560_s9 = scalar_lea.vmem %s697_s6, 2048  ;;  %p8568_p4 = scmp.lt.s32.totalorder %s697_s6, %s697_s6 }
 0x117   : > { %p8561_p5 = scmp.ne.s32.totalorder %s697_s6, %s8560_s9  ;;  %p8569_p10 = scmp.lt.s32.totalorder %s8560_s9, %s8560_s9 }
 0x119   : > { %p8563_p7 = pnand %p8561_p5, %p9033_p8  ;;  %p8570_p11 = por %p8569_p10, %p8568_p4 }
 0x11b   : > { %p8564_p9 = pneg %p8563_p7 }
 0x11d   : > { %p8571_p12 = pnand %p8570_p11, %p8564_p9 }
 0x11f   : > { %8574 = shalt.err (!%p8571_p12)
}
 0x120   : > { %s11259_s30 = smov 8   ;;  %s11260_s23 = smov 128  }
 0x121   : > { %7861 = dma.hbm_to_vmem [thread:$0]  (!%p9017_p6), %s11258_s12, 2048, %s697_s6, [#allocation16], %s11260_s23, %s11260_s23, %s11259_s30  }
 0x122   : > { %s8834_s25 = smov [#allocation20]   ;;  %s8835_s29 = smov [#allocation23]  }
 0x123   : > { %s734_s8 = sshll.u32 %s8834_s25, 4  ;;  %s763_s24 = sshll.u32 %s8835_s29, 4  ;;  %s735_s8 = int_to_ptr.vmem [resolvable:$true] %s734_s8  ;;  %s764_s24 = int_to_ptr.vmem [resolvable:$true] %s763_s24 }
 0x124   : > { %s11261_s18 = sld [smem:[#allocation59_spill]] }
 0x12a   : > { %s8575_s19 = scalar_lea.hbm %s11261_s18, 4096 }
 0x12b   : > { %p8576_p1 = scmp.ne.s32.totalorder %s11261_s18, %s8575_s19  ;;  %p8582_p0 = scmp.lt.u32.totalorder %s8575_s19, %s11261_s18 }
 0x12d   : > { %p8578_p3 = pnand %p8576_p1, %p9033_p8 }
 0x12f   : > { %p8579_p13 = pneg %p8578_p3 }
 0x131   : > { %p8584_p2 = pnand %p8582_p0, %p8579_p13 }
 0x133   : > { %8587 = shalt.err (!%p8584_p2)
}
 0x134   : > { %s8588_s6 = scalar_lea.vmem %s735_s8, 4096  ;;  %p8596_p4 = scmp.lt.s32.totalorder %s735_s8, %s735_s8 }
 0x135   : > { %p8589_p5 = scmp.ne.s32.totalorder %s735_s8, %s8588_s6  ;;  %p8597_p10 = scmp.lt.s32.totalorder %s8588_s6, %s8588_s6 }
 0x137   : > { %p8591_p7 = pnand %p8589_p5, %p9033_p8  ;;  %p8598_p11 = por %p8597_p10, %p8596_p4 }
 0x139   : > { %p8592_p9 = pneg %p8591_p7 }
 0x13b   : > { %p8599_p12 = pnand %p8598_p11, %p8592_p9 }
 0x13d   : > { %8602 = shalt.err (!%p8599_p12)
}
 0x13e   : > { %7867 = dma.hbm_to_vmem [thread:$0]  (!%p9017_p6), %s11261_s18, 4096, %s735_s8, [#allocation19], %s11260_s23, %s11260_s23, %s11259_s30  }
 0x13f   : > { %s8603_s29 = scalar_lea.hbm %s11185_s21, 4096 }
 0x140   : > { %p8604_p1 = scmp.ne.s32.totalorder %s11185_s21, %s8603_s29  ;;  %p8610_p0 = scmp.lt.u32.totalorder %s8603_s29, %s11185_s21 }
 0x142   : > { %p8606_p3 = pnand %p8604_p1, %p9033_p8 }
 0x144   : > { %p8607_p13 = pneg %p8606_p3 }
 0x146   : > { %p8612_p2 = pnand %p8610_p0, %p8607_p13 }
 0x148   : > { %8615 = shalt.err (!%p8612_p2)
}
 0x149   : > { %s8616_s0 = scalar_lea.vmem %s764_s24, 4096  ;;  %p8624_p4 = scmp.lt.s32.totalorder %s764_s24, %s764_s24 }
 0x14a   : > { %p8617_p5 = scmp.ne.s32.totalorder %s764_s24, %s8616_s0  ;;  %p8625_p10 = scmp.lt.s32.totalorder %s8616_s0, %s8616_s0 }
 0x14c   : > { %p8619_p7 = pnand %p8617_p5, %p9033_p8  ;;  %p8626_p11 = por %p8625_p10, %p8624_p4 }
 0x14e   : > { %p8620_p9 = pneg %p8619_p7 }
 0x150   : > { %p8627_p12 = pnand %p8626_p11, %p8620_p9 }
 0x152   : > { %8630 = shalt.err (!%p8627_p12)
}
 0x153   : > { %s11262_s8 = smov 16   ;;  %s8836_s2 = smov [#allocation24]  }
 0x154   : > { %7873 = dma.hbm_to_vmem [thread:$0]  (!%p9017_p6), %s11185_s21, 4096, %s764_s24, [#allocation22], %s11254_s1, %s11254_s1, %s11262_s8  }
 0x155   : > { %s776_s4 = sshll.u32 %s8836_s2, 4  ;;  %s8631_s17 = scalar_lea.hbm %s11186_s22, 2048  ;;  %s777_s4 = int_to_ptr.vmem [resolvable:$true] %s776_s4 }
 0x156   : > { %p8632_p1 = scmp.ne.s32.totalorder %s11186_s22, %s8631_s17  ;;  %p8638_p0 = scmp.lt.u32.totalorder %s8631_s17, %s11186_s22 }
 0x158   : > { %p8634_p3 = pnand %p8632_p1, %p9033_p8 }
 0x15a   : > { %p8635_p13 = pneg %p8634_p3 }
 0x15c   : > { %p8640_p2 = pnand %p8638_p0, %p8635_p13 }
 0x15e   : > { %8643 = shalt.err (!%p8640_p2)
}
 0x15f   : > { %s8644_s1 = scalar_lea.vmem %s777_s4, 2048  ;;  %p8652_p4 = scmp.lt.s32.totalorder %s777_s4, %s777_s4 }
 0x160   : > { %p8645_p5 = scmp.ne.s32.totalorder %s777_s4, %s8644_s1  ;;  %p8653_p10 = scmp.lt.s32.totalorder %s8644_s1, %s8644_s1 }
 0x162   : > { %p8647_p7 = pnand %p8645_p5, %p9033_p8  ;;  %p8654_p11 = por %p8653_p10, %p8652_p4 }
 0x164   : > { %p8648_p9 = pneg %p8647_p7 }
 0x166   : > { %p8655_p12 = pnand %p8654_p11, %p8648_p9 }
 0x168   : > { %8658 = shalt.err (!%p8655_p12)
}
 0x169   : > { %s11263_s7 = sld [smem:[#allocation37_spill]]  ;;  %s6184_s3 = sadd.s32 4294967294, %s8817_s28  }
 0x16a   : > { %7876 = dma.hbm_to_vmem [thread:$0]  (!%p9017_p6), %s11186_s22, 2048, %s777_s4, [#allocation25], %s11260_s23, %s11260_s23, %s11259_s30  }
 0x16b   : > { %s9300_s6 = sadd.s32 1, %s8817_s28   ;;  %s56_s2 = sadd.s32 1, %s8813_s27 }
 0x16c   : > { %s53_s14 = ssub.s32 %s8817_s28, %s9300_s6  ;;  %p63_p1 = scmp.ne.s32.totalorder %s8813_s27, %s8809_s26 }
 0x16d   : > { %p54_p8 = scmp.eq.s32.totalorder %s53_s14, 0  ;;  %p64_p3 = scmp.eq.s32.totalorder %s8817_s28, 0 }
 0x16e   : > { %p69_p13 = scmp.ne.s32.totalorder %s8809_s26, %s8805_s5  ;;  %p587_p7 = scmp.eq.s32.totalorder %s6184_s3, 1 }
 0x16f   : > { %s9311_s25 = scalar_select %p54_p8, %s8813_s27, %s56_s2  }
 0x170   : > { %p9313_p0 = por %p64_p3, %p63_p1  ;;  %p11265_p2 = scmp.eq.s32.totalorder %s11263_s7, 0 }
 0x171   : > { %p581_p5 = scmp.eq.s32.totalorder %s11263_s7, 1  ;;  %p7900_p9 = scmp.lt.s32.totalorder %s8817_s28, 2 }
 0x172   : > { %p9319_p6 = por %p11265_p2, %p69_p13  ;;  %s793_s17 = sand.u32 1, %s8813_s27  }
 0x173   : > { %p9326_p4 = por %p581_p5, %p63_p1  ;;  %p9330_p10 = por %p587_p7, %p69_p13 }
 0x174   : > { %s6199_s9 = sshll.u32 %s793_s17, 5  ;;  %s6357_s0 = sshll.u32 %s8817_s28, 9 }
 0x175   : > { %s11267_s13 = scalar_select %p9326_p4, 1, 0 }
 0x176   : > { %s11268_s19 = scalar_select %p9330_p10, 1, 0 }
 0x177   : > { %s11269_s8 = sld [smem:[#allocation41_spill]]  ;;  %s797_s7 = scalar_lea.vmem [#allocation3], %s6199_s9 }
 0x178   : > { %s805_s3 = sshll.u32 %s797_s7, 4  ;;  %p9344_p11 = pnand %p7900_p9, %p9313_p0  ;;  %s9340_s3 = int_to_ptr.vmem [resolvable:$true] %s805_s3 }
 0x179   : > { %s11271_s12 = sld [smem:[#allocation42_spill]]  ;;  %s819_s24 = scalar_lea.vmem [#allocation6], %s6199_s9 }
 0x17a   : > { %s9353_s15 = sshll.u32 %s819_s24, 4  ;;  %s9355_s16 = scalar_lea.sflag [#allocation4], %s793_s17  ;;  %s9387_s15 = int_to_ptr.vmem [resolvable:$true] %s9353_s15 }
 0x17b   : > { %p8661_p8 = pneg %p9344_p11 }
 0x17d   : > { %s9338_s14 = scalar_lea.hbm %s11269_s8, %s6357_s0  ;;  %s8664_s10 = scalar_lea.hbm %s11269_s8, 1024 }
 0x17e   : > { %s8659_s7 = scalar_lea.hbm %s9338_s14, 512  ;;  %p8665_p13 = scmp.lt.u32.totalorder %s9338_s14, %s11269_s8 }
 0x17f   : > { %s9351_s1 = scalar_lea.hbm %s11271_s12, %s6357_s0  ;;  %p8660_p12 = scmp.ne.s32.totalorder %s9338_s14, %s8659_s7 }
 0x180   : > { %p8666_p0 = scmp.lt.u32.totalorder %s8664_s10, %s8659_s7  ;;  %p8668_p5 = scmp.lt.u32.totalorder %s8659_s7, %s9338_s14 }
 0x181   : > { %p8662_p1 = pnand %p8661_p8, %p8660_p12 }
 0x182   : > { %p8667_p2 = por %p8666_p0, %p8665_p13 }
 0x183   : > { %p8663_p3 = pneg %p8662_p1 }
 0x184   : > { %p8669_p7 = por %p8668_p5, %p8667_p2 }
 0x186   : > { %p8670_p9 = pnand %p8669_p7, %p8663_p3 }
 0x188   : > { %8673 = shalt.err (!%p8670_p9)
}
 0x189   : > { %s8674_s17 = scalar_lea.vmem %s9340_s3, 512  ;;  %s8837_s18 = smov [#allocation3]  }
 0x18a   : > { %p8675_p12 = scmp.ne.s32.totalorder %s9340_s3, %s8674_s17  ;;  %s8679_s9 = sshll.u32 %s8837_s18, 4  ;;  %s8680_s9 = int_to_ptr.vmem [resolvable:$false] %s8679_s9 }
 0x18b   : > { %s8681_s24 = scalar_lea.vmem %s8680_s9, 1024  ;;  %p8682_p4 = scmp.lt.s32.totalorder %s9340_s3, %s8680_s9 }
 0x18c   : > { %p8677_p1 = pnand %p8675_p12, %p8661_p8  ;;  %p8683_p13 = scmp.lt.s32.totalorder %s8681_s24, %s8674_s17 }
 0x18e   : > { %p8678_p10 = pneg %p8677_p1  ;;  %p8684_p0 = por %p8683_p13, %p8682_p4 }
 0x190   : > { %p8685_p2 = pnand %p8684_p0, %p8678_p10 }
 0x192   : > { %8688 = shalt.err (!%p8685_p2)
}
 0x193   : > { %7880 = dma.hbm_to_vmem [thread:$0]  (!%p9344_p11), %s9338_s14, 512, %s9340_s3, %s9355_s16, %s11260_s23, %s11260_s23, %s11259_s30  }
 0x194   : > { %s815_s7 = sand.u32 1, %s8817_s28   ;;  %s8689_s10 = scalar_lea.hbm %s9351_s1, 512 }
 0x195   : > { %s9390_s29 = scalar_lea.sflag [#allocation7], %s815_s7  ;;  %p8690_p4 = scmp.ne.s32.totalorder %s9351_s1, %s8689_s10 }
 0x196   : > { %s8694_s17 = scalar_lea.hbm %s11271_s12, 1024  ;;  %p8695_p5 = scmp.lt.u32.totalorder %s9351_s1, %s11271_s12 }
 0x197   : > { %p8692_p10 = pnand %p8690_p4, %p8661_p8  ;;  %p8696_p7 = scmp.lt.u32.totalorder %s8694_s17, %s8689_s10 }
 0x198   : > { %p8698_p12 = scmp.lt.u32.totalorder %s8689_s10, %s9351_s1 }
 0x199   : > { %p8693_p3 = pneg %p8692_p10  ;;  %p8697_p9 = por %p8696_p7, %p8695_p5 }
 0x19b   : > { %p8699_p1 = por %p8698_p12, %p8697_p9 }
 0x19d   : > { %p8700_p13 = pnand %p8699_p1, %p8693_p3 }
 0x19f   : > { %8703 = shalt.err (!%p8700_p13)
}
 0x1a0   : > { %s8704_s16 = scalar_lea.vmem %s9387_s15, 512  ;;  %s8838_s14 = smov [#allocation6]  }
 0x1a1   : > { %p8705_p0 = scmp.ne.s32.totalorder %s9387_s15, %s8704_s16  ;;  %s8709_s3 = sshll.u32 %s8838_s14, 4  ;;  %s8710_s3 = int_to_ptr.vmem [resolvable:$false] %s8709_s3 }
 0x1a2   : > { %s8711_s24 = scalar_lea.vmem %s8710_s3, 1024  ;;  %p8712_p10 = scmp.lt.s32.totalorder %s9387_s15, %s8710_s3 }
 0x1a3   : > { %p8707_p2 = pnand %p8705_p0, %p8661_p8  ;;  %p8713_p5 = scmp.lt.s32.totalorder %s8711_s24, %s8704_s16 }
 0x1a5   : > { %p8708_p4 = pneg %p8707_p2  ;;  %p8714_p7 = por %p8713_p5, %p8712_p10 }
 0x1a7   : > { %p8715_p9 = pnand %p8714_p7, %p8708_p4 }
 0x1a9   : > { %8718 = shalt.err (!%p8715_p9)
}
 0x1aa   : > { %7883 = dma.hbm_to_vmem [thread:$0]  (!%p9344_p11), %s9351_s1, 512, %s9387_s15, %s9390_s29, %s11260_s23, %s11260_s23, %s11259_s30  }
 0x1ab   : > { %s11272_s7 = sld [smem:[#allocation38_spill]] }
 0x1b1   : > { %p11273_p8 = scmp.ne.s32.totalorder %s11272_s7, 0 }
 0x1b3   : > { %839 = sbr.rel (%p11273_p8) target bundleno = 4651 (0x122b), region = 116 }
 0x1ba   : > { %s9422_s10 = sand.u32 1, %s8809_s26  }
 0x1bb   : > { %s9425_s11 = sshll.u32 %s9422_s10, 5  ;;  %s842_s2 = scalar_lea.sflag [#allocation4], %s9422_s10 }
 0x1bc   : > { %s9429_s0 = scalar_lea.vmem [#allocation3], %s9425_s11 }
 0x1bd   : > { %8764 = dma.done.wait (%p9319_p6), %s842_s2, 512  }
 0x1be   : > { %8766 = vsyncadd (%p9319_p6), %s842_s2, 4294966784  ;;  %s11274_s15 = sld [smem:[#allocation37_spill]]  ;;  %s9437_s1 = scalar_lea.vmem [#allocation6], %s9425_s11 }
 0x1c4   : > { %s850_s30 = sand.u32 1, %s11274_s15  }
 0x1c5   : > { %s851_s23 = scalar_lea.sflag [#allocation7], %s850_s30 }
 0x1c6   : > { %8768 = dma.done.wait (%p9319_p6), %s851_s23, 512  }
 0x1c7   : > { %8770 = vsyncadd (%p9319_p6), %s851_s23, 4294966784  ;;  %p11275_p11 = scmp.eq.s32.totalorder %s11274_s15, 0 }
 0x1c9   : > { %8772 = dma.done.wait (%p11275_p11), [#allocation7], 512   ;;  %p11276_p3 = pmov %p11275_p11 }
 0x1cb   : > { %8774 = vsyncadd (%p11276_p3), [#allocation7], 4294966784  ;;  %p11277_p12 = pmov %p11276_p3 }
 0x1cc   : > { %p11278_p1 = pmov %p11276_p3 }
 0x1cd   : > { %8776 = dma.done.wait (%p11277_p12), [#allocation10], 6144  }
 0x1ce   : > { %8778 = vsyncadd (%p11278_p1), [#allocation10], 4294961152  ;;  %p11279_p13 = pmov %p11278_p1 }
 0x1cf   : > { %p11280_p0 = pmov %p11278_p1 }
 0x1d0   : > { %8780 = dma.done.wait (%p11279_p13), [#allocation13], 8192  }
 0x1d1   : > { %8782 = vsyncadd (%p11280_p0), [#allocation13], 4294959104  ;;  %p11281_p6 = pmov %p11280_p0 }
 0x1d2   : > { %p11282_p2 = pmov %p11280_p0 }
 0x1d3   : > { %8784 = dma.done.wait (%p11281_p6), [#allocation16], 6144  }
 0x1d4   : > { %8786 = vsyncadd (%p11282_p2), [#allocation16], 4294961152  ;;  %p11283_p4 = pmov %p11280_p0 }
 0x1d5   : > { %p11284_p10 = pmov %p11280_p0 }
 0x1d6   : > { %8788 = dma.done.wait (%p11283_p4), [#allocation19], 8192  }
 0x1d7   : > { %8790 = vsyncadd (%p11284_p10), [#allocation19], 4294959104  ;;  %p11285_p5 = pmov %p11280_p0 }
 0x1d8   : > { %p11286_p7 = pmov %p11280_p0 }
 0x1d9   : > { %8792 = dma.done.wait (%p11285_p5), [#allocation22], 10240  }
 0x1da   : > { %8794 = vsyncadd (%p11286_p7), [#allocation22], 4294957056  ;;  %p11287_p9 = pmov %p11280_p0 }
 0x1db   : > { %p11288_p8 = pmov %p11280_p0 }
 0x1dc   : > { %8796 = dma.done.wait (%p11287_p9), [#allocation25], 2048  }
 0x1dd   : > { %8798 = vsyncadd (%p11288_p8), [#allocation25], 4294965248  ;;  %v975_v0 = vld [vmem:[%s9429_s0] sm:$0xff]  ;;  %v977_v1 = vld [vmem:[%s9429_s0 + $0x10] sm:$0xff]  ;;  %vm1644_vm0 = vcmask 261120   ;;  %s8840_s4 = smov 96  }
 0x1de   : > { %981 = vadd.xlane.f32.xlu0 %v975_v0  ;;  %985 = vadd.xlane.f32.xlu1 %v977_v1  ;;  %v9474_v2 = vld [vmem:[%s9429_s0 + $0x8] sm:$0xff]  ;;  %v9477_v3 = vld [vmem:[%s9429_s0 + $0x18] sm:$0xff]  ;;  %v1167_v6 = vld [vmem:[#allocation11] sm:$0xff]  ;;  %s8841_s29 = smov 32   ;;  %s8842_s17 = smov 64   ;;  %vm2184_vm2 = vcmask 252928  }
 0x1df   : > { %v1168_v4 = vld [vmem:[#allocation11 + $0x8] sm:$0xff]  ;;  %v1170_v5 = vld [vmem:[#allocation11 + $0x18] sm:$0xff]  ;;  %v1169_v8 = vld [vmem:[#allocation11 + $0x10] sm:$0xff]  ;;  %s11291_s16 = sld [smem:[#allocation46_spill]]  ;;  %s11292_s24 = sld [smem:[#allocation47_spill]]  ;;  %vm2337_vm6 = vcmask 244736  }
 0x1e0   : > { %v7146_v7 = vpack.c.bf16 %v1170_v5, %v1168_v4  ;;  %v1172_v9 = vld [vmem:[#allocation11 + $0x28] sm:$0xff]  ;;  %v1174_v10 = vld [vmem:[#allocation11 + $0x38] sm:$0xff]  ;;  %v7148_v11 = vpack.c.bf16 %v1169_v8, %v1167_v6  ;;  %v1171_v13 = vld [vmem:[#allocation11 + $0x20] sm:$0xff]  ;;  %s11294_s30 = sld [smem:[#allocation45_spill]]  ;;  %s11296_s18 = sld [smem:[#allocation44_spill]]  ;;  %vm2492_vm8 = vcmask 228352  }
 0x1e1   : > { %v7150_v12 = vpack.c.bf16 %v1174_v10, %v1172_v9  ;;  %v1173_v14 = vld [vmem:[#allocation11 + $0x30] sm:$0xff]  ;;  %v1176_v15 = vld [vmem:[#allocation11 + $0x48] sm:$0xff]  ;;  %v1178_v16 = vld [vmem:[#allocation11 + $0x58] sm:$0xff]  ;;  %s8844_s9 = smov 127   ;;  %s8846_s14 = smov 126   ;;  %vm2647_vm11 = vcmask 195584  }
 0x1e2   : > { %983 = vadd.xlane.f32.xlu0 %v9474_v2  ;;  %987 = vadd.xlane.f32.xlu1 %v9477_v3  ;;  %v7152_v17 = vpack.c.bf16 %v1173_v14, %v1171_v13  ;;  %v1066_v18 = vld [vmem:[#allocation9] sm:$0xff]  ;;  %v1067_v19 = vld [vmem:[#allocation9 + $0x8] sm:$0xff]  ;;  %v7154_v20 = vpack.c.bf16 %v1178_v16, %v1176_v15  ;;  %v1177_v22 = vld [vmem:[#allocation11 + $0x50] sm:$0xff]  ;;  %s8847_s3 = smov 30   ;;  %s8849_s7 = smov 28   ;;  %vm2706_vm14 = vcmask 1046528  }
 0x1e3   : > { %7147 = vmatprep.subr.bf16.mxu1 %v7146_v7  ;;  %v1175_v21 = vld [vmem:[#allocation11 + $0x40] sm:$0xff]  ;;  %v7114_v23 = vpack.c.bf16 %v1067_v19, %v1066_v18  ;;  %v1180_v24 = vld [vmem:[#allocation11 + $0x68] sm:$0xff]  ;;  %v1182_v25 = vld [vmem:[#allocation11 + $0x78] sm:$0xff]  ;;  %s8850_s2 = smov 120   ;;  %s6361_s23 = sshll.u32 %s11274_s15, 9 }
 0x1e4   : > { %7149 = vmatpush1.bf16.msra.mxu1 %v7148_v11  ;;  %v1068_v26 = vld [vmem:[#allocation9 + $0x10] sm:$0xff]  ;;  %v1069_v27 = vld [vmem:[#allocation9 + $0x18] sm:$0xff]  ;;  %v7156_v29 = vpack.c.bf16 %v1177_v22, %v1175_v21  ;;  %v7158_v30 = vpack.c.bf16 %v1182_v25, %v1180_v24  ;;  %v1179_v31 = vld [vmem:[#allocation11 + $0x60] sm:$0xff]  ;;  %v11214_v25 = vmov 0.0   ;;  %s5960_s15 = scalar_lea.sflag [#allocation5], %s9422_s10  ;;  %p11320_p3 = scmp.ne.s32.totalorder %s11267_s13, 0 }
 0x1e5   : > { %7151 = vmatprep.subr.bf16.mxu1 %v7150_v12  ;;  %7115 = vmatprep.subr.bf16.mxu0 %v7114_v23  ;;  %v7118_v28 = vpack.c.bf16 %v1069_v27, %v1068_v26  ;;  %v1181_v32 = vld [vmem:[#allocation11 + $0x70] sm:$0xff]  ;;  %v1184_v33 = vld [vmem:[#allocation11 + $0x88] sm:$0xff]  ;;  %v1186_v34 = vld [vmem:[#allocation11 + $0x98] sm:$0xff] }
 0x1e6   : > { %7117 = vmatpush3.bf16.msra.mxu0 %v7114_v23  ;;  %v7160_v35 = vpack.c.bf16 %v1181_v32, %v1179_v31  ;;  %v7162_v36 = vpack.c.bf16 %v1186_v34, %v1184_v33  ;;  %v1183_v37 = vld [vmem:[#allocation11 + $0x80] sm:$0xff]  ;;  %v1185_v38 = vld [vmem:[#allocation11 + $0x90] sm:$0xff]  ;;  %v1071_v57 = vld [vmem:[#allocation9 + $0x28] sm:$0xff]  ;;  %1263 = vmatprep.mubr.f32.mxu1 %v11214_v25 }
 0x1e7   : > { %7119 = vmatprep.subr.bf16.mxu0 %v7118_v28  ;;  %v7164_v39 = vpack.c.bf16 %v1185_v38, %v1183_v37  ;;  %v1070_v56 = vld [vmem:[#allocation9 + $0x20] sm:$0xff]  ;;  %v1188_v58 = vld [vmem:[#allocation11 + $0xa8] sm:$0xff]  ;;  %v1190_v60 = vld [vmem:[#allocation11 + $0xb8] sm:$0xff] }
 0x1e8   : > { %7153 = vmatpush1.bf16.msra.mxu1 %v7152_v17  ;;  %v7122_v59 = vpack.c.bf16 %v1071_v57, %v1070_v56  ;;  %v1187_v61 = vld [vmem:[#allocation11 + $0xa0] sm:$0xff]  ;;  %v1189_v62 = vld [vmem:[#allocation11 + $0xb0] sm:$0xff]  ;;  %v7166_v63 = vpack.c.bf16 %v1190_v60, %v1188_v58  ;;  %v1194_v5 = vld [vmem:[#allocation11 + $0xd8] sm:$0xff] }
 0x1e9   : > { %7155 = vmatprep.subr.bf16.mxu1 %v7154_v20  ;;  %v1191_v6 = vld [vmem:[#allocation11 + $0xc0] sm:$0xff]  ;;  %v1193_v7 = vld [vmem:[#allocation11 + $0xd0] sm:$0xff]  ;;  %v1075_v11 = vld [vmem:[#allocation9 + $0x48] sm:$0xff] }
 0x1ea   : > { %7121 = vmatpush3.bf16.msra.mxu0 %v7118_v28  ;;  %v7172_v9 = vpack.c.bf16 %v1193_v7, %v1191_v6  ;;  %v1074_v10 = vld [vmem:[#allocation9 + $0x40] sm:$0xff]  ;;  %v1196_v12 = vld [vmem:[#allocation11 + $0xe8] sm:$0xff]  ;;  %v1198_v14 = vld [vmem:[#allocation11 + $0xf8] sm:$0xff] }
 0x1eb   : > { %7123 = vmatprep.subr.bf16.mxu0 %v7122_v59  ;;  %v7130_v13 = vpack.c.bf16 %v1075_v11, %v1074_v10  ;;  %v1195_v15 = vld [vmem:[#allocation11 + $0xe0] sm:$0xff]  ;;  %v1197_v16 = vld [vmem:[#allocation11 + $0xf0] sm:$0xff]  ;;  %v7174_v17 = vpack.c.bf16 %v1198_v14, %v1196_v12  ;;  %v1077_v20 = vld [vmem:[#allocation9 + $0x58] sm:$0xff] }
 0x1ec   : > { %7157 = vmatpush1.bf16.msra.mxu1 %v7156_v29  ;;  %v7176_v18 = vpack.c.bf16 %v1197_v16, %v1195_v15  ;;  %v1076_v19 = vld [vmem:[#allocation9 + $0x50] sm:$0xff]  ;;  %v1046_v22 = vld [vmem:[%s9437_s1] sm:$0xff]  ;;  %v1079_v24 = vld [vmem:[#allocation9 + $0x68] sm:$0xff] }
 0x1ed   : > { %7159 = vmatprep.subr.bf16.mxu1 %v7158_v30  ;;  %v7134_v21 = vpack.c.bf16 %v1077_v20, %v1076_v19  ;;  %v1078_v23 = vld [vmem:[#allocation9 + $0x60] sm:$0xff]  ;;  %v1080_v27 = vld [vmem:[#allocation9 + $0x70] sm:$0xff]  ;;  %v1081_v28 = vld [vmem:[#allocation9 + $0x78] sm:$0xff] }
 0x1ee   : > { %7125 = vmatpush3.bf16.msra.mxu0 %v7122_v59  ;;  %v7138_v26 = vpack.c.bf16 %v1079_v24, %v1078_v23  ;;  %v1047_v29 = vld [vmem:[%s9437_s1 + $0x8] sm:$0xff]  ;;  %v7142_v30 = vpack.c.bf16 %v1081_v28, %v1080_v27  ;;  %v1312_v31 = vld [vmem:[#allocation8] sm:$0xff]  ;;  %v9504_v33 = vld [vmem:[#allocation8 + $0x10] sm:$0xff] }
 0x1ef   : > { %v1313_v32 = vld [vmem:[#allocation8 + $0x8] sm:$0xff]  ;;  %vm9508_vm1 = vmpackc.low %vm1644_vm0, %vm1644_vm0  ;;  %v9512_v37 = vld [vmem:[#allocation8 + $0x18] sm:$0xff] }
 0x1f0   : > { %7161 = vmatpush1.bf16.msra.mxu1 %v7160_v35  ;;  %v7979_v34 = vpack.i.bf16 %v1313_v32, %v1312_v31  ;;  %v7178_v35 = vpack.c.bf16 %v1313_v32, %v1312_v31  ;;  %v9516_v38 = vpack.i.bf16 %v9512_v37, %v9504_v33  ;;  %v6223_v56 = vld [vmem:[%s11291_s16] ss:$0 sm:$0xff]  ;;  %v1049_v7 = vld [vmem:[%s9437_s1 + $0x18] sm:$0xff]  ;;  %v8843_v32 = vmov 1966171168   ;;  %s8845_s16 = smov 31  }
 0x1f1   : > { %7163 = vmatprep.subr.bf16.mxu1 %v7162_v36  ;;  %v6224_v58 = vld [vmem:[%s11292_s24] ss:$0 sm:$0xff]  ;;  %s8848_s24 = smov 124  }
 0x1f4   : > { %7165 = vmatpush1.bf16.msra.mxu1 %v7164_v39 }
 0x1f5   : > { %7167 = vmatprep.subr.bf16.mxu1 %v7166_v63 }
 0x26b   : > { %v982_v40 = vpop.xlane.xlu0 %981  ;;  %v986_v41 = vpop.xlane.xlu1 %985 }
 0x26c   : > { %v990_v42 = vmul.f32 0.0078125, %v982_v40  ;;  %v992_v43 = vmul.f32 0.0078125, %v986_v41 }
 0x26e   : > { %v9481_v44 = vsub.f32 %v975_v0, %v990_v42  ;;  %v9483_v45 = vsub.f32 %v977_v1, %v992_v43  ;;  %v7168_v0 = vpack.c.bf16 %v1189_v62, %v1187_v61  ;;  %v1072_v1 = vld [vmem:[#allocation9 + $0x30] sm:$0xff] }
 0x26f   : > { %v984_v46 = vpop.xlane.xlu0 %983  ;;  %v988_v47 = vpop.xlane.xlu1 %987 }
 0x270   : > { %v991_v48 = vmul.f32 0.0078125, %v984_v46  ;;  %v998_v49 = vmul.f32 %v9481_v44, %v9481_v44  ;;  %v993_v50 = vmul.f32 0.0078125, %v988_v47  ;;  %v1000_v51 = vmul.f32 %v9483_v45, %v9483_v45  ;;  %7169 = vmatpush1.bf16.msra.mxu1 %v7168_v0 }
 0x272   : > { %1002 = vadd.xlane.f32.xlu0 %v998_v49  ;;  %v9490_v52 = vsub.f32 %v9474_v2, %v991_v48  ;;  %v9493_v53 = vsub.f32 %v9477_v3, %v993_v50  ;;  %v1073_v2 = vld [vmem:[#allocation9 + $0x38] sm:$0xff]  ;;  %v1192_v3 = vld [vmem:[#allocation11 + $0xc8] sm:$0xff] }
 0x273   : > { %v7126_v4 = vpack.c.bf16 %v1073_v2, %v1072_v1  ;;  %v7170_v8 = vpack.c.bf16 %v1194_v5, %v1192_v3 }
 0x274   : > { %v999_v54 = vmul.f32 %v9490_v52, %v9490_v52  ;;  %v1001_v55 = vmul.f32 %v9493_v53, %v9493_v53 }
 0x275   : > { %7127 = vmatprep.subr.bf16.mxu0 %v7126_v4  ;;  %7171 = vmatprep.subr.bf16.mxu1 %v7170_v8 }
 0x276   : > { %1006 = vadd.xlane.f32.xlu0 %v1000_v51  ;;  %1004 = vadd.xlane.f32.xlu1 %v999_v54 }
 0x277   : > { %7129 = vmatpush3.bf16.msra.mxu0 %v7126_v4  ;;  %7173 = vmatpush1.bf16.msra.mxu1 %v7172_v9 }
 0x278   : > { %7131 = vmatprep.subr.bf16.mxu0 %v7130_v13  ;;  %7175 = vmatprep.subr.bf16.mxu1 %v7174_v17 }
 0x27a   : > { %1008 = vadd.xlane.f32.xlu1 %v1001_v55 }
 0x27b   : > { %7133 = vmatpush3.bf16.msra.mxu0 %v7130_v13  ;;  %7177 = vmatpush1.bf16.msra.mxu1 %v7176_v18  ;;  %v7184_v13 = vpack.c.bf16 %v9512_v37, %v9504_v33  ;;  %v1531_v33 = vunpack.c.l.s4 %v8843_v32 }
 0x27c   : > { %7135 = vmatprep.subr.bf16.mxu0 %v7134_v21  ;;  %7180 = vmatprep.subr.msk.bf16.mxu1 %vm9508_vm1, %v7178_v35 }
 0x27e   : > { %1264 = vmatmul.mubr.f32.vlgmr.msra.gmra.mrb[0].mxu1 %v1046_v22 }
 0x27f   : > { %7137 = vmatpush3.bf16.msra.mxu0 %v7134_v21  ;;  %1269 = vmatprep.mubr.f32.mxu1 %v11214_v25 }
 0x280   : > { %7139 = vmatprep.subr.bf16.mxu0 %v7138_v26 }
 0x282   : > { %1270 = vmatmul.mubr.f32.gmra.mrb[2].mxu1 %v1047_v29 }
 0x283   : > { %7141 = vmatpush3.bf16.msra.mxu0 %v7138_v26  ;;  %1275 = vmatprep.mubr.f32.mxu1 %v11214_v25 }
 0x284   : > { %7143 = vmatprep.subr.bf16.mxu0 %v7142_v30  ;;  %7183 = vmatpush3.bf16.xpose.msk.msra.mxu1 %vm9508_vm1, %v7178_v35  ;;  %v1532_v35 = vunpack.c.0.s8 %v1531_v33 }
 0x285   : > { %7186 = vmatprep.subr.msk.bf16.mxu1 %vm9508_vm1, %v7184_v13 }
 0x287   : > { %7145 = vmatpush3.bf16.msra.mxu0 %v7142_v30 }
 0x28b   : > { %7985 = vrot.lane.b32.xlu1 %v9516_v38, %s8840_s4 }
 0x28c   : > { %7980 = vrot.lane.b32.xlu0 %v7979_v34, %s8840_s4  ;;  %7189 = vmatpush3.bf16.xpose.msk.msra.mxu1 %vm9508_vm1, %v7184_v13 }
 0x28f   : > { %7990 = vrot.lane.b32.xlu1 %v7979_v34, %s8842_s17 }
 0x290   : > { %7995 = vrot.lane.b32.xlu0 %v7979_v34, %s8841_s29  ;;  %v11216_v34 = vlaneseq }
 0x292   : > { %v9582_v37 = vshrl.u32 %v11216_v34, 7 }
 0x294   : > { %8000 = vrot.lane.b32.xlu0 %v9516_v38, %s8842_s17  ;;  %11293 = vst [vmem:[#allocation39_spill] sm:$0xff] %v9582_v37 }
 0x298   : > { %8005 = vrot.lane.b32.xlu0 %v9516_v38, %s8841_s29  ;;  %v9585_v38 = vsub.s32 %v1532_v35, %v9582_v37 }
 0x2ff   : > { %v1003_v39 = vpop.xlane.xlu0 %1002 }
 0x300   : > { %v1010_v40 = vmul.f32 0.0078125, %v1003_v39  ;;  %v9590_v39 = vld.sshfl [vmem:[%s11294_s30] sm:$0x33 pattern:$0x75316420]  ;;  %s8851_s30 = smov 24  }
 0x302   : > { %v1014_v41 = vadd.f32 1e-05, %v1010_v40  ;;  %v9594_v40 = vrot.slane %v9590_v39, %v9585_v38 }
 0x303   : > { %v1005_v42 = vpop.xlane.xlu1 %1004  ;;  %v1007_v43 = vpop.xlane.xlu0 %1006 }
 0x304   : > { %8159 = vrsqrt.f32 %v1014_v41  ;;  %v1011_v46 = vmul.f32 0.0078125, %v1005_v42  ;;  %v1012_v47 = vmul.f32 0.0078125, %v1007_v43  ;;  %v9597_v41 = vsub.s32 0, %v9582_v37 }
 0x305   : > { %v1570_v33 = vcombine.high %v9594_v40, %v9594_v40 }
 0x306   : > { %v1015_v48 = vadd.f32 1e-05, %v1011_v46  ;;  %v1016_v49 = vadd.f32 1e-05, %v1012_v47  ;;  %11295 = vst [vmem:[#allocation40_spill] sm:$0xff] %v9597_v41 }
 0x307   : > { %v1009_v50 = vpop.xlane.xlu1 %1008  ;;  %v7981_v15 = vpop.permute.xlu0 %7980 }
 0x308   : > { %8161 = vrsqrt.f32 %v1015_v48  ;;  %v1013_v51 = vmul.f32 0.0078125, %v1009_v50  ;;  %v7983_v17 = vunpack.i.h.bf16 %v7981_v15  ;;  %v7982_v18 = vunpack.i.l.bf16 %v7981_v15 }
 0x309   : > { %8163 = vrsqrt.f32 %v1016_v49  ;;  %v1611_v49 = vrot.slane %v9594_v40, %v9597_v41 }
 0x30a   : > { %v1017_v54 = vadd.f32 1e-05, %v1013_v51  ;;  %v7190_v21 = vpack.c.bf16 %v7983_v17, %v7982_v18 }
 0x30b   : > { %v7986_v16 = vpop.permute.xlu1 %7985  ;;  %v7996_v27 = vpop.permute.xlu0 %7995 }
 0x30c   : > { %8165 = vrsqrt.f32 %v1017_v54  ;;  %v7988_v19 = vunpack.i.h.bf16 %v7986_v16  ;;  %v7987_v20 = vunpack.i.l.bf16 %v7986_v16  ;;  %7192 = vmatprep.subr.msk.bf16.mxu0 %vm9508_vm1, %v7190_v21  ;;  %v7998_v28 = vunpack.i.h.bf16 %v7996_v27 }
 0x30d   : > { %v7997_v29 = vunpack.i.l.bf16 %v7996_v27 }
 0x30e   : > { %v8160_v55 = vpop.eup %8159  ;;  %v7196_v22 = vpack.c.bf16 %v7988_v19, %v7987_v20  ;;  %v1555_v20 = vcombine.high %v9590_v39, %v9590_v39 }
 0x30f   : > { %v1022_v57 = vmul.f32 %v8160_v55, %v9481_v44  ;;  %v7991_v23 = vpop.permute.xlu1 %7990  ;;  %v9574_v31 = vpack.c.bf16 %v7998_v28, %v7997_v29  ;;  %v8001_v43 = vpop.permute.xlu0 %8000 }
 0x310   : > { %v7993_v24 = vunpack.i.h.bf16 %v7991_v23  ;;  %v7992_v26 = vunpack.i.l.bf16 %v7991_v23  ;;  %v8003_v47 = vunpack.i.h.bf16 %v8001_v43  ;;  %v8002_v48 = vunpack.i.l.bf16 %v8001_v43 }
 0x311   : > { %v1032_v59 = vmul.f32 %v6223_v56, %v1022_v57 }
 0x312   : > { %v8162_v60 = vpop.eup %8161  ;;  %v7202_v30 = vpack.c.bf16 %v7993_v24, %v7992_v26 }
 0x313   : > { %v8164_v61 = vpop.eup %8163  ;;  %v1042_v62 = vadd.f32 %v6224_v58, %v1032_v59  ;;  %v1023_v63 = vmul.f32 %v8162_v60, %v9490_v52  ;;  %v1048_v52 = vld [vmem:[%s9437_s1 + $0x10] sm:$0xff]  ;;  %s11314_s1 = sld [smem:[#allocation55_spill]] }
 0x314   : > { %v1024_v0 = vmul.f32 %v8164_v61, %v9483_v45  ;;  %7204 = vmatprep.subr.msk.bf16.mxu1 %vm9508_vm1, %v7202_v30 }
 0x315   : > { %6686 = vmatprep.mubr.f32.mxu0 %v1042_v62  ;;  %1276 = vmatmul.mubr.f32.gmra.mrb[4].mxu1 %v1042_v62  ;;  %v1033_v1 = vmul.f32 %v6223_v56, %v1023_v63 }
 0x316   : > { %v8166_v2 = vpop.eup %8165  ;;  %1281 = vmatprep.mubr.f32.mxu1 %v11214_v25  ;;  %v1034_v44 = vmul.f32 %v6223_v56, %v1024_v0 }
 0x317   : > { %v1043_v3 = vadd.f32 %v6224_v58, %v1033_v1  ;;  %v1025_v4 = vmul.f32 %v8166_v2, %v9493_v53 }
 0x318   : > { %v1044_v5 = vadd.f32 %v6224_v58, %v1034_v44 }
 0x319   : > { %6687 = vmatmul.mubr.f32.vlgmr.msra.gmra.mrb[0].mxu0 %v1043_v3  ;;  %1282 = vmatmul.mubr.f32.gmra.mrb[6].mxu1 %v1043_v3  ;;  %v1035_v6 = vmul.f32 %v6223_v56, %v1025_v4 }
 0x31a   : > { %6689 = vmatprep.mubr.f32.mxu0 %v1044_v5  ;;  %1287 = vmatprep.mubr.f32.mxu1 %v11214_v25 }
 0x31b   : > { %v1045_v45 = vadd.f32 %v6224_v58, %v1035_v6  ;;  %7195 = vmatpush3.bf16.xpose.msk.msra.mxu0 %vm9508_vm1, %v7190_v21  ;;  %v7208_v58 = vpack.c.bf16 %v8003_v47, %v8002_v48  ;;  %v1569_v21 = vrot.slane %v1555_v20, %v9585_v38 }
 0x31c   : > { %7198 = vmatprep.subr.msk.bf16.mxu0 %vm9508_vm1, %v7196_v22 }
 0x31d   : > { %6690 = vmatmul.mubr.f32.gmra.mrb[2].mxu0 %v1045_v45  ;;  %1288 = vmatmul.mubr.f32.gmra.mrb[8].mxu1 %v1048_v52  ;;  %v1615_v24 = vrot.slane %v1569_v21, %v9597_v41  ;;  %v1571_v43 = vcombine.high %v1569_v21, %v1569_v21 }
 0x31e   : > { %1293 = vmatprep.mubr.f32.mxu1 %v11214_v25 }
 0x321   : > { %1294 = vmatmul.mubr.f32.gmra.mrb[10].mxu1 %v1049_v7 }
 0x322   : > { %1299 = vmatprep.mubr.f32.mxu1 %v11214_v25 }
 0x323   : > { %7201 = vmatpush3.bf16.xpose.msk.msra.mxu0 %vm9508_vm1, %v7196_v22  ;;  %v8006_v22 = vpop.permute.xlu0 %8005 }
 0x324   : > { %7216 = vmatprep.subr.msk.bf16.mxu0 %vm9508_vm1, %v9574_v31  ;;  %v8008_v26 = vunpack.i.h.bf16 %v8006_v22  ;;  %v8007_v27 = vunpack.i.l.bf16 %v8006_v22 }
 0x325   : > { %1300 = vmatmul.mubr.f32.gmra.mrb[12].mxu1 %v1044_v5 }
 0x326   : > { %1305 = vmatprep.mubr.f32.mxu1 %v11214_v25  ;;  %v2763_v25 = vadd.s32 16, %v9582_v37 }
 0x329   : > { %1306 = vmatmul.mubr.f32.gmra.mrb[14].mxu1 %v1045_v45 }
 0x351   : > { %v1265_v53 = vpop.f32.mrb[0].mxu1 }
 0x352   : > { %v9544_v8 = vpop.f32.mrb[1].mxu1 }
 0x355   : > { %v1271_v9 = vpop.f32.mrb[2].mxu1 }
 0x356   : > { %v9546_v10 = vpack.c.bf16 %v1271_v9, %v1265_v53  ;;  %v9548_v11 = vpop.f32.mrb[3].mxu1  ;;  %v9564_v14 = vpack.i.bf16 %v1271_v9, %v1265_v53 }
 0x357   : > { %v9552_v12 = vpack.i.bf16 %v9548_v11, %v9544_v8 }
 0x3e8   : > { %v1277_v42 = vpop.f32.mrb[4].mxu1 }
 0x3e9   : > { %v1279_v46 = vpop.f32.mrb[5].mxu1 }
 0x3ec   : > { %v9601_v50 = vpop.f32.mrb[0].mxu0  ;;  %v1283_v51 = vpop.f32.mrb[6].mxu1 }
 0x3ed   : > { %v9603_v54 = vpack.c.bf16 %v1283_v51, %v1277_v42  ;;  %v1285_v55 = vpop.f32.mrb[7].mxu1  ;;  %1322 = vrot.lane.b32.xlu1 %v9601_v50, %s8840_s4  ;;  %v9607_v56 = vpop.f32.mrb[1].mxu0  ;;  %v8024_v57 = vpack.i.bf16 %v1283_v51, %v1277_v42  ;;  %v1629_v61 = vadd.f32 %v9601_v50, %v1611_v49  ;;  %v1619_v42 = vrot.slane %v1570_v33, %v9597_v41  ;;  %v6225_v51 = vld.sshfl [vmem:[%s11296_s18] sm:$0x33 pattern:$0x75316420] }
 0x3ee   : > { %v9609_v59 = vpack.i.bf16 %v1285_v55, %v1279_v46  ;;  %v1628_v60 = vadd.f32 %v1611_v49, %v9607_v56  ;;  %v9613_v62 = vpack.c.bf16 %v1285_v55, %v1279_v46 }
 0x3f0   : > { %v9615_v63 = vpop.f32.mrb[2].mxu0  ;;  %6700 = vmatprep.mubr.msk.f32.mxu1 %vm1644_vm0, %v1628_v60  ;;  %v1289_v0 = vpop.f32.mrb[8].mxu1  ;;  %v9747_v60 = vrot.slane %v6225_v51, %v9585_v38 }
 0x3f1   : > { %1320 = vrot.lane.b32.xlu1 %v9607_v56, %s8840_s4  ;;  %v9620_v1 = vpop.f32.mrb[3].mxu0  ;;  %6701 = vmatmul.mubr.msk.f32.vlgmr.msra.gmra.mrb[16].mxu1 %vm1644_vm0, %v1629_v61  ;;  %v1291_v2 = vpop.f32.mrb[9].mxu1  ;;  %v1631_v3 = vadd.f32 %v9615_v63, %v1611_v49 }
 0x3f2   : > { %1324 = vrot.lane.b32.xlu0 %v9620_v1, %s8840_s4  ;;  %v1630_v44 = vadd.f32 %v1611_v49, %v9620_v1  ;;  %7207 = vmatpush3.bf16.xpose.msk.msra.mxu1 %vm9508_vm1, %v7202_v30  ;;  %v7220_v30 = vpack.c.bf16 %v8008_v26, %v8007_v27 }
 0x3f3   : > { %7210 = vmatprep.subr.msk.bf16.mxu1 %vm9508_vm1, %v7208_v58 }
 0x3f4   : > { %6703 = vmatprep.mubr.msk.f32.mxu1 %vm1644_vm0, %v1630_v44  ;;  %v1295_v4 = vpop.f32.mrb[10].mxu1 }
 0x3f5   : > { %1334 = vrot.lane.b32.xlu1 %v9601_v50, %s8842_s17  ;;  %6704 = vmatmul.mubr.msk.f32.gmra.mrb[18].mxu1 %vm1644_vm0, %v1631_v3  ;;  %v9635_v5 = vpack.c.bf16 %v1295_v4, %v1289_v0  ;;  %v1297_v6 = vpop.f32.mrb[11].mxu1  ;;  %v8059_v52 = vpack.i.bf16 %v1295_v4, %v1289_v0  ;;  %v1529_v0 = vcombine.high %v6225_v51, %v6225_v51 }
 0x3f6   : > { %1344 = vrot.lane.b32.xlu0 %v9607_v56, %s8841_s29  ;;  %v9639_v45 = vpack.i.bf16 %v1297_v6, %v1291_v2  ;;  %v9693_v19 = vpack.c.bf16 %v1297_v6, %v1291_v2  ;;  %v1575_v3 = vrot.slane %v9747_v60, %v9597_v41 }
 0x3f8   : > { %v1301_v7 = vpop.f32.mrb[12].mxu1  ;;  %v1594_v20 = vadd.f32 %v1575_v3, %v9620_v1 }
 0x3f9   : > { %1332 = vrot.lane.b32.xlu1 %v9607_v56, %s8842_s17  ;;  %v1303_v53 = vpop.f32.mrb[13].mxu1 }
 0x3fa   : > { %1336 = vrot.lane.b32.xlu0 %v9620_v1, %s8842_s17  ;;  %7213 = vmatpush3.bf16.xpose.msk.msra.mxu1 %vm9508_vm1, %v7208_v58 }
 0x3fb   : > { %7228 = vmatprep.subr.msk.bf16.mxu1 %vm9508_vm1, %v9546_v10 }
 0x3fc   : > { %v1307_v9 = vpop.f32.mrb[14].mxu1 }
 0x3fd   : > { %v9650_v13 = vpack.c.bf16 %v1307_v9, %v1301_v7  ;;  %v1309_v15 = vpop.f32.mrb[15].mxu1  ;;  %1326 = vrot.lane.b32.xlu1 %v9615_v63, %s8840_s4  ;;  %v8074_v16 = vpack.i.bf16 %v1307_v9, %v1301_v7  ;;  %v9769_v9 = vrot.slane %v1529_v0, %v9585_v38 }
 0x3fe   : > { %v9654_v17 = vpack.i.bf16 %v1309_v15, %v1303_v53  ;;  %1348 = vrot.lane.b32.xlu0 %v9620_v1, %s8841_s29  ;;  %v9658_v18 = vpack.c.bf16 %v1309_v15, %v1303_v53 }
 0x401   : > { %1346 = vrot.lane.b32.xlu1 %v9601_v50, %s8841_s29 }
 0x402   : > { %8010 = vrot.lane.b32.xlu0 %v9564_v14, %s8840_s4 }
 0x405   : > { %1338 = vrot.lane.b32.xlu1 %v9615_v63, %s8842_s17 }
 0x406   : > { %8020 = vrot.lane.b32.xlu0 %v9564_v14, %s8842_s17 }
 0x409   : > { %1350 = vrot.lane.b32.xlu1 %v9615_v63, %s8841_s29 }
 0x40a   : > { %8025 = vrot.lane.b32.xlu0 %v8024_v57, %s8842_s17 }
 0x40d   : > { %8015 = vrot.lane.b32.xlu1 %v8024_v57, %s8840_s4 }
 0x40e   : > { %8030 = vrot.lane.b32.xlu0 %v9564_v14, %s8841_s29  ;;  %v9691_v14 = vpack.c.bf16 %v9548_v11, %v9544_v8 }
 0x411   : > { %8045 = vrot.lane.b32.xlu1 %v9609_v59, %s8840_s4 }
 0x412   : > { %8035 = vrot.lane.b32.xlu0 %v8024_v57, %s8841_s29 }
 0x415   : > { %8055 = vrot.lane.b32.xlu1 %v9609_v59, %s8842_s17 }
 0x416   : > { %8040 = vrot.lane.b32.xlu0 %v9552_v12, %s8840_s4 }
 0x419   : > { %8060 = vrot.lane.b32.xlu1 %v8059_v52, %s8840_s4 }
 0x41a   : > { %8050 = vrot.lane.b32.xlu0 %v9552_v12, %s8842_s17 }
 0x41d   : > { %8065 = vrot.lane.b32.xlu1 %v8059_v52, %s8842_s17 }
 0x41e   : > { %8070 = vrot.lane.b32.xlu0 %v8059_v52, %s8841_s29 }
 0x421   : > { %8075 = vrot.lane.b32.xlu1 %v8074_v16, %s8840_s4 }
 0x425   : > { %8080 = vrot.lane.b32.xlu1 %v8074_v16, %s8842_s17 }
 0x429   : > { %8085 = vrot.lane.b32.xlu1 %v8074_v16, %s8841_s29  ;;  %v1592_v16 = vadd.f32 %v1575_v3, %v9607_v56  ;;  %v1593_v56 = vadd.f32 %v9601_v50, %v1575_v3 }
 0x45f   : > { %v9698_v23 = vpop.permute.xlu1 %1322 }
 0x460   : > { %v1633_v11 = vadd.f32 %v1615_v24, %v9698_v23 }
 0x463   : > { %v9701_v28 = vpop.permute.xlu1 %1320 }
 0x464   : > { %v1632_v29 = vadd.f32 %v1615_v24, %v9701_v28  ;;  %v9704_v8 = vpop.permute.xlu0 %1324 }
 0x465   : > { %v1634_v32 = vadd.f32 %v1615_v24, %v9704_v8 }
 0x466   : > { %6714 = vmatprep.mubr.msk.f32.mxu0 %vm1644_vm0, %v1632_v29 }
 0x467   : > { %v9711_v35 = vpop.permute.xlu1 %1334  ;;  %6715 = vmatmul.mubr.msk.f32.vlgmr.msra.gmra.mrb[4].mxu0 %vm1644_vm0, %v1633_v11 }
 0x468   : > { %7219 = vmatpush3.bf16.xpose.msk.msra.mxu0 %vm9508_vm1, %v9574_v31  ;;  %v9717_v39 = vpop.permute.xlu0 %1344  ;;  %6717 = vmatprep.mubr.msk.f32.mxu0 %vm1644_vm0, %v1634_v32  ;;  %v1637_v48 = vadd.f32 %v1619_v42, %v9711_v35  ;;  %v1623_v31 = vrot.slane %v1571_v43, %v9597_v41  ;;  %v1595_v32 = vadd.f32 %v9615_v63, %v1575_v3 }
 0x469   : > { %7222 = vmatprep.subr.msk.bf16.mxu0 %vm9508_vm1, %v7220_v30  ;;  %v1544_v43 = vcombine.high %v9747_v60, %v9747_v60 }
 0x46a   : > { %v1640_v61 = vadd.f32 %v1623_v31, %v9717_v39 }
 0x46b   : > { %v9723_v40 = vpop.permute.xlu1 %1332 }
 0x46c   : > { %v1636_v46 = vadd.f32 %v1619_v42, %v9723_v40  ;;  %v9726_v47 = vpop.permute.xlu0 %1336 }
 0x46d   : > { %v1638_v49 = vadd.f32 %v1619_v42, %v9726_v47 }
 0x46e   : > { %6728 = vmatprep.mubr.msk.f32.mxu1 %vm1644_vm0, %v1636_v46 }
 0x46f   : > { %v9735_v55 = vpop.permute.xlu1 %1326  ;;  %6729 = vmatmul.mubr.msk.f32.vlgmr.msra.gmra.mrb[20].mxu1 %vm1644_vm0, %v1637_v48 }
 0x470   : > { %v1635_v57 = vadd.f32 %v1615_v24, %v9735_v55  ;;  %7225 = vmatpush3.bf16.xpose.msk.msra.mxu0 %vm9508_vm1, %v7220_v30  ;;  %7231 = vmatpush3.bf16.xpose.msk.msra.mxu1 %vm9508_vm1, %v9546_v10  ;;  %v9744_v58 = vpop.permute.xlu0 %1348 }
 0x471   : > { %6731 = vmatprep.mubr.msk.f32.mxu1 %vm1644_vm0, %v1638_v49  ;;  %7234 = vmatprep.subr.msk.bf16.mxu1 %vm9508_vm1, %v9603_v54  ;;  %v1642_v52 = vadd.f32 %v1623_v31, %v9744_v58 }
 0x472   : > { %6718 = vmatmul.mubr.msk.f32.gmra.mrb[6].mxu0 %vm1644_vm0, %v1635_v57  ;;  %7240 = vmatprep.subr.msk.bf16.mxu0 %vm9508_vm1, %v9635_v5 }
 0x473   : > { %v9758_v10 = vpop.permute.xlu1 %1346  ;;  %6742 = vmatprep.mubr.msk.f32.mxu0 %vm1644_vm0, %v1640_v61 }
 0x474   : > { %v1641_v2 = vadd.f32 %v1623_v31, %v9758_v10  ;;  %v8011_v44 = vpop.permute.xlu0 %8010 }
 0x475   : > { %v8013_v4 = vunpack.i.h.bf16 %v8011_v44  ;;  %v8012_v6 = vunpack.i.l.bf16 %v8011_v44 }
 0x477   : > { %v7250_v7 = vpack.c.bf16 %v8013_v4, %v8012_v6  ;;  %6743 = vmatmul.mubr.msk.f32.vlgmr.msra.gmra.mrb[8].mxu0 %vm1644_vm0, %v1641_v2  ;;  %v9766_v53 = vpop.permute.xlu1 %1338 }
 0x478   : > { %v1639_v15 = vadd.f32 %v1619_v42, %v9766_v53  ;;  %6745 = vmatprep.mubr.msk.f32.mxu0 %vm1644_vm0, %v1642_v52  ;;  %7237 = vmatpush3.bf16.xpose.msk.msra.mxu1 %vm9508_vm1, %v9603_v54  ;;  %v9791_v54 = vrot.slane %v9769_v9, %v9597_v41  ;;  %v8021_v22 = vpop.permute.xlu0 %8020 }
 0x479   : > { %7243 = vmatpush3.bf16.xpose.msk.msra.mxu0 %vm9508_vm1, %v9635_v5  ;;  %7252 = vmatprep.subr.msk.bf16.mxu1 %vm9508_vm1, %v7250_v7  ;;  %v8023_v50 = vunpack.i.h.bf16 %v8021_v22  ;;  %v8022_v1 = vunpack.i.l.bf16 %v8021_v22 }
 0x47a   : > { %7246 = vmatprep.subr.msk.bf16.mxu0 %vm9508_vm1, %v9650_v13  ;;  %6732 = vmatmul.mubr.msk.f32.gmra.mrb[22].mxu1 %vm1644_vm0, %v1639_v15  ;;  %v1596_v21 = vadd.f32 %v9791_v54, %v9701_v28  ;;  %v1598_v33 = vadd.f32 %v9791_v54, %v9704_v8  ;;  %v9825_v8 = vrot.slane %v1544_v43, %v9597_v41 }
 0x47b   : > { %v9786_v38 = vpop.permute.xlu1 %1350  ;;  %6756 = vmatprep.mubr.msk.f32.mxu1 %vm1644_vm0, %v1592_v16  ;;  %v7274_v30 = vpack.c.bf16 %v8023_v50, %v8022_v1  ;;  %v1597_v51 = vadd.f32 %v9791_v54, %v9698_v23  ;;  %v1545_v16 = vcombine.high %v9769_v9, %v9769_v9 }
 0x47c   : > { %v1643_v5 = vadd.f32 %v1623_v31, %v9786_v38  ;;  %v8026_v11 = vpop.permute.xlu0 %8025  ;;  %v1600_v57 = vadd.f32 %v9825_v8, %v9723_v40 }
 0x47d   : > { %v8028_v63 = vunpack.i.h.bf16 %v8026_v11  ;;  %v8027_v46 = vunpack.i.l.bf16 %v8026_v11 }
 0x47e   : > { %6746 = vmatmul.mubr.msk.f32.gmra.mrb[10].mxu0 %vm1644_vm0, %v1643_v5 }
 0x47f   : > { %6757 = vmatmul.mubr.msk.f32.vlgmr.msra.gmra.mrb[24].mxu1 %vm1644_vm0, %v1593_v56  ;;  %v8016_v24 = vpop.permute.xlu1 %8015  ;;  %6767 = vmatprep.mubr.msk.f32.mxu0 %vm1644_vm0, %v1594_v20  ;;  %v7280_v61 = vpack.c.bf16 %v8028_v63, %v8027_v46  ;;  %v1587_v20 = vrot.slane %v1545_v16, %v9597_v41  ;;  %v1603_v63 = vadd.f32 %v9825_v8, %v9766_v53 }
 0x480   : > { %v8018_v26 = vunpack.i.h.bf16 %v8016_v24  ;;  %v8017_v27 = vunpack.i.l.bf16 %v8016_v24  ;;  %7255 = vmatpush3.bf16.xpose.msk.msra.mxu1 %vm9508_vm1, %v7250_v7  ;;  %6778 = vmatprep.mubr.msk.f32.mxu1 %vm1644_vm0, %v1596_v21 }
 0x481   : > { %7249 = vmatpush3.bf16.xpose.msk.msra.mxu0 %vm9508_vm1, %v9650_v13  ;;  %v8031_v13 = vpop.permute.xlu0 %8030  ;;  %v1604_v1 = vadd.f32 %v1587_v20, %v9717_v39  ;;  %v1606_v46 = vadd.f32 %v1587_v20, %v9744_v58 }
 0x482   : > { %v7256_v28 = vpack.c.bf16 %v8018_v26, %v8017_v27  ;;  %v8033_v44 = vunpack.i.h.bf16 %v8031_v13  ;;  %v8032_v3 = vunpack.i.l.bf16 %v8031_v13  ;;  %v1601_v26 = vadd.f32 %v9825_v8, %v9711_v35 }
 0x483   : > { %v9807_v29 = vpop.permute.xlu1 %8045 }
 0x484   : > { %7258 = vmatprep.subr.msk.bf16.mxu1 %vm9508_vm1, %v7256_v28  ;;  %v7298_v15 = vpack.c.bf16 %v8033_v44, %v8032_v3  ;;  %v8048_v58 = vunpack.i.h.bf16 %v9807_v29  ;;  %v8047_v53 = vunpack.i.l.bf16 %v9807_v29  ;;  %v9929_v44 = vsub.s32 15, %v9582_v37 }
 0x485   : > { %v8036_v2 = vpop.permute.xlu0 %8035 }
 0x486   : > { %v8038_v24 = vunpack.i.h.bf16 %v8036_v2  ;;  %v8037_v9 = vunpack.i.l.bf16 %v8036_v2 }
 0x487   : > { %v9814_v42 = vpop.permute.xlu1 %8055 }
 0x488   : > { %6768 = vmatmul.mubr.msk.f32.vlgmr.msra.gmra.mrb[12].mxu0 %vm1644_vm0, %v1595_v32  ;;  %7261 = vmatpush3.bf16.xpose.msk.msra.mxu1 %vm9508_vm1, %v7256_v28  ;;  %v1599_v28 = vadd.f32 %v9791_v54, %v9735_v55  ;;  %v7304_v11 = vpack.c.bf16 %v8038_v24, %v8037_v9 }
 0x489   : > { %6789 = vmatprep.mubr.msk.f32.mxu0 %vm1644_vm0, %v1598_v33  ;;  %7276 = vmatprep.subr.msk.bf16.mxu1 %vm9508_vm1, %v7274_v30  ;;  %v8041_v7 = vpop.permute.xlu0 %8040  ;;  %v1605_v33 = vadd.f32 %v1587_v20, %v9758_v10 }
 0x48a   : > { %v8043_v10 = vunpack.i.h.bf16 %v8041_v7 }
 0x48b   : > { %v8061_v48 = vpop.permute.xlu1 %8060 }
 0x48c   : > { %v8063_v31 = vunpack.i.h.bf16 %v8061_v48  ;;  %v8062_v49 = vunpack.i.l.bf16 %v8061_v48 }
 0x48d   : > { %v8051_v22 = vpop.permute.xlu0 %8050 }
 0x48e   : > { %v7262_v60 = vpack.c.bf16 %v8063_v31, %v8062_v49  ;;  %v8042_v31 = vunpack.i.l.bf16 %v8041_v7  ;;  %v8053_v49 = vunpack.i.h.bf16 %v8051_v22 }
 0x48f   : > { %6779 = vmatmul.mubr.msk.f32.vlgmr.msra.gmra.mrb[26].mxu1 %vm1644_vm0, %v1597_v51  ;;  %v8066_v0 = vpop.permute.xlu1 %8065  ;;  %v8052_v51 = vunpack.i.l.bf16 %v8051_v22 }
 0x490   : > { %7279 = vmatpush3.bf16.xpose.msk.msra.mxu1 %vm9508_vm1, %v7274_v30  ;;  %6800 = vmatprep.mubr.msk.f32.mxu1 %vm1644_vm0, %v1600_v57  ;;  %v8068_v23 = vunpack.i.h.bf16 %v8066_v0  ;;  %v8067_v40 = vunpack.i.l.bf16 %v8066_v0  ;;  %v1602_v30 = vadd.f32 %v9825_v8, %v9726_v47  ;;  %v1607_v8 = vadd.f32 %v1587_v20, %v9786_v38 }
 0x491   : > { %7264 = vmatprep.subr.msk.bf16.mxu0 %vm9508_vm1, %v7262_v60  ;;  %7282 = vmatprep.subr.msk.bf16.mxu1 %vm9508_vm1, %v7280_v61  ;;  %v8071_v32 = vpop.permute.xlu0 %8070  ;;  %v7342_v57 = vpack.c.bf16 %v8048_v58, %v8047_v53 }
 0x492   : > { %7267 = vmatpush3.bf16.xpose.msk.msra.mxu0 %vm9508_vm1, %v7262_v60  ;;  %v7286_v56 = vpack.c.bf16 %v8068_v23, %v8067_v40  ;;  %v8073_v39 = vunpack.i.h.bf16 %v8071_v32  ;;  %v8072_v47 = vunpack.i.l.bf16 %v8071_v32  ;;  %v9938_v40 = vadd.s32 8, %v9582_v37 }
 0x493   : > { %v8076_v4 = vpop.permute.xlu1 %8075 }
 0x494   : > { %v8078_v6 = vunpack.i.h.bf16 %v8076_v4  ;;  %v8077_v52 = vunpack.i.l.bf16 %v8076_v4  ;;  %v7310_v55 = vpack.c.bf16 %v8073_v39, %v8072_v47  ;;  %v2201_v4 = vand.u32 1, %v9929_v44 }
 0x495   : > { %v9950_v16 = vsub.s32 15, %v9938_v40 }
 0x496   : > { %v7268_v5 = vpack.c.bf16 %v8078_v6, %v8077_v52  ;;  %vm9955_vm3 = vcmp.eq.s32.totalorder %v2201_v4, 1 }
 0x497   : > { %v8081_v21 = vpop.permute.xlu1 %8080  ;;  %v2202_v24 = vand.u32 1, %v9950_v16 }
 0x498   : > { %7285 = vmatpush3.bf16.xpose.msk.msra.mxu1 %vm9508_vm1, %v7280_v61  ;;  %7270 = vmatprep.subr.msk.bf16.mxu0 %vm9508_vm1, %v7268_v5  ;;  %v8083_v27 = vunpack.i.h.bf16 %v8081_v21  ;;  %v8082_v50 = vunpack.i.l.bf16 %v8081_v21 }
 0x499   : > { %7300 = vmatprep.subr.msk.bf16.mxu1 %vm9508_vm1, %v7298_v15  ;;  %vm9979_vm4 = vcmp.eq.s32.totalorder %v2202_v24, 1 }
 0x49a   : > { %7273 = vmatpush3.bf16.xpose.msk.msra.mxu0 %vm9508_vm1, %v7268_v5  ;;  %v7292_v35 = vpack.c.bf16 %v8083_v27, %v8082_v50 }
 0x49b   : > { %7288 = vmatprep.subr.msk.bf16.mxu0 %vm9508_vm1, %v7286_v56  ;;  %v8086_v54 = vpop.permute.xlu1 %8085 }
 0x49c   : > { %v8088_v43 = vunpack.i.h.bf16 %v8086_v54  ;;  %v8087_v13 = vunpack.i.l.bf16 %v8086_v54 }
 0x49e   : > { %v7316_v48 = vpack.c.bf16 %v8088_v43, %v8087_v13 }
 0x49f   : > { %6801 = vmatmul.mubr.msk.f32.vlgmr.msra.gmra.mrb[28].mxu1 %vm1644_vm0, %v1601_v26 }
 0x4a0   : > { %7303 = vmatpush3.bf16.xpose.msk.msra.mxu1 %vm9508_vm1, %v7298_v15  ;;  %6822 = vmatprep.mubr.msk.f32.mxu1 %vm1644_vm0, %v1604_v1 }
 0x4a1   : > { %6790 = vmatmul.mubr.msk.f32.vlgmr.msra.gmra.mrb[14].mxu0 %vm1644_vm0, %v1599_v28  ;;  %7306 = vmatprep.subr.msk.bf16.mxu1 %vm9508_vm1, %v7304_v11 }
 0x4a2   : > { %7291 = vmatpush3.bf16.xpose.msk.msra.mxu0 %vm9508_vm1, %v7286_v56  ;;  %6811 = vmatprep.mubr.msk.f32.mxu0 %vm1644_vm0, %v1602_v30 }
 0x4a3   : > { %7294 = vmatprep.subr.msk.bf16.mxu0 %vm9508_vm1, %v7292_v35 }
 0x4a8   : > { %7309 = vmatpush3.bf16.xpose.msk.msra.mxu1 %vm9508_vm1, %v7304_v11 }
 0x4a9   : > { %7323 = vmatprep.subr.bf16.mxu1 %v9691_v14 }
 0x4aa   : > { %7297 = vmatpush3.bf16.xpose.msk.msra.mxu0 %vm9508_vm1, %v7292_v35 }
 0x4ab   : > { %7312 = vmatprep.subr.msk.bf16.mxu0 %vm9508_vm1, %v7310_v55 }
 0x4af   : > { %6823 = vmatmul.mubr.msk.f32.vlgmr.msra.gmra.mrb[30].mxu1 %vm1644_vm0, %v1605_v33 }
 0x4b0   : > { %7325 = vmatpush3.bf16.msra.mxu1 %v9691_v14  ;;  %v7338_v14 = vpack.c.bf16 %v8043_v10, %v8042_v31 }
 0x4b1   : > { %6812 = vmatmul.mubr.msk.f32.vlgmr.msra.gmra.mrb[16].mxu0 %vm1644_vm0, %v1603_v63  ;;  %7327 = vmatprep.subr.bf16.mxu1 %v9613_v62 }
 0x4b2   : > { %7315 = vmatpush3.bf16.xpose.msk.msra.mxu0 %vm9508_vm1, %v7310_v55  ;;  %6833 = vmatprep.mubr.msk.f32.mxu0 %vm1644_vm0, %v1606_v46 }
 0x4b3   : > { %7318 = vmatprep.subr.msk.bf16.mxu0 %vm9508_vm1, %v7316_v48 }
 0x4b4   : > { %7329 = vmatpush3.bf16.msra.mxu1 %v9613_v62  ;;  %v9901_v62 = vpack.c.bf16 %v8053_v49, %v8052_v51 }
 0x4b5   : > { %7331 = vmatprep.subr.bf16.mxu1 %v9693_v19 }
 0x4ba   : > { %7321 = vmatpush3.bf16.xpose.msk.msra.mxu0 %vm9508_vm1, %v7316_v48 }
 0x4bb   : > { %7339 = vmatprep.subr.bf16.mxu0 %v7338_v14 }
 0x4c1   : > { %6834 = vmatmul.mubr.msk.f32.vlgmr.msra.gmra.mrb[18].mxu0 %vm1644_vm0, %v1607_v8 }
 0x4c2   : > { %7341 = vmatpush3.bf16.msra.mxu0 %v7338_v14 }
 0x4c3   : > { %7343 = vmatprep.subr.bf16.mxu0 %v7342_v57 }
 0x4c4   : > { %v6702_v60 = vpop.f32.mrb[16].mxu1 }
 0x4c5   : > { %v1731_v61 = vpop.f32.mrb[17].mxu1  ;;  %2090 = vrot.lane.b32.xlu1 %v6702_v60, %s8844_s9 }
 0x4c6   : > { %7345 = vmatpush3.bf16.msra.mxu0 %v7342_v57  ;;  %2088 = vrot.lane.b32.xlu0 %v1731_v61, %s8844_s9 }
 0x4c7   : > { %7355 = vmatprep.subr.bf16.mxu0 %v9901_v62 }
 0x4c8   : > { %v9906_v36 = vpop.f32.mrb[18].mxu1 }
 0x4c9   : > { %2138 = vrot.lane.b32.xlu1 %v6702_v60, %s8845_s16  ;;  %v9909_v38 = vpop.f32.mrb[19].mxu1 }
 0x4ca   : > { %2136 = vrot.lane.b32.xlu0 %v1731_v61, %s8845_s16 }
 0x4cd   : > { %2094 = vrot.lane.b32.xlu1 %v9906_v36, %s8844_s9 }
 0x4ce   : > { %2092 = vrot.lane.b32.xlu0 %v9909_v38, %s8844_s9 }
 0x4d1   : > { %2142 = vrot.lane.b32.xlu1 %v9906_v36, %s8845_s16 }
 0x4d2   : > { %2140 = vrot.lane.b32.xlu0 %v9909_v38, %s8845_s16 }
 0x537   : > { %v2091_v7 = vpop.permute.xlu1 %2090 }
 0x538   : > { %v2089_v2 = vpop.permute.xlu0 %2088 }
 0x53a   : > { %v9920_v29 = vpop.f32.mrb[4].mxu0 }
 0x53b   : > { %2098 = vrot.lane.b32.xlu0 %v9920_v29, %s8844_s9  ;;  %v9924_v0 = vpop.f32.mrb[5].mxu0  ;;  %v2139_v9 = vpop.permute.xlu1 %2138 }
 0x53c   : > { %v2137_v6 = vpop.permute.xlu0 %2136  ;;  %v2186_v50 = vsel %vm2184_vm2, %v2091_v7, %v2139_v9 }
 0x53d   : > { %v2185_v5 = vsel %vm2184_vm2, %v2089_v2, %v2137_v6  ;;  %v9993_v32 = vsel %vm9979_vm4, %v2186_v50, %v6702_v60 }
 0x53e   : > { %v9967_v22 = vsel %vm9955_vm3, %v2185_v5, %v1731_v61 }
 0x53f   : > { %2146 = vrot.lane.b32.xlu0 %v9920_v29, %s8845_s16  ;;  %v2095_v33 = vpop.permute.xlu1 %2094 }
 0x540   : > { %v2093_v39 = vpop.permute.xlu0 %2092 }
 0x542   : > { %v9931_v3 = vpop.f32.mrb[20].mxu1 }
 0x543   : > { %2106 = vrot.lane.b32.xlu1 %v9931_v3, %s8844_s9  ;;  %v9935_v23 = vpop.f32.mrb[21].mxu1  ;;  %v2143_v48 = vpop.permute.xlu1 %2142 }
 0x544   : > { %2104 = vrot.lane.b32.xlu0 %v9935_v23, %s8844_s9  ;;  %v2141_v54 = vpop.permute.xlu0 %2140  ;;  %v2188_v10 = vsel %vm2184_vm2, %v2095_v33, %v2143_v48  ;;  %v2355_v33 = vshra.s32 %v9950_v16, 1 }
 0x545   : > { %v9943_v52 = vpop.f32.mrb[6].mxu0  ;;  %v2187_v43 = vsel %vm2184_vm2, %v2093_v39, %v2141_v54  ;;  %v10039_v31 = vsel %vm9979_vm4, %v2188_v10, %v9906_v36 }
 0x546   : > { %v9945_v15 = vpop.f32.mrb[7].mxu0  ;;  %v10027_v46 = vsel %vm9955_vm3, %v2187_v43, %v9909_v38 }
 0x547   : > { %2154 = vrot.lane.b32.xlu1 %v9931_v3, %s8845_s16 }
 0x548   : > { %2152 = vrot.lane.b32.xlu0 %v9935_v23, %s8845_s16 }
 0x54a   : > { %v9959_v20 = vpop.f32.mrb[8].mxu0 }
 0x54b   : > { %v9961_v21 = vpop.f32.mrb[9].mxu0  ;;  %2096 = vrot.lane.b32.xlu1 %v9924_v0, %s8844_s9 }
 0x54c   : > { %2241 = vrot.lane.b32.xlu0 %v9967_v22, %s8846_s14 }
 0x54d   : > { %v9972_v26 = vpop.f32.mrb[22].mxu1 }
 0x54e   : > { %v9974_v27 = vpop.f32.mrb[23].mxu1 }
 0x54f   : > { %2144 = vrot.lane.b32.xlu1 %v9924_v0, %s8845_s16 }
 0x550   : > { %2289 = vrot.lane.b32.xlu0 %v9967_v22, %s8847_s3 }
 0x551   : > { %v9985_v28 = vpop.f32.mrb[10].mxu0 }
 0x552   : > { %v9987_v11 = vpop.f32.mrb[24].mxu1  ;;  %v9989_v30 = vpop.f32.mrb[11].mxu0 }
 0x553   : > { %v9995_v35 = vpop.f32.mrb[25].mxu1  ;;  %2243 = vrot.lane.b32.xlu1 %v9993_v32, %s8846_s14 }
 0x554   : > { %2100 = vrot.lane.b32.xlu0 %v9945_v15, %s8844_s9 }
 0x557   : > { %2291 = vrot.lane.b32.xlu1 %v9993_v32, %s8847_s3 }
 0x558   : > { %2148 = vrot.lane.b32.xlu0 %v9945_v15, %s8845_s16 }
 0x55b   : > { %v10005_v47 = vpop.f32.mrb[12].mxu0  ;;  %2102 = vrot.lane.b32.xlu1 %v9943_v52, %s8844_s9 }
 0x55c   : > { %v10009_v55 = vpop.f32.mrb[13].mxu0  ;;  %2108 = vrot.lane.b32.xlu0 %v9974_v27, %s8844_s9 }
 0x55f   : > { %2150 = vrot.lane.b32.xlu1 %v9943_v52, %s8845_s16 }
 0x560   : > { %2156 = vrot.lane.b32.xlu0 %v9974_v27, %s8845_s16 }
 0x562   : > { %v10018_v13 = vpop.f32.mrb[26].mxu1 }
 0x563   : > { %v10020_v63 = vpop.f32.mrb[27].mxu1  ;;  %2110 = vrot.lane.b32.xlu1 %v9972_v26, %s8844_s9 }
 0x564   : > { %2245 = vrot.lane.b32.xlu0 %v10027_v46, %s8846_s14 }
 0x567   : > { %2158 = vrot.lane.b32.xlu1 %v9972_v26, %s8845_s16 }
 0x568   : > { %2293 = vrot.lane.b32.xlu0 %v10027_v46, %s8847_s3 }
 0x56b   : > { %2247 = vrot.lane.b32.xlu1 %v10039_v31, %s8846_s14 }
 0x56c   : > { %2112 = vrot.lane.b32.xlu0 %v9961_v21, %s8844_s9 }
 0x56f   : > { %2295 = vrot.lane.b32.xlu1 %v10039_v31, %s8847_s3 }
 0x570   : > { %2160 = vrot.lane.b32.xlu0 %v9961_v21, %s8845_s16 }
 0x572   : > { %v10049_v14 = vpop.f32.mrb[28].mxu1 }
 0x573   : > { %v10051_v58 = vpop.f32.mrb[29].mxu1  ;;  %2114 = vrot.lane.b32.xlu1 %v9959_v20, %s8844_s9 }
 0x574   : > { %v10055_v53 = vpop.f32.mrb[14].mxu0  ;;  %2116 = vrot.lane.b32.xlu0 %v9989_v30, %s8844_s9 }
 0x575   : > { %v10059_v8 = vpop.f32.mrb[15].mxu0 }
 0x577   : > { %2162 = vrot.lane.b32.xlu1 %v9959_v20, %s8845_s16 }
 0x578   : > { %2164 = vrot.lane.b32.xlu0 %v9989_v30, %s8845_s16 }
 0x57b   : > { %2118 = vrot.lane.b32.xlu1 %v9985_v28, %s8844_s9 }
 0x57f   : > { %2166 = vrot.lane.b32.xlu1 %v9985_v28, %s8845_s16  ;;  %s11315_s16 = sld [smem:[#allocation56_spill]] }
 0x582   : > { %v10069_v49 = vpop.f32.mrb[30].mxu1 }
 0x583   : > { %v10071_v51 = vpop.f32.mrb[31].mxu1 }
 0x584   : > { %v10073_v57 = vpop.f32.mrb[16].mxu0 }
 0x585   : > { %v10075_v60 = vpop.f32.mrb[17].mxu0 }
 0x594   : > { %v10077_v61 = vpop.f32.mrb[18].mxu0 }
 0x595   : > { %v10079_v36 = vpop.f32.mrb[19].mxu0 }
 0x5ad   : > { %v2099_v38 = vpop.permute.xlu0 %2098 }
 0x5b1   : > { %v2147_v2 = vpop.permute.xlu0 %2146 }
 0x5b2   : > { %v2190_v4 = vsel %vm2184_vm2, %v2099_v38, %v2147_v2 }
 0x5b3   : > { %v10085_v6 = vsel %vm9979_vm4, %v2190_v4, %v9920_v29 }
 0x5b4   : > { %2251 = vrot.lane.b32.xlu1 %v10085_v6, %s8846_s14 }
 0x5b5   : > { %v2107_v7 = vpop.permute.xlu1 %2106 }
 0x5b6   : > { %v2105_v5 = vpop.permute.xlu0 %2104 }
 0x5b8   : > { %2299 = vrot.lane.b32.xlu1 %v10085_v6, %s8847_s3 }
 0x5b9   : > { %v2155_v24 = vpop.permute.xlu1 %2154 }
 0x5ba   : > { %v2194_v9 = vsel %vm2184_vm2, %v2107_v7, %v2155_v24  ;;  %v2153_v50 = vpop.permute.xlu0 %2152  ;;  %v2354_v24 = vshra.s32 %v9929_v44, 1 }
 0x5bb   : > { %v10095_v39 = vsel %vm9979_vm4, %v2194_v9, %v9931_v3  ;;  %v10110_v3 = vand.u32 1, %v2355_v33  ;;  %v2193_v7 = vsel %vm2184_vm2, %v2105_v5, %v2153_v50 }
 0x5bc   : > { %2259 = vrot.lane.b32.xlu1 %v10095_v39, %s8846_s14  ;;  %v10126_v5 = vsel %vm9955_vm3, %v2193_v7, %v9935_v23  ;;  %v10132_v50 = vand.u32 1, %v2354_v24 }
 0x5bd   : > { %v2097_v29 = vpop.permute.xlu1 %2096  ;;  %vm2359_vm5 = vcmp.eq.s32.totalorder %v10110_v3, 1 }
 0x5be   : > { %v2242_v54 = vpop.permute.xlu0 %2241  ;;  %vm2358_vm7 = vcmp.eq.s32.totalorder %v10132_v50, 1 }
 0x5c0   : > { %2307 = vrot.lane.b32.xlu1 %v10095_v39, %s8847_s3 }
 0x5c1   : > { %v2145_v43 = vpop.permute.xlu1 %2144 }
 0x5c2   : > { %v2189_v48 = vsel %vm2184_vm2, %v2097_v29, %v2145_v43  ;;  %v2290_v10 = vpop.permute.xlu0 %2289 }
 0x5c3   : > { %v10106_v38 = vsel %vm9955_vm3, %v2189_v48, %v9924_v0 }
 0x5c4   : > { %2249 = vrot.lane.b32.xlu0 %v10106_v38, %s8846_s14 }
 0x5c5   : > { %v2244_v2 = vpop.permute.xlu1 %2243 }
 0x5c6   : > { %v2101_v4 = vpop.permute.xlu0 %2100 }
 0x5c8   : > { %2297 = vrot.lane.b32.xlu0 %v10106_v38, %s8847_s3 }
 0x5c9   : > { %v2292_v9 = vpop.permute.xlu1 %2291 }
 0x5ca   : > { %v2339_v0 = vsel %vm2337_vm6, %v2244_v2, %v2292_v9  ;;  %v2149_v29 = vpop.permute.xlu0 %2148  ;;  %v2338_v2 = vsel %vm2337_vm6, %v2242_v54, %v2290_v10 }
 0x5cb   : > { %v10121_v33 = vsel %vm2359_vm5, %v2339_v0, %v9993_v32  ;;  %v10149_v54 = vsel %vm2358_vm7, %v2338_v2, %v9967_v22  ;;  %v2191_v0 = vsel %vm2184_vm2, %v2101_v4, %v2149_v29 }
 0x5cc   : > { %2398 = vrot.lane.b32.xlu1 %v10121_v33, %s8848_s24  ;;  %2257 = vrot.lane.b32.xlu0 %v10126_v5, %s8846_s14  ;;  %v10169_v2 = vsel %vm9955_vm3, %v2191_v0, %v9945_v15 }
 0x5cd   : > { %v2103_v43 = vpop.permute.xlu1 %2102 }
 0x5ce   : > { %v2109_v48 = vpop.permute.xlu0 %2108 }
 0x5d0   : > { %2446 = vrot.lane.b32.xlu1 %v10121_v33, %s8849_s7  ;;  %2305 = vrot.lane.b32.xlu0 %v10126_v5, %s8847_s3 }
 0x5d1   : > { %v2151_v23 = vpop.permute.xlu1 %2150 }
 0x5d2   : > { %v2192_v32 = vsel %vm2184_vm2, %v2103_v43, %v2151_v23  ;;  %v2157_v7 = vpop.permute.xlu0 %2156 }
 0x5d3   : > { %v10144_v24 = vsel %vm9979_vm4, %v2192_v32, %v9943_v52  ;;  %v2195_v23 = vsel %vm2184_vm2, %v2109_v48, %v2157_v7 }
 0x5d4   : > { %2255 = vrot.lane.b32.xlu1 %v10144_v24, %s8846_s14  ;;  %2396 = vrot.lane.b32.xlu0 %v10149_v54, %s8848_s24  ;;  %v10189_v0 = vsel %vm9955_vm3, %v2195_v23, %v9974_v27 }
 0x5d5   : > { %v2111_v10 = vpop.permute.xlu1 %2110 }
 0x5d6   : > { %v2246_v9 = vpop.permute.xlu0 %2245 }
 0x5d8   : > { %2303 = vrot.lane.b32.xlu1 %v10144_v24, %s8847_s3  ;;  %2444 = vrot.lane.b32.xlu0 %v10149_v54, %s8849_s7 }
 0x5d9   : > { %v2159_v52 = vpop.permute.xlu1 %2158 }
 0x5da   : > { %v2196_v22 = vsel %vm2184_vm2, %v2111_v10, %v2159_v52  ;;  %v2294_v4 = vpop.permute.xlu0 %2293 }
 0x5db   : > { %v10164_v43 = vsel %vm9979_vm4, %v2196_v22, %v9972_v26  ;;  %v2340_v7 = vsel %vm2337_vm6, %v2246_v9, %v2294_v4 }
 0x5dc   : > { %2263 = vrot.lane.b32.xlu1 %v10164_v43, %s8846_s14  ;;  %2253 = vrot.lane.b32.xlu0 %v10169_v2, %s8846_s14 }
 0x5dd   : > { %v2248_v29 = vpop.permute.xlu1 %2247 }
 0x5de   : > { %v2113_v32 = vpop.permute.xlu0 %2112 }
 0x5e0   : > { %2311 = vrot.lane.b32.xlu1 %v10164_v43, %s8847_s3  ;;  %2301 = vrot.lane.b32.xlu0 %v10169_v2, %s8847_s3 }
 0x5e1   : > { %v2296_v26 = vpop.permute.xlu1 %2295 }
 0x5e2   : > { %v2341_v15 = vsel %vm2337_vm6, %v2248_v29, %v2296_v26  ;;  %v10209_v29 = vsel %vm2358_vm7, %v2340_v7, %v10027_v46 }
 0x5e3   : > { %v10184_v10 = vsel %vm2359_vm5, %v2341_v15, %v10039_v31  ;;  %v2161_v31 = vpop.permute.xlu0 %2160 }
 0x5e4   : > { %2402 = vrot.lane.b32.xlu1 %v10184_v10, %s8848_s24  ;;  %2261 = vrot.lane.b32.xlu0 %v10189_v0, %s8846_s14  ;;  %v2197_v23 = vsel %vm2184_vm2, %v2113_v32, %v2161_v31 }
 0x5e5   : > { %v2115_v48 = vpop.permute.xlu1 %2114  ;;  %v10229_v15 = vsel %vm9955_vm3, %v2197_v23, %v9961_v21 }
 0x5e7   : > { %v2117_v4 = vpop.permute.xlu0 %2116 }
 0x5e8   : > { %2450 = vrot.lane.b32.xlu1 %v10184_v10, %s8849_s7  ;;  %2309 = vrot.lane.b32.xlu0 %v10189_v0, %s8847_s3 }
 0x5e9   : > { %v2163_v52 = vpop.permute.xlu1 %2162 }
 0x5ea   : > { %v2198_v27 = vsel %vm2184_vm2, %v2115_v48, %v2163_v52 }
 0x5eb   : > { %v10204_v22 = vsel %vm9979_vm4, %v2198_v27, %v9959_v20  ;;  %v2165_v32 = vpop.permute.xlu0 %2164 }
 0x5ec   : > { %2267 = vrot.lane.b32.xlu1 %v10204_v22, %s8846_s14  ;;  %2400 = vrot.lane.b32.xlu0 %v10209_v29, %s8848_s24  ;;  %v2199_v48 = vsel %vm2184_vm2, %v2117_v4, %v2165_v32 }
 0x5ed   : > { %v2119_v9 = vpop.permute.xlu1 %2118  ;;  %v10243_v21 = vsel %vm9955_vm3, %v2199_v48, %v9989_v30  ;;  %v2509_v48 = vshra.s32 %v9929_v44, 2 }
 0x5f0   : > { %2315 = vrot.lane.b32.xlu1 %v10204_v22, %s8847_s3  ;;  %2448 = vrot.lane.b32.xlu0 %v10209_v29, %s8849_s7 }
 0x5f1   : > { %v2167_v20 = vpop.permute.xlu1 %2166 }
 0x5f2   : > { %v2200_v46 = vsel %vm2184_vm2, %v2119_v9, %v2167_v20  ;;  %v2510_v9 = vshra.s32 %v9950_v16, 2 }
 0x5f3   : > { %v10224_v26 = vsel %vm9979_vm4, %v2200_v46, %v9985_v28  ;;  %vm4415_vm4 = vcmask 523264  }
 0x5f4   : > { %2271 = vrot.lane.b32.xlu1 %v10224_v26, %s8846_s14  ;;  %2265 = vrot.lane.b32.xlu0 %v10229_v15, %s8846_s14 }
 0x5f8   : > { %2319 = vrot.lane.b32.xlu1 %v10224_v26, %s8847_s3  ;;  %2313 = vrot.lane.b32.xlu0 %v10229_v15, %s8847_s3 }
 0x5fc   : > { %2269 = vrot.lane.b32.xlu0 %v10243_v21, %s8846_s14 }
 0x600   : > { %2317 = vrot.lane.b32.xlu0 %v10243_v21, %s8847_s3  ;;  %s8852_s3 = smov [#allocation26]  }
 0x626   : > { %v2252_v1 = vpop.permute.xlu1 %2251 }
 0x62a   : > { %v2300_v28 = vpop.permute.xlu1 %2299 }
 0x62b   : > { %v2343_v7 = vsel %vm2337_vm6, %v2252_v1, %v2300_v28 }
 0x62c   : > { %v10253_v31 = vsel %vm2359_vm5, %v2343_v7, %v10085_v6 }
 0x62d   : > { %2406 = vrot.lane.b32.xlu1 %v10253_v31, %s8848_s24 }
 0x62e   : > { %v2260_v56 = vpop.permute.xlu1 %2259 }
 0x631   : > { %2454 = vrot.lane.b32.xlu1 %v10253_v31, %s8849_s7 }
 0x632   : > { %v2308_v30 = vpop.permute.xlu1 %2307 }
 0x633   : > { %v2347_v52 = vsel %vm2337_vm6, %v2260_v56, %v2308_v30 }
 0x634   : > { %v10263_v27 = vsel %vm2359_vm5, %v2347_v52, %v10095_v39  ;;  %v10278_v39 = vand.u32 1, %v2510_v9  ;;  %v10300_v52 = vand.u32 1, %v2509_v48 }
 0x635   : > { %2414 = vrot.lane.b32.xlu1 %v10263_v27, %s8848_s24 }
 0x636   : > { %v2250_v6 = vpop.permute.xlu0 %2249  ;;  %vm2514_vm9 = vcmp.eq.s32.totalorder %v10278_v39, 1  ;;  %vm2513_vm10 = vcmp.eq.s32.totalorder %v10300_v52, 1 }
 0x639   : > { %2462 = vrot.lane.b32.xlu1 %v10263_v27, %s8849_s7 }
 0x63a   : > { %v2298_v4 = vpop.permute.xlu0 %2297 }
 0x63b   : > { %v2342_v23 = vsel %vm2337_vm6, %v2250_v6, %v2298_v4 }
 0x63c   : > { %v10274_v20 = vsel %vm2358_vm7, %v2342_v23, %v10106_v38 }
 0x63d   : > { %2404 = vrot.lane.b32.xlu0 %v10274_v20, %s8848_s24 }
 0x63e   : > { %v2399_v46 = vpop.permute.xlu1 %2398  ;;  %v2258_v32 = vpop.permute.xlu0 %2257 }
 0x641   : > { %2452 = vrot.lane.b32.xlu0 %v10274_v20, %s8849_s7 }
 0x642   : > { %v2447_v1 = vpop.permute.xlu1 %2446  ;;  %v2306_v28 = vpop.permute.xlu0 %2305 }
 0x643   : > { %v2494_v38 = vsel %vm2492_vm8, %v2399_v46, %v2447_v1  ;;  %v2346_v7 = vsel %vm2337_vm6, %v2258_v32, %v2306_v28 }
 0x644   : > { %v10289_v56 = vsel %vm2514_vm9, %v2494_v38, %v10121_v33  ;;  %v10294_v30 = vsel %vm2358_vm7, %v2346_v7, %v10126_v5 }
 0x645   : > { %2553 = vrot.lane.b32.xlu1 %v10289_v56, %s8850_s2  ;;  %2412 = vrot.lane.b32.xlu0 %v10294_v30, %s8848_s24 }
 0x646   : > { %v2256_v6 = vpop.permute.xlu1 %2255  ;;  %v2397_v9 = vpop.permute.xlu0 %2396 }
 0x649   : > { %2601 = vrot.lane.b32.xlu1 %v10289_v56, %s8851_s30  ;;  %2460 = vrot.lane.b32.xlu0 %v10294_v30, %s8849_s7 }
 0x64a   : > { %v2304_v33 = vpop.permute.xlu1 %2303  ;;  %v2445_v5 = vpop.permute.xlu0 %2444 }
 0x64b   : > { %v2345_v4 = vsel %vm2337_vm6, %v2256_v6, %v2304_v33  ;;  %v2493_v23 = vsel %vm2492_vm8, %v2397_v9, %v2445_v5 }
 0x64c   : > { %v10312_v46 = vsel %vm2359_vm5, %v2345_v4, %v10144_v24  ;;  %v10317_v32 = vsel %vm2513_vm10, %v2493_v23, %v10149_v54 }
 0x64d   : > { %2410 = vrot.lane.b32.xlu1 %v10312_v46, %s8848_s24  ;;  %2551 = vrot.lane.b32.xlu0 %v10317_v32, %s8850_s2 }
 0x64e   : > { %v2264_v48 = vpop.permute.xlu1 %2263  ;;  %v2254_v1 = vpop.permute.xlu0 %2253 }
 0x651   : > { %2458 = vrot.lane.b32.xlu1 %v10312_v46, %s8849_s7  ;;  %2599 = vrot.lane.b32.xlu0 %v10317_v32, %s8851_s30 }
 0x652   : > { %v2312_v24 = vpop.permute.xlu1 %2311  ;;  %v2302_v28 = vpop.permute.xlu0 %2301 }
 0x653   : > { %v2349_v38 = vsel %vm2337_vm6, %v2264_v48, %v2312_v24  ;;  %v2344_v54 = vsel %vm2337_vm6, %v2254_v1, %v2302_v28 }
 0x654   : > { %v10332_v7 = vsel %vm2359_vm5, %v2349_v38, %v10164_v43  ;;  %v10337_v6 = vsel %vm2358_vm7, %v2344_v54, %v10169_v2 }
 0x655   : > { %2418 = vrot.lane.b32.xlu1 %v10332_v7, %s8848_s24  ;;  %2408 = vrot.lane.b32.xlu0 %v10337_v6, %s8848_s24 }
 0x656   : > { %v2403_v9 = vpop.permute.xlu1 %2402  ;;  %v2262_v33 = vpop.permute.xlu0 %2261 }
 0x659   : > { %2466 = vrot.lane.b32.xlu1 %v10332_v7, %s8849_s7  ;;  %2456 = vrot.lane.b32.xlu0 %v10337_v6, %s8849_s7 }
 0x65a   : > { %v2451_v43 = vpop.permute.xlu1 %2450  ;;  %v2310_v5 = vpop.permute.xlu0 %2309 }
 0x65b   : > { %v2496_v4 = vsel %vm2492_vm8, %v2403_v9, %v2451_v43  ;;  %v2348_v2 = vsel %vm2337_vm6, %v2262_v33, %v2310_v5 }
 0x65c   : > { %v10352_v23 = vsel %vm2514_vm9, %v2496_v4, %v10184_v10  ;;  %v10357_v48 = vsel %vm2358_vm7, %v2348_v2, %v10189_v0 }
 0x65d   : > { %2557 = vrot.lane.b32.xlu1 %v10352_v23, %s8850_s2  ;;  %2416 = vrot.lane.b32.xlu0 %v10357_v48, %s8848_s24 }
 0x65e   : > { %v2268_v1 = vpop.permute.xlu1 %2267  ;;  %v2401_v24 = vpop.permute.xlu0 %2400 }
 0x661   : > { %2605 = vrot.lane.b32.xlu1 %v10352_v23, %s8851_s30  ;;  %2464 = vrot.lane.b32.xlu0 %v10357_v48, %s8849_s7 }
 0x662   : > { %v2316_v10 = vpop.permute.xlu1 %2315  ;;  %v2449_v28 = vpop.permute.xlu0 %2448 }
 0x663   : > { %v2351_v38 = vsel %vm2337_vm6, %v2268_v1, %v2316_v10  ;;  %v2495_v0 = vsel %vm2492_vm8, %v2401_v24, %v2449_v28 }
 0x664   : > { %v10372_v54 = vsel %vm2359_vm5, %v2351_v38, %v10204_v22  ;;  %v10377_v9 = vsel %vm2513_vm10, %v2495_v0, %v10209_v29 }
 0x665   : > { %2422 = vrot.lane.b32.xlu1 %v10372_v54, %s8848_s24  ;;  %2555 = vrot.lane.b32.xlu0 %v10377_v9, %s8850_s2 }
 0x666   : > { %v2272_v33 = vpop.permute.xlu1 %2271  ;;  %v2266_v43 = vpop.permute.xlu0 %2265 }
 0x669   : > { %2470 = vrot.lane.b32.xlu1 %v10372_v54, %s8849_s7  ;;  %2603 = vrot.lane.b32.xlu0 %v10377_v9, %s8851_s30 }
 0x66a   : > { %v2320_v22 = vpop.permute.xlu1 %2319  ;;  %v2314_v5 = vpop.permute.xlu0 %2313 }
 0x66b   : > { %v2353_v4 = vsel %vm2337_vm6, %v2272_v33, %v2320_v22  ;;  %v2350_v29 = vsel %vm2337_vm6, %v2266_v43, %v2314_v5 }
 0x66c   : > { %v10392_v2 = vsel %vm2359_vm5, %v2353_v4, %v10224_v26  ;;  %v10397_v1 = vsel %vm2358_vm7, %v2350_v29, %v10229_v15  ;;  %vm4420_vm5 = vcmask 785408  }
 0x66d   : > { %2426 = vrot.lane.b32.xlu1 %v10392_v2, %s8848_s24  ;;  %2420 = vrot.lane.b32.xlu0 %v10397_v1, %s8848_s24 }
 0x66e   : > { %v2270_v24 = vpop.permute.xlu0 %2269 }
 0x671   : > { %2474 = vrot.lane.b32.xlu1 %v10392_v2, %s8849_s7  ;;  %2468 = vrot.lane.b32.xlu0 %v10397_v1, %s8849_s7 }
 0x672   : > { %v2318_v3 = vpop.permute.xlu0 %2317 }
 0x673   : > { %v2352_v26 = vsel %vm2337_vm6, %v2270_v24, %v2318_v3 }
 0x674   : > { %v10411_v15 = vsel %vm2358_vm7, %v2352_v26, %v10243_v21 }
 0x675   : > { %2424 = vrot.lane.b32.xlu0 %v10411_v15, %s8848_s24  ;;  %s11316_s24 = sld [smem:[#allocation58_spill]] }
 0x679   : > { %2472 = vrot.lane.b32.xlu0 %v10411_v15, %s8849_s7 }
 0x69f   : > { %v2407_v10 = vpop.permute.xlu1 %2406 }
 0x6a3   : > { %v2455_v28 = vpop.permute.xlu1 %2454 }
 0x6a4   : > { %v2498_v38 = vsel %vm2492_vm8, %v2407_v10, %v2455_v28 }
 0x6a5   : > { %v10421_v0 = vsel %vm2514_vm9, %v2498_v38, %v10253_v31 }
 0x6a6   : > { %2561 = vrot.lane.b32.xlu1 %v10421_v0, %s8850_s2 }
 0x6a7   : > { %v2415_v50 = vpop.permute.xlu1 %2414 }
 0x6aa   : > { %2609 = vrot.lane.b32.xlu1 %v10421_v0, %s8851_s30 }
 0x6ab   : > { %v2463_v21 = vpop.permute.xlu1 %2462 }
 0x6ac   : > { %v2502_v33 = vsel %vm2492_vm8, %v2415_v50, %v2463_v21 }
 0x6ad   : > { %v10431_v43 = vsel %vm2514_vm9, %v2502_v33, %v10263_v27 }
 0x6ae   : > { %2569 = vrot.lane.b32.xlu1 %v10431_v43, %s8850_s2 }
 0x6af   : > { %v2405_v31 = vpop.permute.xlu0 %2404 }
 0x6b2   : > { %2617 = vrot.lane.b32.xlu1 %v10431_v43, %s8851_s30 }
 0x6b3   : > { %v2453_v22 = vpop.permute.xlu0 %2452 }
 0x6b4   : > { %v2497_v5 = vsel %vm2492_vm8, %v2405_v31, %v2453_v22 }
 0x6b5   : > { %v10441_v4 = vsel %vm2513_vm10, %v2497_v5, %v10274_v20 }
 0x6b6   : > { %2559 = vrot.lane.b32.xlu0 %v10441_v4, %s8850_s2 }
 0x6b7   : > { %v10445_v27 = vpop.permute.xlu1 %2553  ;;  %v2413_v29 = vpop.permute.xlu0 %2412 }
 0x6ba   : > { %2607 = vrot.lane.b32.xlu0 %v10441_v4, %s8851_s30 }
 0x6bb   : > { %v2602_v24 = vpop.permute.xlu1 %2601  ;;  %v2461_v3 = vpop.permute.xlu0 %2460 }
 0x6bc   : > { %v2501_v26 = vsel %vm2492_vm8, %v2413_v29, %v2461_v3 }
 0x6bd   : > { %v10453_v10 = vsel %vm2513_vm10, %v2501_v26, %v10294_v30 }
 0x6be   : > { %2567 = vrot.lane.b32.xlu0 %v10453_v10, %s8850_s2 }
 0x6bf   : > { %v2411_v20 = vpop.permute.xlu1 %2410  ;;  %v2552_v28 = vpop.permute.xlu0 %2551 }
 0x6c2   : > { %2615 = vrot.lane.b32.xlu0 %v10453_v10, %s8851_s30 }
 0x6c3   : > { %v2459_v38 = vpop.permute.xlu1 %2458  ;;  %v2600_v50 = vpop.permute.xlu0 %2599 }
 0x6c4   : > { %v2500_v21 = vsel %vm2492_vm8, %v2411_v20, %v2459_v38  ;;  %v2648_v37 = vsel %vm2647_vm11, %v2552_v28, %v2600_v50 }
 0x6c5   : > { %v10463_v33 = vsel %vm2514_vm9, %v2500_v21, %v10312_v46  ;;  %v2665_v21 = vshra.s32 %v9950_v16, 3 }
 0x6c6   : > { %2565 = vrot.lane.b32.xlu1 %v10463_v33, %s8850_s2 }
 0x6c7   : > { %v2419_v30 = vpop.permute.xlu1 %2418  ;;  %v2409_v31 = vpop.permute.xlu0 %2408  ;;  %v10498_v16 = vand.u32 1, %v2665_v21  ;;  %v11301_v21 = vlaneseq }
 0x6c9   : > { %vm2669_vm12 = vcmp.eq.s32.totalorder %v10498_v16, 1 }
 0x6ca   : > { %2613 = vrot.lane.b32.xlu1 %v10463_v33, %s8851_s30 }
 0x6cb   : > { %v2467_v22 = vpop.permute.xlu1 %2466  ;;  %v2457_v5 = vpop.permute.xlu0 %2456 }
 0x6cc   : > { %v2504_v29 = vsel %vm2492_vm8, %v2419_v30, %v2467_v22  ;;  %v2499_v3 = vsel %vm2492_vm8, %v2409_v31, %v2457_v5  ;;  %v2664_v30 = vshra.s32 %v9929_v44, 3  ;;  %v2764_v44 = vadd.s32 16, %v9938_v40 }
 0x6cd   : > { %v10474_v26 = vsel %vm2514_vm9, %v2504_v29, %v10332_v7  ;;  %v10479_v46 = vsel %vm2513_vm10, %v2499_v3, %v10337_v6 }
 0x6ce   : > { %2573 = vrot.lane.b32.xlu1 %v10474_v26, %s8850_s2  ;;  %2563 = vrot.lane.b32.xlu0 %v10479_v46, %s8850_s2  ;;  %v10503_v34 = vand.u32 1, %v2664_v30 }
 0x6cf   : > { %v2558_v20 = vpop.permute.xlu1 %2557  ;;  %v2417_v38 = vpop.permute.xlu0 %2416 }
 0x6d0   : > { %vm2668_vm13 = vcmp.eq.s32.totalorder %v10503_v34, 1 }
 0x6d2   : > { %2621 = vrot.lane.b32.xlu1 %v10474_v26, %s8851_s30  ;;  %2611 = vrot.lane.b32.xlu0 %v10479_v46, %s8851_s30 }
 0x6d3   : > { %v2606_v7 = vpop.permute.xlu1 %2605  ;;  %v2465_v6 = vpop.permute.xlu0 %2464 }
 0x6d4   : > { %v2651_v31 = vsel %vm2647_vm11, %v2558_v20, %v2606_v7  ;;  %v2503_v22 = vsel %vm2492_vm8, %v2417_v38, %v2465_v6  ;;  %v2069_v7 = vand.u32 127, %v11301_v21  ;;  %v2767_v6 = vadd.s32 1, %v2763_v25 }
 0x6d5   : > { %v10496_v5 = vsel %vm2513_vm10, %v2503_v22, %v10357_v48  ;;  %v2677_v48 = vsel %vm2669_vm12, %v2651_v31, %v10352_v23  ;;  %v2768_v22 = vadd.s32 1, %v2764_v44 }
 0x6d6   : > { %2571 = vrot.lane.b32.xlu0 %v10496_v5, %s8850_s2  ;;  %v2711_v31 = vrot.slane %v2677_v48, 1  ;;  %vm10529_vm15 = vcmp.eq.s32.totalorder %v2069_v7, %v2767_v6  ;;  %vm10542_vm2 = vcmp.le.s32.totalorder %v2069_v7, %v2763_v25  ;;  %vm10546_vm3 = vcmp.le.s32.totalorder %v2069_v7, %v2764_v44 }
 0x6d7   : > { %v2423_v29 = vpop.permute.xlu1 %2422  ;;  %v2556_v3 = vpop.permute.xlu0 %2555  ;;  %vm10536_vm1 = vcmp.eq.s32.totalorder %v2069_v7, %v2768_v22 }
 0x6da   : > { %2619 = vrot.lane.b32.xlu0 %v10496_v5, %s8851_s30 }
 0x6db   : > { %v2471_v20 = vpop.permute.xlu1 %2470  ;;  %v2604_v38 = vpop.permute.xlu0 %2603 }
 0x6dc   : > { %v2506_v30 = vsel %vm2492_vm8, %v2423_v29, %v2471_v20  ;;  %v2650_v40 = vsel %vm2647_vm11, %v2556_v3, %v2604_v38  ;;  %v2649_v29 = vsel %vm2647_vm11, %v10445_v27, %v2602_v24 }
 0x6dd   : > { %v2676_v41 = vsel %vm2668_vm13, %v2650_v40, %v10377_v9  ;;  %v10523_v23 = vsel %vm2514_vm9, %v2506_v30, %v10372_v54  ;;  %v2674_v9 = vsel %vm2668_vm13, %v2648_v37, %v10317_v32  ;;  %v2675_v32 = vsel %vm2669_vm12, %v2649_v29, %v10289_v56 }
 0x6de   : > { %v2710_v21 = vrot.slane %v2676_v41, 1  ;;  %2577 = vrot.lane.b32.xlu1 %v10523_v23, %s8850_s2  ;;  %v2707_v7 = vrot.slane %v2674_v9, 1 }
 0x6df   : > { %v2427_v3 = vpop.permute.xlu1 %2426 }
 0x6e0   : > { %v2712_v50 = vsel %vm2706_vm14, %v2710_v21, %v2711_v31  ;;  %v2756_v20 = vsel %vm2706_vm14, %v2711_v31, %v2710_v21  ;;  %v2708_v31 = vrot.slane %v2675_v32, 1 }
 0x6e1   : > { %v2777_v38 = vsel %vm10529_vm15, 0.0, %v2712_v50  ;;  %v2778_v37 = vsel %vm10536_vm1, 0.0, %v2756_v20 }
 0x6e2   : > { %2625 = vrot.lane.b32.xlu1 %v10523_v23, %s8851_s30  ;;  %v2797_v25 = vsel %vm10542_vm2, %v2676_v41, %v2777_v38  ;;  %v2798_v44 = vsel %vm10546_vm3, %v2677_v48, %v2778_v37  ;;  %v2709_v41 = vsel %vm2706_vm14, %v2707_v7, %v2708_v31  ;;  %v2421_v38 = vpop.permute.xlu0 %2420 }
 0x6e3   : > { %v2475_v6 = vpop.permute.xlu1 %2474  ;;  %v2981_v30 = vadd.f32 %v10009_v55, %v2797_v25  ;;  %v2986_v40 = vadd.f32 %v10005_v47, %v2798_v44  ;;  %v2775_v55 = vsel %vm10529_vm15, 0.0, %v2709_v41  ;;  %v2755_v47 = vsel %vm2706_vm14, %v2708_v31, %v2707_v7 }
 0x6e4   : > { %v2508_v22 = vsel %vm2492_vm8, %v2427_v3, %v2475_v6  ;;  %v2795_v48 = vsel %vm10542_vm2, %v2674_v9, %v2775_v55  ;;  %v2776_v39 = vsel %vm10536_vm1, 0.0, %v2755_v47 }
 0x6e5   : > { %v10569_v56 = vsel %vm2514_vm9, %v2508_v22, %v10392_v2  ;;  %v2892_v2 = vadd.f32 %v9995_v35, %v2795_v48  ;;  %v2796_v21 = vsel %vm10546_vm3, %v2675_v32, %v2776_v39 }
 0x6e6   : > { %2581 = vrot.lane.b32.xlu1 %v10569_v56, %s8850_s2  ;;  %v2897_v3 = vadd.f32 %v9987_v11, %v2796_v21  ;;  %v2469_v37 = vpop.permute.xlu0 %2468 }
 0x6e7   : > { %v10586_v29 = vmul.f32 0.17677669, %v2892_v2  ;;  %v2505_v35 = vsel %vm2492_vm8, %v2421_v38, %v2469_v37 }
 0x6e8   : > { %v10591_v20 = vmul.f32 0.17677669, %v2897_v3  ;;  %v10599_v32 = vsel %vm2513_vm10, %v2505_v35, %v10397_v1 }
 0x6e9   : > { %v3539_v50 = vsel %vm1644_vm0, %v10586_v29, -inf }
 0x6ea   : > { %2629 = vrot.lane.b32.xlu1 %v10569_v56, %s8851_s30  ;;  %v3542_v9 = vsel %vm1644_vm0, %v10591_v20, -inf  ;;  %v2425_v25 = vpop.permute.xlu0 %2424 }
 0x6ee   : > { %v2473_v7 = vpop.permute.xlu0 %2472 }
 0x6f9   : > { %3540 = vmax.xlane.f32.xlu0 %v3539_v50  ;;  %v10614_v50 = vmul.f32 0.17677669, %v2981_v30 }
 0x6fb   : > { %v3545_v30 = vsel %vm1644_vm0, %v10614_v50, -inf }
 0x6fd   : > { %3543 = vmax.xlane.f32.xlu0 %v3542_v9 }
 0x713   : > { %2575 = vrot.lane.b32.xlu0 %v10599_v32, %s8850_s2 }
 0x717   : > { %2623 = vrot.lane.b32.xlu0 %v10599_v32, %s8851_s30 }
 0x718   : > { %v2562_v11 = vpop.permute.xlu1 %2561 }
 0x71c   : > { %v2610_v44 = vpop.permute.xlu1 %2609 }
 0x71d   : > { %v2653_v31 = vsel %vm2647_vm11, %v2562_v11, %v2610_v44  ;;  %v10628_v44 = vmul.f32 0.17677669, %v2986_v40 }
 0x71e   : > { %v2679_v41 = vsel %vm2669_vm12, %v2653_v31, %v10421_v0 }
 0x71f   : > { %v2714_v39 = vrot.slane %v2679_v41, 1 }
 0x720   : > { %v2570_v6 = vpop.permute.xlu1 %2569 }
 0x724   : > { %v2618_v47 = vpop.permute.xlu1 %2617 }
 0x725   : > { %v2657_v3 = vsel %vm2647_vm11, %v2570_v6, %v2618_v47 }
 0x726   : > { %v2683_v37 = vsel %vm2669_vm12, %v2657_v3, %v10431_v43 }
 0x727   : > { %v2720_v31 = vrot.slane %v2683_v37, 1 }
 0x728   : > { %v2560_v22 = vpop.permute.xlu0 %2559 }
 0x72c   : > { %v2608_v1 = vpop.permute.xlu0 %2607 }
 0x72d   : > { %v2652_v55 = vsel %vm2647_vm11, %v2560_v22, %v2608_v1 }
 0x72e   : > { %v2678_v48 = vsel %vm2668_vm13, %v2652_v55, %v10441_v4 }
 0x72f   : > { %v2713_v2 = vrot.slane %v2678_v48, 1 }
 0x730   : > { %v2568_v21 = vpop.permute.xlu0 %2567 }
 0x731   : > { %v2757_v9 = vsel %vm2706_vm14, %v2714_v39, %v2713_v2 }
 0x732   : > { %v2780_v0 = vsel %vm10536_vm1, 0.0, %v2757_v9 }
 0x733   : > { %v2800_v38 = vsel %vm10546_vm3, %v2679_v41, %v2780_v0  ;;  %v2507_v0 = vsel %vm2492_vm8, %v2425_v25, %v2473_v7 }
 0x734   : > { %v2616_v4 = vpop.permute.xlu0 %2615  ;;  %v3075_v35 = vadd.f32 %v10018_v13, %v2800_v38  ;;  %v3548_v13 = vsel %vm1644_vm0, %v10628_v44, -inf }
 0x735   : > { %v2656_v11 = vsel %vm2647_vm11, %v2568_v21, %v2616_v4  ;;  %v10653_v4 = vsel %vm2513_vm10, %v2507_v0, %v10411_v15 }
 0x736   : > { %v2682_v6 = vsel %vm2668_vm13, %v2656_v11, %v10453_v10  ;;  %3546 = vmax.xlane.f32.xlu0 %v3545_v30  ;;  %v10633_v22 = vmul.f32 0.17677669, %v3075_v35 }
 0x737   : > { %v2719_v41 = vrot.slane %v2682_v6, 1 }
 0x738   : > { %v3554_v43 = vsel %vm1644_vm0, %v10633_v22, -inf  ;;  %v2566_v9 = vpop.permute.xlu1 %2565 }
 0x739   : > { %3555 = vmax.xlane.f32.xlu1 %v3554_v43  ;;  %v2759_v1 = vsel %vm2706_vm14, %v2720_v31, %v2719_v41 }
 0x73a   : > { %3549 = vmax.xlane.f32.xlu0 %v3548_v13  ;;  %v2784_v40 = vsel %vm10536_vm1, 0.0, %v2759_v1 }
 0x73b   : > { %v2804_v10 = vsel %vm10546_vm3, %v2683_v37, %v2784_v40  ;;  %v2715_v40 = vsel %vm2706_vm14, %v2713_v2, %v2714_v39 }
 0x73c   : > { %v3253_v55 = vadd.f32 %v10049_v14, %v2804_v10  ;;  %v2614_v14 = vpop.permute.xlu1 %2613 }
 0x73d   : > { %v2655_v11 = vsel %vm2647_vm11, %v2566_v9, %v2614_v14 }
 0x73e   : > { %v10645_v47 = vmul.f32 0.17677669, %v3253_v55 }
 0x740   : > { %v3566_v21 = vsel %vm1644_vm0, %v10645_v47, -inf  ;;  %v2564_v3 = vpop.permute.xlu0 %2563  ;;  %v2574_v35 = vpop.permute.xlu1 %2573 }
 0x741   : > { %3567 = vmax.xlane.f32.xlu1 %v3566_v21 }
 0x744   : > { %v2612_v38 = vpop.permute.xlu0 %2611  ;;  %v2622_v52 = vpop.permute.xlu1 %2621 }
 0x745   : > { %v2654_v25 = vsel %vm2647_vm11, %v2564_v3, %v2612_v38  ;;  %v2659_v43 = vsel %vm2647_vm11, %v2574_v35, %v2622_v52  ;;  %v2721_v3 = vsel %vm2706_vm14, %v2719_v41, %v2720_v31 }
 0x746   : > { %v2680_v15 = vsel %vm2668_vm13, %v2654_v25, %v10479_v46  ;;  %v10680_v46 = vsel %vm2669_vm12, %v2659_v43, %v10474_v26  ;;  %v2783_v26 = vsel %vm10529_vm15, 0.0, %v2721_v3 }
 0x747   : > { %v2716_v13 = vrot.slane %v2680_v15, 1  ;;  %v2803_v41 = vsel %vm10542_vm2, %v2682_v6, %v2783_v26 }
 0x748   : > { %v2572_v37 = vpop.permute.xlu0 %2571  ;;  %v3248_v25 = vadd.f32 %v10051_v58, %v2803_v41 }
 0x74c   : > { %v2620_v7 = vpop.permute.xlu0 %2619 }
 0x74d   : > { %v2658_v30 = vsel %vm2647_vm11, %v2572_v37, %v2620_v7 }
 0x74e   : > { %v10674_v1 = vsel %vm2668_vm13, %v2658_v30, %v10496_v5  ;;  %v2723_v5 = vrot.slane %v10680_v46, 1  ;;  %v10719_v30 = vmul.f32 0.17677669, %v3248_v25 }
 0x74f   : > { %v2722_v55 = vrot.slane %v10674_v1, 1 }
 0x750   : > { %2579 = vrot.lane.b32.xlu0 %v10653_v4, %s8850_s2 }
 0x751   : > { %v2760_v9 = vsel %vm2706_vm14, %v2723_v5, %v2722_v55 }
 0x752   : > { %8095 = vrot.lane.b32.xlu1 %v9609_v59, %s8841_s29  ;;  %v2681_v59 = vsel %vm2669_vm12, %v2655_v11, %v10463_v33  ;;  %v2779_v33 = vsel %vm10529_vm15, 0.0, %v2715_v40 }
 0x753   : > { %v2717_v10 = vrot.slane %v2681_v59, 1  ;;  %v2799_v39 = vsel %vm10542_vm2, %v2678_v48, %v2779_v33  ;;  %v2786_v48 = vsel %vm10536_vm1, 0.0, %v2760_v9 }
 0x754   : > { %2627 = vrot.lane.b32.xlu0 %v10653_v4, %s8851_s30  ;;  %v3070_v38 = vadd.f32 %v10020_v63, %v2799_v39  ;;  %v2806_v63 = vsel %vm10546_vm3, %v10680_v46, %v2786_v48  ;;  %s11317_s30 = sld [smem:[#allocation60_spill]] }
 0x755   : > { %v2758_v21 = vsel %vm2706_vm14, %v2717_v10, %v2716_v13  ;;  %v2718_v0 = vsel %vm2706_vm14, %v2716_v13, %v2717_v10  ;;  %v3342_v11 = vadd.f32 %v10073_v57, %v2806_v63  ;;  %v2578_v13 = vpop.permute.xlu1 %2577 }
 0x756   : > { %v2782_v2 = vsel %vm10536_vm1, 0.0, %v2758_v21  ;;  %v2781_v14 = vsel %vm10529_vm15, 0.0, %v2718_v0  ;;  %v10706_v35 = vmul.f32 0.17677669, %v3070_v38 }
 0x757   : > { %v2802_v31 = vsel %vm10546_vm3, %v2681_v59, %v2782_v2  ;;  %v2801_v7 = vsel %vm10542_vm2, %v2680_v15, %v2781_v14  ;;  %v10724_v59 = vmul.f32 0.17677669, %v3342_v11  ;;  %v3563_v15 = vsel %vm1644_vm0, %v10719_v30, -inf }
 0x758   : > { %v3164_v37 = vadd.f32 %v10055_v53, %v2802_v31  ;;  %v3551_v52 = vsel %vm1644_vm0, %v10706_v35, -inf  ;;  %v3159_v53 = vadd.f32 %v10059_v8, %v2801_v7  ;;  %v2724_v7 = vsel %vm2706_vm14, %v2722_v55, %v2723_v5 }
 0x759   : > { %v3572_v57 = vsel %vm1644_vm0, %v10724_v59, -inf  ;;  %v2626_v46 = vpop.permute.xlu1 %2625  ;;  %v2785_v11 = vsel %vm10529_vm15, 0.0, %v2724_v7 }
 0x75a   : > { %v10714_v6 = vmul.f32 0.17677669, %v3164_v37  ;;  %v10728_v43 = vmul.f32 0.17677669, %v3159_v53  ;;  %v2661_v21 = vsel %vm2647_vm11, %v2578_v13, %v2626_v46 }
 0x75b   : > { %v2687_v3 = vsel %vm2669_vm12, %v2661_v21, %v10523_v23 }
 0x75c   : > { %v3560_v58 = vsel %vm1644_vm0, %v10714_v6, -inf  ;;  %v3557_v8 = vsel %vm1644_vm0, %v10728_v43, -inf  ;;  %v2726_v9 = vrot.slane %v2687_v3, 1 }
 0x75d   : > { %v2582_v55 = vpop.permute.xlu1 %2581 }
 0x773   : > { %3552 = vmax.xlane.f32.xlu0 %v3551_v52 }
 0x776   : > { %3561 = vmax.xlane.f32.xlu1 %v3560_v58 }
 0x777   : > { %3564 = vmax.xlane.f32.xlu0 %v3563_v15  ;;  %v2630_v15 = vpop.permute.xlu1 %2629 }
 0x778   : > { %v2663_v46 = vsel %vm2647_vm11, %v2582_v55, %v2630_v15 }
 0x77a   : > { %3573 = vmax.xlane.f32.xlu1 %v3572_v57 }
 0x77b   : > { %3558 = vmax.xlane.f32.xlu0 %v3557_v8 }
 0x786   : > { %v3541_v40 = vpop.xlane.xlu0 %3540 }
 0x787   : > { %v3587_v8 = vsub.f32 %v10586_v29, %v3541_v40 }
 0x789   : > { %v3603_v21 = vmul.f32 1.442695, %v3587_v8 }
 0x78a   : > { %v3544_v10 = vpop.xlane.xlu0 %3543 }
 0x78b   : > { %v3588_v13 = vsub.f32 %v10591_v20, %v3544_v10  ;;  %8167 = vpow2.f32 %v3603_v21 }
 0x78e   : > { %v2576_v33 = vpop.permute.xlu0 %2575 }
 0x791   : > { %8090 = vrot.lane.b32.xlu0 %v9552_v12, %s8841_s29 }
 0x792   : > { %v2624_v39 = vpop.permute.xlu0 %2623 }
 0x793   : > { %v2660_v2 = vsel %vm2647_vm11, %v2576_v33, %v2624_v39  ;;  %v3605_v39 = vmul.f32 1.442695, %v3588_v13 }
 0x794   : > { %v2686_v26 = vsel %vm2668_vm13, %v2660_v2, %v10599_v32 }
 0x795   : > { %v2725_v0 = vrot.slane %v2686_v26, 1  ;;  %8169 = vpow2.f32 %v3605_v39  ;;  %v10804_v54 = vpop.eup %8167 }
 0x796   : > { %v3635_v27 = vsel %vm1644_vm0, %v10804_v54, 0.0 }
 0x797   : > { %v2727_v38 = vsel %vm2706_vm14, %v2725_v0, %v2726_v9  ;;  %v2761_v31 = vsel %vm2706_vm14, %v2726_v9, %v2725_v0 }
 0x798   : > { %v2787_v12 = vsel %vm10529_vm15, 0.0, %v2727_v38  ;;  %v2788_v41 = vsel %vm10536_vm1, 0.0, %v2761_v31 }
 0x799   : > { %v2807_v23 = vsel %vm10542_vm2, %v2686_v26, %v2787_v12  ;;  %v2808_v48 = vsel %vm10546_vm3, %v2687_v3, %v2788_v41  ;;  %v2689_v3 = vsel %vm2669_vm12, %v2663_v46, %v10569_v56 }
 0x79a   : > { %v3426_v32 = vadd.f32 %v10071_v51, %v2807_v23  ;;  %v3431_v14 = vadd.f32 %v10069_v49, %v2808_v48  ;;  %v2805_v49 = vsel %vm10542_vm2, %v10674_v1, %v2785_v11  ;;  %v2729_v29 = vrot.slane %v2689_v3, 1 }
 0x79b   : > { %v3337_v51 = vadd.f32 %v10075_v60, %v2805_v49 }
 0x79c   : > { %v10756_v37 = vmul.f32 0.17677669, %v3426_v32  ;;  %v10760_v63 = vmul.f32 0.17677669, %v3431_v14 }
 0x79d   : > { %v10771_v53 = vmul.f32 0.17677669, %v3337_v51 }
 0x79e   : > { %v3575_v25 = vsel %vm1644_vm0, %v10756_v37, -inf  ;;  %v3578_v52 = vsel %vm1644_vm0, %v10760_v63, -inf }
 0x79f   : > { %3576 = vmax.xlane.f32.xlu1 %v3575_v25  ;;  %v3569_v58 = vsel %vm1644_vm0, %v10771_v53, -inf  ;;  %v10810_v48 = vpop.eup %8169 }
 0x7a3   : > { %3579 = vmax.xlane.f32.xlu1 %v3578_v52 }
 0x7b0   : > { %3570 = vmax.xlane.f32.xlu0 %v3569_v58 }
 0x7c3   : > { %v3547_v5 = vpop.xlane.xlu0 %3546 }
 0x7c4   : > { %v3589_v60 = vsub.f32 %v10614_v50, %v3547_v5 }
 0x7c6   : > { %v3556_v33 = vpop.xlane.xlu1 %3555  ;;  %v3607_v20 = vmul.f32 1.442695, %v3589_v60 }
 0x7c7   : > { %v3550_v57 = vpop.xlane.xlu0 %3549  ;;  %v3592_v2 = vsub.f32 %v10633_v22, %v3556_v33 }
 0x7c8   : > { %v3590_v50 = vsub.f32 %v10628_v44, %v3550_v57  ;;  %8171 = vpow2.f32 %v3607_v20 }
 0x7c9   : > { %v3613_v10 = vmul.f32 1.442695, %v3592_v2 }
 0x7ca   : > { %v3609_v31 = vmul.f32 1.442695, %v3590_v50 }
 0x7cb   : > { %v2580_v1 = vpop.permute.xlu0 %2579  ;;  %8173 = vpow2.f32 %v3613_v10 }
 0x7cc   : > { %8175 = vpow2.f32 %v3609_v31 }
 0x7ce   : > { %v3568_v58 = vpop.xlane.xlu1 %3567 }
 0x7cf   : > { %v2628_v26 = vpop.permute.xlu0 %2627  ;;  %v3596_v15 = vsub.f32 %v10645_v47, %v3568_v58 }
 0x7d0   : > { %v2662_v9 = vsel %vm2647_vm11, %v2580_v1, %v2628_v26 }
 0x7d1   : > { %v2688_v40 = vsel %vm2668_vm13, %v2662_v9, %v10653_v4  ;;  %v3621_v13 = vmul.f32 1.442695, %v3596_v15 }
 0x7d2   : > { %v2728_v0 = vrot.slane %v2688_v40, 1  ;;  %v10852_v39 = vpop.permute.xlu1 %8095 }
 0x7d4   : > { %v2762_v16 = vsel %vm2706_vm14, %v2729_v29, %v2728_v0  ;;  %v2730_v56 = vsel %vm2706_vm14, %v2728_v0, %v2729_v29 }
 0x7d5   : > { %v2790_v22 = vsel %vm10536_vm1, 0.0, %v2762_v16  ;;  %v2789_v38 = vsel %vm10529_vm15, 0.0, %v2730_v56 }
 0x7d6   : > { %v2810_v34 = vsel %vm10546_vm3, %v2689_v3, %v2790_v22  ;;  %v2809_v44 = vsel %vm10542_vm2, %v2688_v40, %v2789_v38 }
 0x7d7   : > { %v3520_v4 = vadd.f32 %v10077_v61, %v2810_v34  ;;  %v3515_v12 = vadd.f32 %v10079_v36, %v2809_v44  ;;  %v10812_v61 = vpop.eup %8171  ;;  %v3638_v36 = vsel %vm1644_vm0, %v10810_v48, 0.0 }
 0x7d8   : > { %v10818_v32 = vpop.eup %8173  ;;  %v3641_v25 = vsel %vm1644_vm0, %v10812_v61, 0.0 }
 0x7d9   : > { %v10800_v41 = vmul.f32 0.17677669, %v3520_v4  ;;  %v10802_v23 = vmul.f32 0.17677669, %v3515_v12  ;;  %v3650_v14 = vsel %vm1644_vm0, %v10818_v32, 0.0  ;;  %v10824_v7 = vpop.eup %8175 }
 0x7da   : > { %v3644_v11 = vsel %vm1644_vm0, %v10824_v7, 0.0 }
 0x7db   : > { %v3584_v28 = vsel %vm1644_vm0, %v10800_v41, -inf  ;;  %v3581_v24 = vsel %vm1644_vm0, %v10802_v23, -inf }
 0x7dc   : > { %3585 = vmax.xlane.f32.xlu1 %v3584_v28  ;;  %3582 = vmax.xlane.f32.xlu0 %v3581_v24 }
 0x7e0   : > { %3639 = vadd.xlane.f32.xlu1 %v3638_v36  ;;  %3636 = vadd.xlane.f32.xlu0 %v3635_v27 }
 0x7e4   : > { %3651 = vadd.xlane.f32.xlu1 %v3650_v14  ;;  %3642 = vadd.xlane.f32.xlu0 %v3641_v25 }
 0x7e8   : > { %3645 = vadd.xlane.f32.xlu0 %v3644_v11 }
 0x7f5   : > { %8105 = vrot.lane.b32.xlu1 %v9654_v17, %s8840_s4 }
 0x7f9   : > { %8110 = vrot.lane.b32.xlu1 %v9639_v45, %s8842_s17 }
 0x800   : > { %v3553_v52 = vpop.xlane.xlu0 %3552 }
 0x801   : > { %v3591_v49 = vsub.f32 %v10706_v35, %v3553_v52 }
 0x803   : > { %v3611_v51 = vmul.f32 1.442695, %v3591_v49  ;;  %v3562_v2 = vpop.xlane.xlu1 %3561 }
 0x804   : > { %v3565_v55 = vpop.xlane.xlu0 %3564  ;;  %v3594_v9 = vsub.f32 %v10714_v6, %v3562_v2 }
 0x805   : > { %8177 = vpow2.f32 %v3611_v51  ;;  %v3595_v5 = vsub.f32 %v10719_v30, %v3565_v55 }
 0x806   : > { %v3617_v20 = vmul.f32 1.442695, %v3594_v9 }
 0x807   : > { %v3619_v57 = vmul.f32 1.442695, %v3595_v5  ;;  %v3574_v26 = vpop.xlane.xlu1 %3573 }
 0x808   : > { %v3559_v8 = vpop.xlane.xlu0 %3558  ;;  %v3598_v40 = vsub.f32 %v10724_v59, %v3574_v26 }
 0x809   : > { %8179 = vpow2.f32 %v3619_v57  ;;  %v3593_v46 = vsub.f32 %v10728_v43, %v3559_v8 }
 0x80a   : > { %8181 = vpow2.f32 %v3621_v13  ;;  %v3625_v50 = vmul.f32 1.442695, %v3598_v40 }
 0x80b   : > { %v3615_v1 = vmul.f32 1.442695, %v3593_v46 }
 0x80c   : > { %v10858_v10 = vpop.permute.xlu0 %8090 }
 0x80d   : > { %8183 = vpow2.f32 %v3615_v1 }
 0x80e   : > { %8185 = vpow2.f32 %v3617_v20 }
 0x80f   : > { %v10836_v33 = vpop.eup %8177  ;;  %8187 = vpow2.f32 %v3625_v50  ;;  %v8057_v50 = vunpack.i.l.bf16 %v9814_v42 }
 0x810   : > { %v3647_v35 = vsel %vm1644_vm0, %v10836_v33, 0.0 }
 0x811   : > { %3648 = vadd.xlane.f32.xlu0 %v3647_v35 }
 0x813   : > { %v10840_v21 = vpop.eup %8179 }
 0x814   : > { %v3659_v47 = vsel %vm1644_vm0, %v10840_v21, 0.0  ;;  %v10844_v30 = vpop.eup %8181 }
 0x815   : > { %3660 = vadd.xlane.f32.xlu0 %v3659_v47  ;;  %v3662_v43 = vsel %vm1644_vm0, %v10844_v30, 0.0 }
 0x817   : > { %v10848_v60 = vpop.eup %8183 }
 0x818   : > { %v3653_v3 = vsel %vm1644_vm0, %v10848_v60, 0.0  ;;  %v10863_v44 = vpop.eup %8185 }
 0x819   : > { %v3656_v59 = vsel %vm1644_vm0, %v10863_v44, 0.0  ;;  %v10867_v4 = vpop.eup %8187 }
 0x81d   : > { %3663 = vadd.xlane.f32.xlu1 %v3662_v43 }
 0x821   : > { %3654 = vadd.xlane.f32.xlu1 %v3653_v3 }
 0x82b   : > { %8100 = vrot.lane.b32.xlu0 %v9639_v45, %s8840_s4 }
 0x82c   : > { %v3577_v29 = vpop.xlane.xlu1 %3576 }
 0x82d   : > { %v3599_v0 = vsub.f32 %v10756_v37, %v3577_v29 }
 0x82f   : > { %v3627_v38 = vmul.f32 1.442695, %v3599_v0 }
 0x830   : > { %v3580_v16 = vpop.xlane.xlu1 %3579 }
 0x831   : > { %v3600_v31 = vsub.f32 %v10760_v63, %v3580_v16 }
 0x833   : > { %v3629_v6 = vmul.f32 1.442695, %v3600_v31 }
 0x83d   : > { %v3571_v56 = vpop.xlane.xlu0 %3570 }
 0x83e   : > { %v3597_v22 = vsub.f32 %v10771_v53, %v3571_v56  ;;  %v3668_v53 = vsel %vm1644_vm0, %v10867_v4, 0.0 }
 0x840   : > { %v3623_v34 = vmul.f32 1.442695, %v3597_v22 }
 0x842   : > { %8189 = vpow2.f32 %v3623_v34 }
 0x843   : > { %8191 = vpow2.f32 %v3627_v38 }
 0x844   : > { %8193 = vpow2.f32 %v3629_v6  ;;  %v8093_v6 = vunpack.i.h.bf16 %v10858_v10 }
 0x84a   : > { %3657 = vadd.xlane.f32.xlu0 %v3656_v59  ;;  %v8092_v59 = vunpack.i.l.bf16 %v10858_v10  ;;  %v8098_v10 = vunpack.i.h.bf16 %v10852_v39 }
 0x84c   : > { %v10869_v37 = vpop.eup %8189 }
 0x84d   : > { %v3665_v63 = vsel %vm1644_vm0, %v10869_v37, 0.0  ;;  %v10875_v12 = vpop.eup %8191 }
 0x84e   : > { %3669 = vadd.xlane.f32.xlu0 %v3668_v53  ;;  %3666 = vadd.xlane.f32.xlu1 %v3665_v63  ;;  %v3671_v28 = vsel %vm1644_vm0, %v10875_v12, 0.0  ;;  %v10879_v24 = vpop.eup %8193  ;;  %v7370_v63 = vpack.c.bf16 %v8093_v6, %v8092_v59  ;;  %v4431_v6 = vld [vmem:[#allocation12 + $0x30] sm:$0xff]  ;;  %v4432_v59 = vld [vmem:[#allocation12 + $0x38] sm:$0xff] }
 0x84f   : > { %v3674_v36 = vsel %vm1644_vm0, %v10879_v24, 0.0 }
 0x852   : > { %3672 = vadd.xlane.f32.xlu1 %v3671_v28  ;;  %v8097_v28 = vunpack.i.l.bf16 %v10852_v39 }
 0x856   : > { %3675 = vadd.xlane.f32.xlu1 %v3674_v36 }
 0x867   : > { %8115 = vrot.lane.b32.xlu1 %v9654_v17, %s8842_s17 }
 0x869   : > { %v3586_v27 = vpop.xlane.xlu1 %3585  ;;  %v3583_v14 = vpop.xlane.xlu0 %3582 }
 0x86a   : > { %v3602_v25 = vsub.f32 %v10800_v41, %v3586_v27  ;;  %v3601_v58 = vsub.f32 %v10802_v23, %v3583_v14  ;;  %v7374_v27 = vpack.c.bf16 %v8098_v10, %v8097_v28  ;;  %v4434_v10 = vld [vmem:[#allocation12 + $0x48] sm:$0xff]  ;;  %v4435_v28 = vld [vmem:[#allocation12 + $0x50] sm:$0xff] }
 0x86c   : > { %v3633_v11 = vmul.f32 1.442695, %v3602_v25  ;;  %v3631_v15 = vmul.f32 1.442695, %v3601_v58 }
 0x86d   : > { %v3640_v52 = vpop.xlane.xlu1 %3639  ;;  %v3637_v49 = vpop.xlane.xlu0 %3636 }
 0x86e   : > { %8195 = vpow2.f32 %v3633_v11 }
 0x86f   : > { %8197 = vrcp.f32 %v3640_v52 }
 0x870   : > { %8199 = vrcp.f32 %v3637_v49 }
 0x871   : > { %v3643_v51 = vpop.xlane.xlu0 %3642 }
 0x872   : > { %8201 = vrcp.f32 %v3643_v51 }
 0x875   : > { %v3646_v55 = vpop.xlane.xlu0 %3645 }
 0x876   : > { %8203 = vrcp.f32 %v3646_v55 }
 0x877   : > { %8205 = vpow2.f32 %v3631_v15 }
 0x878   : > { %v10887_v5 = vpop.eup %8195 }
 0x879   : > { %v3680_v57 = vsel %vm1644_vm0, %v10887_v5, 0.0  ;;  %v8198_v8 = vpop.eup %8197 }
 0x87a   : > { %3681 = vadd.xlane.f32.xlu0 %v3680_v57  ;;  %v8200_v41 = vpop.eup %8199  ;;  %v3686_v13 = vmul.f32 %v8198_v8, %v10810_v48 }
 0x87b   : > { %v3684_v46 = vmul.f32 %v8200_v41, %v10804_v54 }
 0x87c   : > { %v8202_v1 = vpop.eup %8201 }
 0x87d   : > { %6844 = vmatprep.mubr.msk.f32.mxu1 %vm1644_vm0, %v3684_v46  ;;  %v3688_v23 = vmul.f32 %v8202_v1, %v10812_v61 }
 0x87e   : > { %6845 = vmatmul.mubr.msk.f32.vlgmr.msra.gmra.mrb[32].mxu1 %vm1644_vm0, %v3686_v13 }
 0x87f   : > { %7333 = vmatpush3.bf16.msra.mxu1 %v9693_v19  ;;  %6855 = vmatprep.mubr.msk.f32.mxu1 %vm1644_vm0, %v3688_v23  ;;  %v3652_v19 = vpop.xlane.xlu1 %3651 }
 0x880   : > { %v8204_v35 = vpop.eup %8203  ;;  %7335 = vmatprep.subr.bf16.mxu1 %v9658_v18  ;;  %8207 = vrcp.f32 %v3652_v19 }
 0x881   : > { %v3690_v47 = vmul.f32 %v8204_v35, %v10824_v7  ;;  %v10901_v54 = vpop.eup %8205 }
 0x882   : > { %v3677_v48 = vsel %vm1644_vm0, %v10901_v54, 0.0 }
 0x883   : > { %7337 = vmatpush3.bf16.msra.mxu1 %v9658_v18  ;;  %v8106_v7 = vpop.permute.xlu1 %8105 }
 0x884   : > { %v8108_v43 = vunpack.i.h.bf16 %v8106_v7  ;;  %v8107_v3 = vunpack.i.l.bf16 %v8106_v7 }
 0x886   : > { %6856 = vmatmul.mubr.msk.f32.vlgmr.msra.gmra.mrb[34].mxu1 %vm1644_vm0, %v3690_v47 }
 0x887   : > { %v8111_v2 = vpop.permute.xlu1 %8110 }
 0x888   : > { %v8113_v38 = vunpack.i.h.bf16 %v8111_v2  ;;  %v8112_v31 = vunpack.i.l.bf16 %v8111_v2 }
 0x88a   : > { %v8208_v20 = vpop.eup %8207  ;;  %v7362_v53 = vpack.c.bf16 %v8113_v38, %v8112_v31  ;;  %v4429_v38 = vld [vmem:[#allocation12 + $0x20] sm:$0xff]  ;;  %v4430_v31 = vld [vmem:[#allocation12 + $0x28] sm:$0xff] }
 0x88b   : > { %3678 = vadd.xlane.f32.xlu1 %v3677_v48  ;;  %v3694_v22 = vmul.f32 %v8208_v20, %v10818_v32 }
 0x890   : > { %8120 = vrot.lane.b32.xlu0 %v9639_v45, %s8841_s29  ;;  %v8058_v45 = vunpack.i.h.bf16 %v9814_v42 }
 0x892   : > { %v7358_v42 = vpack.c.bf16 %v8058_v45, %v8057_v50 }
 0x89c   : > { %8125 = vrot.lane.b32.xlu1 %v9654_v17, %s8841_s29  ;;  %v7350_v17 = vpack.c.bf16 %v8108_v43, %v8107_v3 }
 0x89e   : > { %v3649_v61 = vpop.xlane.xlu0 %3648 }
 0x89f   : > { %8209 = vrcp.f32 %v3649_v61 }
 0x8a2   : > { %v3661_v18 = vpop.xlane.xlu0 %3660 }
 0x8a3   : > { %8211 = vrcp.f32 %v3661_v18 }
 0x8a6   : > { %v8101_v26 = vpop.permute.xlu0 %8100 }
 0x8a7   : > { %v8103_v9 = vunpack.i.h.bf16 %v8101_v26  ;;  %v8102_v29 = vunpack.i.l.bf16 %v8101_v26  ;;  %v11310_v26 = vmov 0.0  }
 0x8a9   : > { %v8210_v40 = vpop.eup %8209  ;;  %v7346_v0 = vpack.c.bf16 %v8103_v9, %v8102_v29 }
 0x8aa   : > { %v3664_v16 = vpop.xlane.xlu1 %3663  ;;  %v3692_v56 = vmul.f32 %v8210_v40, %v10836_v33 }
 0x8ab   : > { %8213 = vrcp.f32 %v3664_v16  ;;  %7347 = vmatprep.subr.bf16.mxu1 %v7346_v0 }
 0x8ac   : > { %6866 = vmatprep.mubr.msk.f32.mxu0 %vm1644_vm0, %v3692_v56  ;;  %7349 = vmatpush3.bf16.msra.mxu1 %v7346_v0  ;;  %v4428_v56 = vld [vmem:[#allocation12 + $0x18] sm:$0xff] }
 0x8ad   : > { %v8212_v34 = vpop.eup %8211  ;;  %6867 = vmatmul.mubr.msk.f32.vlgmr.msra.gmra.mrb[20].mxu0 %vm1644_vm0, %v3694_v22  ;;  %7351 = vmatprep.subr.bf16.mxu1 %v7350_v17 }
 0x8ae   : > { %7357 = vmatpush3.bf16.msra.mxu0 %v9901_v62  ;;  %v3655_v33 = vpop.xlane.xlu1 %3654  ;;  %v3700_v32 = vmul.f32 %v8212_v34, %v10840_v21  ;;  %v7394_v34 = vpack.c.bf16 %v4430_v31, %v4429_v38  ;;  %v4551_v38 = vld [vmem:[#allocation14 + $0xc8] sm:$0xff]  ;;  %v4554_v31 = vld [vmem:[#allocation14 + $0xe0] sm:$0xff] }
 0x8af   : > { %8215 = vrcp.f32 %v3655_v33  ;;  %7359 = vmatprep.subr.bf16.mxu0 %v7358_v42  ;;  %v7398_v33 = vpack.c.bf16 %v4432_v59, %v4431_v6  ;;  %v7434_v6 = vpack.c.bf16 %v4554_v31, %v4551_v38  ;;  %v4550_v59 = vld [vmem:[#allocation14 + $0xc0] sm:$0xff] }
 0x8b0   : > { %7353 = vmatpush3.bf16.msra.mxu1 %v7350_v17  ;;  %6888 = vmatprep.mubr.msk.f32.mxu0 %vm1644_vm0, %v3700_v32  ;;  %v4426_v17 = vld [vmem:[#allocation12 + $0x8] sm:$0xff] }
 0x8b1   : > { %7363 = vmatprep.subr.bf16.mxu1 %v7362_v53 }
 0x8b2   : > { %7361 = vmatpush3.bf16.msra.mxu0 %v7358_v42 }
 0x8b3   : > { %7371 = vmatprep.subr.bf16.mxu0 %v7370_v63 }
 0x8b5   : > { %v8214_v36 = vpop.eup %8213 }
 0x8b6   : > { %v3702_v62 = vmul.f32 %v8214_v36, %v10844_v30 }
 0x8b8   : > { %6889 = vmatmul.mubr.msk.f32.vlgmr.msra.gmra.mrb[22].mxu0 %vm1644_vm0, %v3702_v62  ;;  %v4436_v62 = vld [vmem:[#allocation12 + $0x58] sm:$0xff] }
 0x8b9   : > { %v8216_v21 = vpop.eup %8215  ;;  %7373 = vmatpush3.bf16.msra.mxu0 %v7370_v63  ;;  %v4433_v63 = vld [vmem:[#allocation12 + $0x40] sm:$0xff] }
 0x8ba   : > { %7375 = vmatprep.subr.bf16.mxu0 %v7374_v27  ;;  %v3696_v14 = vmul.f32 %v8216_v21, %v10848_v60  ;;  %v7402_v36 = vpack.c.bf16 %v4434_v10, %v4433_v63  ;;  %v4437_v21 = vld [vmem:[#allocation12 + $0x60] sm:$0xff]  ;;  %v4556_v10 = vld [vmem:[#allocation14 + $0xf0] sm:$0xff] }
 0x8bc   : > { %6877 = vmatprep.mubr.msk.f32.mxu1 %vm1644_vm0, %v3696_v14  ;;  %v4438_v14 = vld [vmem:[#allocation12 + $0x68] sm:$0xff] }
 0x8bd   : > { %7377 = vmatpush3.bf16.msra.mxu0 %v7374_v27  ;;  %v7406_v27 = vpack.c.bf16 %v4436_v62, %v4435_v28  ;;  %v4559_v28 = vld [vmem:[#allocation14 + $0x108] sm:$0xff]  ;;  %v4566_v62 = vld [vmem:[#allocation14 + $0x140] sm:$0xff] }
 0x8d7   : > { %v3658_v25 = vpop.xlane.xlu0 %3657 }
 0x8d8   : > { %8217 = vrcp.f32 %v3658_v25  ;;  %v7410_v25 = vpack.c.bf16 %v4438_v14, %v4437_v21  ;;  %v4562_v14 = vld [vmem:[#allocation14 + $0x120] sm:$0xff] }
 0x8db   : > { %v3667_v11 = vpop.xlane.xlu1 %3666  ;;  %v3670_v52 = vpop.xlane.xlu0 %3669 }
 0x8dc   : > { %8219 = vrcp.f32 %v3667_v11 }
 0x8df   : > { %v3673_v39 = vpop.xlane.xlu1 %3672 }
 0x8e0   : > { %8221 = vrcp.f32 %v3673_v39 }
 0x8e1   : > { %8223 = vrcp.f32 %v3670_v52 }
 0x8e2   : > { %v8218_v30 = vpop.eup %8217 }
 0x8e3   : > { %v3698_v49 = vmul.f32 %v8218_v30, %v10863_v44  ;;  %v3676_v51 = vpop.xlane.xlu1 %3675  ;;  %v4439_v30 = vld [vmem:[#allocation12 + $0x70] sm:$0xff] }
 0x8e4   : > { %8225 = vrcp.f32 %v3676_v51 }
 0x8e5   : > { %6878 = vmatmul.mubr.msk.f32.vlgmr.msra.gmra.mrb[36].mxu1 %vm1644_vm0, %v3698_v49  ;;  %v4440_v49 = vld [vmem:[#allocation12 + $0x78] sm:$0xff] }
 0x8e6   : > { %v8220_v58 = vpop.eup %8219  ;;  %7365 = vmatpush3.bf16.msra.mxu1 %v7362_v53  ;;  %v7414_v51 = vpack.c.bf16 %v4440_v49, %v4439_v30  ;;  %v4568_v49 = vld [vmem:[#allocation14 + $0x150] sm:$0xff] }
 0x8e7   : > { %v8116_v60 = vpop.permute.xlu1 %8115  ;;  %v3704_v55 = vmul.f32 %v8220_v58, %v10869_v37 }
 0x8e8   : > { %v8118_v15 = vunpack.i.h.bf16 %v8116_v60  ;;  %v8117_v57 = vunpack.i.l.bf16 %v8116_v60 }
 0x8e9   : > { %6899 = vmatprep.mubr.msk.f32.mxu1 %vm1644_vm0, %v3704_v55 }
 0x8ea   : > { %v8222_v8 = vpop.eup %8221  ;;  %v7366_v41 = vpack.c.bf16 %v8118_v15, %v8117_v57 }
 0x8eb   : > { %v8224_v13 = vpop.eup %8223  ;;  %v3708_v46 = vmul.f32 %v8222_v8, %v10875_v12 }
 0x8ec   : > { %7367 = vmatprep.subr.bf16.mxu1 %v7366_v41  ;;  %v3706_v1 = vmul.f32 %v8224_v13, %v10867_v4  ;;  %v4530_v13 = vld [vmem:[#allocation14 + $0x20] sm:$0xff] }
 0x8ed   : > { %7369 = vmatpush3.bf16.msra.mxu1 %v7366_v41  ;;  %6910 = vmatprep.mubr.msk.f32.mxu0 %vm1644_vm0, %v3708_v46  ;;  %v4527_v41 = vld [vmem:[#allocation14 + $0x8] sm:$0xff]  ;;  %v4526_v46 = vld [vmem:[#allocation14] sm:$0xff] }
 0x8ee   : > { %v8226_v44 = vpop.eup %8225 }
 0x8ef   : > { %v3710_v23 = vmul.f32 %v8226_v44, %v10879_v24  ;;  %v7418_v44 = vpack.c.bf16 %v4530_v13, %v4527_v41 }
 0x8f0   : > { %6900 = vmatmul.mubr.msk.f32.vlgmr.msra.gmra.mrb[38].mxu1 %vm1644_vm0, %v3706_v1  ;;  %v4529_v1 = vld [vmem:[#allocation14 + $0x18] sm:$0xff] }
 0x8f1   : > { %6911 = vmatmul.mubr.msk.f32.vlgmr.msra.gmra.mrb[24].mxu0 %vm1644_vm0, %v3710_v23  ;;  %v4528_v23 = vld [vmem:[#allocation14 + $0x10] sm:$0xff] }
 0x907   : > { %v3682_v37 = vpop.xlane.xlu0 %3681 }
 0x908   : > { %8227 = vrcp.f32 %v3682_v37  ;;  %v4531_v37 = vld [vmem:[#allocation14 + $0x28] sm:$0xff] }
 0x90b   : > { %v8121_v35 = vpop.permute.xlu0 %8120 }
 0x90c   : > { %v8123_v47 = vunpack.i.h.bf16 %v8121_v35  ;;  %v8122_v48 = vunpack.i.l.bf16 %v8121_v35  ;;  %v7420_v35 = vpack.c.bf16 %v4529_v1, %v4526_v46  ;;  %v4534_v46 = vld [vmem:[#allocation14 + $0x40] sm:$0xff] }
 0x90e   : > { %v7378_v19 = vpack.c.bf16 %v8123_v47, %v8122_v48  ;;  %v10955_v47 = vpack.c.bf16 %v4531_v37, %v4528_v23  ;;  %v4533_v48 = vld [vmem:[#allocation14 + $0x38] sm:$0xff] }
 0x910   : > { %7379 = vmatprep.subr.bf16.mxu1 %v7378_v19 }
 0x911   : > { %7381 = vmatpush3.bf16.msra.mxu1 %v7378_v19  ;;  %v4536_v19 = vld [vmem:[#allocation14 + $0x50] sm:$0xff] }
 0x912   : > { %v8228_v24 = vpop.eup %8227 }
 0x913   : > { %v3714_v2 = vmul.f32 %v8228_v24, %v10887_v5  ;;  %v4427_v5 = vld [vmem:[#allocation12 + $0x10] sm:$0xff]  ;;  %v4542_v24 = vld [vmem:[#allocation14 + $0x80] sm:$0xff] }
 0x914   : > { %v7390_v22 = vpack.c.bf16 %v4428_v56, %v4427_v5  ;;  %v4544_v56 = vld [vmem:[#allocation14 + $0x90] sm:$0xff] }
 0x918   : > { %v3679_v12 = vpop.xlane.xlu1 %3678 }
 0x919   : > { %8229 = vrcp.f32 %v3679_v12  ;;  %v4532_v12 = vld [vmem:[#allocation14 + $0x30] sm:$0xff] }
 0x91c   : > { %v8126_v61 = vpop.permute.xlu1 %8125 }
 0x91d   : > { %v8128_v7 = vunpack.i.h.bf16 %v8126_v61  ;;  %v8127_v18 = vunpack.i.l.bf16 %v8126_v61  ;;  %v7422_v61 = vpack.c.bf16 %v4536_v19, %v4533_v48 }
 0x91f   : > { %v7382_v4 = vpack.c.bf16 %v8128_v7, %v8127_v18  ;;  %v4535_v7 = vld [vmem:[#allocation14 + $0x48] sm:$0xff] }
 0x920   : > { %v7424_v18 = vpack.c.bf16 %v4535_v7, %v4532_v12 }
 0x921   : > { %7383 = vmatprep.subr.bf16.mxu1 %v7382_v4 }
 0x922   : > { %7385 = vmatpush3.bf16.msra.mxu1 %v7382_v4  ;;  %v4539_v4 = vld [vmem:[#allocation14 + $0x68] sm:$0xff] }
 0x923   : > { %v8230_v43 = vpop.eup %8229  ;;  %7419 = vmatprep.subr.bf16.mxu1 %v7418_v44  ;;  %v4537_v44 = vld [vmem:[#allocation14 + $0x58] sm:$0xff] }
 0x924   : > { %v3712_v3 = vmul.f32 %v8230_v43, %v10901_v54  ;;  %v4425_v54 = vld [vmem:[#allocation12] sm:$0xff]  ;;  %v7454_v7 = vpack.c.bf16 %v4537_v44, %v4534_v46  ;;  %v4587_v46 = vld [vmem:[#allocation15 + $0x68] sm:$0xff]  ;;  %v4589_v44 = vld [vmem:[#allocation15 + $0x78] sm:$0xff] }
 0x925   : > { %v7386_v16 = vpack.c.bf16 %v4426_v17, %v4425_v54  ;;  %v4548_v54 = vld [vmem:[#allocation14 + $0xb0] sm:$0xff] }
 0x926   : > { %6921 = vmatprep.mubr.msk.f32.mxu1 %vm1644_vm0, %v3712_v3  ;;  %v7426_v3 = vpack.c.bf16 %v4542_v24, %v4539_v4  ;;  %v4543_v4 = vld [vmem:[#allocation14 + $0x88] sm:$0xff]  ;;  %v4546_v24 = vld [vmem:[#allocation14 + $0xa0] sm:$0xff] }
 0x927   : > { %6922 = vmatmul.mubr.msk.f32.vlgmr.msra.gmra.mrb[40].mxu1 %vm1644_vm0, %v3714_v2  ;;  %7387 = vmatprep.subr.bf16.mxu0 %v7386_v16  ;;  %v4538_v2 = vld [vmem:[#allocation14 + $0x60] sm:$0xff] }
 0x928   : > { %4703 = vmatprep.mubr.f32.mxu1 %v11310_v26  ;;  %7389 = vmatpush3.bf16.msra.mxu0 %v7386_v16 }
 0x929   : > { %7391 = vmatprep.subr.bf16.mxu0 %v7390_v22  ;;  %7421 = vmatpush1.bf16.msra.mxu1 %v7420_v35 }
 0x92a   : > { %7423 = vmatprep.subr.bf16.mxu1 %v7422_v61 }
 0x92c   : > { %7393 = vmatpush3.bf16.msra.mxu0 %v7390_v22  ;;  %v4547_v22 = vld [vmem:[#allocation14 + $0xa8] sm:$0xff] }
 0x92d   : > { %7395 = vmatprep.subr.bf16.mxu0 %v7394_v34  ;;  %7425 = vmatpush1.bf16.msra.mxu1 %v7424_v18  ;;  %v4540_v18 = vld [vmem:[#allocation14 + $0x70] sm:$0xff] }
 0x92e   : > { %7427 = vmatprep.subr.bf16.mxu1 %v7426_v3  ;;  %v4552_v3 = vld [vmem:[#allocation14 + $0xd0] sm:$0xff] }
 0x930   : > { %7397 = vmatpush3.bf16.msra.mxu0 %v7394_v34  ;;  %v7432_v34 = vpack.c.bf16 %v4547_v22, %v4544_v56  ;;  %v4573_v56 = vld [vmem:[#allocation14 + $0x178] sm:$0xff] }
 0x931   : > { %7399 = vmatprep.subr.bf16.mxu0 %v7398_v33 }
 0x934   : > { %7401 = vmatpush3.bf16.msra.mxu0 %v7398_v33  ;;  %v4557_v33 = vld [vmem:[#allocation14 + $0xf8] sm:$0xff] }
 0x935   : > { %7403 = vmatprep.subr.bf16.mxu0 %v7402_v36 }
 0x938   : > { %7405 = vmatpush3.bf16.msra.mxu0 %v7402_v36  ;;  %v4563_v36 = vld [vmem:[#allocation14 + $0x128] sm:$0xff] }
 0x939   : > { %7407 = vmatprep.subr.bf16.mxu0 %v7406_v27  ;;  %v7442_v21 = vpack.c.bf16 %v4566_v62, %v4563_v36 }
 0x93c   : > { %7409 = vmatpush3.bf16.msra.mxu0 %v7406_v27  ;;  %v7440_v27 = vpack.c.bf16 %v4559_v28, %v4556_v10 }
 0x93d   : > { %7411 = vmatprep.subr.bf16.mxu0 %v7410_v25 }
 0x940   : > { %7413 = vmatpush3.bf16.msra.mxu0 %v7410_v25  ;;  %v4565_v25 = vld [vmem:[#allocation14 + $0x138] sm:$0xff] }
 0x941   : > { %7415 = vmatprep.subr.bf16.mxu0 %v7414_v51 }
 0x944   : > { %7417 = vmatpush3.bf16.msra.mxu0 %v7414_v51  ;;  %v4571_v51 = vld [vmem:[#allocation14 + $0x168] sm:$0xff] }
 0x945   : > { %7451 = vmatprep.subr.bf16.mxu0 %v10955_v47 }
 0x951   : > { %v10942_v9 = vpop.f32.mrb[32].mxu1 }
 0x952   : > { %v10944_v29 = vpop.f32.mrb[33].mxu1 }
 0x959   : > { %v10946_v20 = vpop.f32.mrb[34].mxu1 }
 0x95a   : > { %v10948_v40 = vpop.f32.mrb[35].mxu1 }
 0x980   : > { %v6868_v45 = vpop.f32.mrb[20].mxu0 }
 0x981   : > { %v3949_v50 = vpop.f32.mrb[21].mxu0 }
 0x982   : > { %v8129_v0 = vpack.i.bf16 %v6868_v45, %v3949_v50  ;;  %v4541_v45 = vld [vmem:[#allocation14 + $0x78] sm:$0xff] }
 0x983   : > { %v7428_v5 = vpack.c.bf16 %v4541_v45, %v4538_v2  ;;  %v4555_v2 = vld [vmem:[#allocation14 + $0xe8] sm:$0xff] }
 0x984   : > { %8130 = vrot.lane.b32.xlu0 %v8129_v0, %s8841_s29  ;;  %v4545_v0 = vld [vmem:[#allocation14 + $0x98] sm:$0xff]  ;;  %v7466_v45 = vpack.c.bf16 %v4555_v2, %v4552_v3  ;;  %v4596_v3 = vld [vmem:[#allocation15 + $0xb0] sm:$0xff]  ;;  %v4599_v2 = vld [vmem:[#allocation15 + $0xc8] sm:$0xff] }
 0x985   : > { %v7430_v16 = vpack.c.bf16 %v4548_v54, %v4545_v0  ;;  %7429 = vmatpush1.bf16.msra.mxu1 %v7428_v5  ;;  %v4561_v0 = vld [vmem:[#allocation14 + $0x118] sm:$0xff]  ;;  %v4567_v5 = vld [vmem:[#allocation14 + $0x148] sm:$0xff] }
 0x987   : > { %7431 = vmatprep.subr.bf16.mxu1 %v7430_v16  ;;  %v4570_v16 = vld [vmem:[#allocation14 + $0x160] sm:$0xff] }
 0x988   : > { %v7478_v22 = vpack.c.bf16 %v4573_v56, %v4570_v16 }
 0x989   : > { %7433 = vmatpush1.bf16.msra.mxu1 %v7432_v34 }
 0x98a   : > { %7435 = vmatprep.subr.bf16.mxu1 %v7434_v6 }
 0x98b   : > { %v6890_v42 = vpop.f32.mrb[22].mxu0 }
 0x98c   : > { %v4111_v32 = vpop.f32.mrb[23].mxu0 }
 0x98d   : > { %v8134_v53 = vpack.i.bf16 %v6890_v42, %v4111_v32  ;;  %v4553_v42 = vld [vmem:[#allocation14 + $0xd8] sm:$0xff]  ;;  %v4560_v32 = vld [vmem:[#allocation14 + $0x110] sm:$0xff] }
 0x98e   : > { %v7438_v63 = vpack.c.bf16 %v4560_v32, %v4557_v33 }
 0x98f   : > { %8135 = vrot.lane.b32.xlu1 %v8134_v53, %s8842_s17  ;;  %v7436_v53 = vpack.c.bf16 %v4553_v42, %v4550_v59 }
 0x991   : > { %7437 = vmatpush1.bf16.msra.mxu1 %v7436_v53 }
 0x992   : > { %7439 = vmatprep.subr.bf16.mxu1 %v7438_v63 }
 0x995   : > { %7441 = vmatpush1.bf16.msra.mxu1 %v7440_v27 }
 0x996   : > { %7443 = vmatprep.subr.bf16.mxu1 %v7442_v21  ;;  %v4575_v21 = vld [vmem:[#allocation15 + $0x8] sm:$0xff] }
 0x9b8   : > { %v6879_v11 = vpop.f32.mrb[36].mxu1 }
 0x9b9   : > { %v4030_v52 = vpop.f32.mrb[37].mxu1 }
 0x9ba   : > { %v8144_v39 = vpack.i.bf16 %v6879_v11, %v4030_v52  ;;  %v4569_v11 = vld [vmem:[#allocation14 + $0x158] sm:$0xff]  ;;  %v4572_v52 = vld [vmem:[#allocation14 + $0x170] sm:$0xff] }
 0x9bb   : > { %v7446_v30 = vpack.c.bf16 %v4572_v52, %v4569_v11  ;;  %v4574_v11 = vld [vmem:[#allocation15] sm:$0xff]  ;;  %v4576_v52 = vld [vmem:[#allocation15 + $0x10] sm:$0xff] }
 0x9bc   : > { %8145 = vrot.lane.b32.xlu1 %v8144_v39, %s8841_s29  ;;  %v7444_v39 = vpack.c.bf16 %v4565_v25, %v4562_v14  ;;  %v4577_v14 = vld [vmem:[#allocation15 + $0x18] sm:$0xff]  ;;  %s11311_s29 = sld [smem:[#allocation54_spill]] }
 0x9bd   : > { %v7482_v25 = vpack.c.bf16 %v4577_v14, %v4575_v21  ;;  %v4611_v21 = vld [vmem:[#allocation17 + $0x28] sm:$0xff] }
 0x9be   : > { %7445 = vmatpush1.bf16.msra.mxu1 %v7444_v39  ;;  %v4581_v39 = vld [vmem:[#allocation15 + $0x38] sm:$0xff] }
 0x9bf   : > { %7447 = vmatprep.subr.bf16.mxu1 %v7446_v30 }
 0x9c3   : > { %v6901_v58 = vpop.f32.mrb[38].mxu1 }
 0x9c4   : > { %v4192_v60 = vpop.f32.mrb[39].mxu1  ;;  %v6912_v55 = vpop.f32.mrb[24].mxu0 }
 0x9c5   : > { %v8149_v15 = vpack.i.bf16 %v6901_v58, %v4192_v60  ;;  %v4273_v57 = vpop.f32.mrb[25].mxu0  ;;  %v7448_v58 = vpack.c.bf16 %v4571_v51, %v4568_v49 }
 0x9c6   : > { %v8139_v8 = vpack.i.bf16 %v6912_v55, %v4273_v57 }
 0x9c7   : > { %7449 = vmatpush1.bf16.msra.mxu1 %v7448_v58  ;;  %v4578_v58 = vld [vmem:[#allocation15 + $0x20] sm:$0xff] }
 0x9c8   : > { %8140 = vrot.lane.b32.xlu0 %v8139_v8, %s8840_s4  ;;  %7483 = vmatprep.subr.bf16.mxu1 %v7482_v25  ;;  %v4612_v25 = vld [vmem:[#allocation17 + $0x30] sm:$0xff] }
 0x9cc   : > { %8150 = vrot.lane.b32.xlu0 %v8149_v15, %s8842_s17  ;;  %s971_s17 = scalar_lea.vmem [#allocation26], %s9425_s11 }
 0x9f6   : > { %v8131_v60 = vpop.permute.xlu0 %8130 }
 0x9f7   : > { %v8133_v15 = vunpack.i.h.bf16 %v8131_v60  ;;  %v8132_v57 = vunpack.i.l.bf16 %v8131_v60  ;;  %v4580_v60 = vld [vmem:[#allocation15 + $0x30] sm:$0xff] }
 0x9f9   : > { %v4412_v1 = vsel %vm1644_vm0, %v10942_v9, %v8133_v15  ;;  %v4411_v35 = vsel %vm1644_vm0, %v10944_v29, %v8132_v57  ;;  %v7458_v9 = vpack.c.bf16 %v4543_v4, %v4540_v18  ;;  %v4585_v15 = vld [vmem:[#allocation15 + $0x58] sm:$0xff]  ;;  %v7488_v57 = vpack.c.bf16 %v4580_v60, %v4578_v58  ;;  %v4592_v18 = vld [vmem:[#allocation15 + $0x90] sm:$0xff]  ;;  %v4595_v4 = vld [vmem:[#allocation15 + $0xa8] sm:$0xff] }
 0x9fa   : > { %v6923_v43 = vpop.f32.mrb[40].mxu1  ;;  %v4618_v58 = vld [vmem:[#allocation17 + $0x60] sm:$0xff]  ;;  %v4619_v60 = vld [vmem:[#allocation17 + $0x68] sm:$0xff] }
 0x9fb   : > { %v4354_v50 = vpop.f32.mrb[41].mxu1 }
 0x9fc   : > { %v8154_v17 = vpack.i.bf16 %v6923_v43, %v4354_v50  ;;  %v4549_v43 = vld [vmem:[#allocation14 + $0xb8] sm:$0xff]  ;;  %v4558_v50 = vld [vmem:[#allocation14 + $0x100] sm:$0xff] }
 0x9fd   : > { %v7462_v29 = vpack.c.bf16 %v4549_v43, %v4546_v24  ;;  %v7470_v54 = vpack.c.bf16 %v4561_v0, %v4558_v50 }
 0x9fe   : > { %8155 = vrot.lane.b32.xlu1 %v8154_v17, %s8840_s4  ;;  %v4564_v17 = vld [vmem:[#allocation14 + $0x130] sm:$0xff] }
 0xa01   : > { %v8136_v55 = vpop.permute.xlu1 %8135 }
 0xa02   : > { %v8138_v8 = vunpack.i.h.bf16 %v8136_v55  ;;  %v8137_v41 = vunpack.i.l.bf16 %v8136_v55  ;;  %v4583_v55 = vld [vmem:[#allocation15 + $0x48] sm:$0xff] }
 0xa04   : > { %v4416_v48 = vsel %vm4415_vm4, %v4411_v35, %v8137_v41  ;;  %v4417_v19 = vsel %vm4415_vm4, %v4412_v1, %v8138_v8  ;;  %v7490_v8 = vpack.c.bf16 %v4585_v15, %v4583_v55  ;;  %v4582_v41 = vld [vmem:[#allocation15 + $0x40] sm:$0xff]  ;;  %v4588_v35 = vld [vmem:[#allocation15 + $0x70] sm:$0xff]  ;;  %v7538_v55 = vpack.c.bf16 %v4619_v60, %v4618_v58 }
 0xa05   : > { %v4620_v15 = vld [vmem:[#allocation17 + $0x70] sm:$0xff] }
 0xa2e   : > { %v8146_v38 = vpop.permute.xlu1 %8145 }
 0xa2f   : > { %v8148_v34 = vunpack.i.h.bf16 %v8146_v38  ;;  %v8147_v6 = vunpack.i.l.bf16 %v8146_v38  ;;  %v4604_v38 = vld [vmem:[#allocation15 + $0xf0] sm:$0xff] }
 0xa31   : > { %v4413_v63 = vsel %vm1644_vm0, %v10948_v40, %v8147_v6  ;;  %v4414_v10 = vsel %vm1644_vm0, %v10946_v20, %v8148_v34  ;;  %v4579_v40 = vld [vmem:[#allocation15 + $0x28] sm:$0xff]  ;;  %v7484_v20 = vpack.c.bf16 %v4576_v52, %v4574_v11  ;;  %v4613_v11 = vld [vmem:[#allocation17 + $0x38] sm:$0xff] }
 0xa32   : > { %v7486_v51 = vpack.c.bf16 %v4581_v39, %v4579_v40  ;;  %v7526_v52 = vpack.c.bf16 %v4613_v11, %v4612_v25  ;;  %v4614_v40 = vld [vmem:[#allocation17 + $0x40] sm:$0xff]  ;;  %v4615_v39 = vld [vmem:[#allocation17 + $0x48] sm:$0xff] }
 0xa3a   : > { %v8141_v13 = vpop.permute.xlu0 %8140 }
 0xa3b   : > { %v8143_v23 = vunpack.i.h.bf16 %v8141_v13  ;;  %v8142_v37 = vunpack.i.l.bf16 %v8141_v13  ;;  %v4584_v13 = vld [vmem:[#allocation15 + $0x50] sm:$0xff] }
 0xa3c   : > { %v7492_v1 = vpack.c.bf16 %v4584_v13, %v4582_v41  ;;  %v11003_v41 = vld [vmem:[%s11311_s29] sm:$0x7]  ;;  %v11312_v13 = vld [vmem:[#allocation40_spill] sm:$0xff]  ;;  %s11318_s29 = sld [smem:[#allocation61_spill]] }
 0xa3d   : > { %v4421_v12 = vsel %vm4420_vm5, %v4416_v48, %v8142_v37  ;;  %v4422_v61 = vsel %vm4420_vm5, %v4417_v19, %v8143_v23  ;;  %v7494_v23 = vpack.c.bf16 %v4589_v44, %v4587_v46  ;;  %v4586_v37 = vld [vmem:[#allocation15 + $0x60] sm:$0xff]  ;;  %v4591_v48 = vld [vmem:[#allocation15 + $0x88] sm:$0xff]  ;;  %v4593_v19 = vld [vmem:[#allocation15 + $0x98] sm:$0xff]  ;;  %v4627_v46 = vrot.slane %v11003_v41, %v11312_v13 }
 0xa3e   : > { %6956 = vmatprep.mubr.f32.mxu0 %v4421_v12  ;;  %v8151_v31 = vpop.permute.xlu0 %8150  ;;  %v7496_v12 = vpack.c.bf16 %v4588_v35, %v4586_v37 }
 0xa3f   : > { %6957 = vmatmul.mubr.f32.vlgmr.msra.gmra.mrb[26].mxu0 %v4422_v61  ;;  %v8153_v59 = vunpack.i.h.bf16 %v8151_v31  ;;  %v8152_v42 = vunpack.i.l.bf16 %v8151_v31  ;;  %v7498_v61 = vpack.c.bf16 %v4593_v19, %v4591_v48 }
 0xa40   : > { %7453 = vmatpush3.bf16.msra.mxu0 %v10955_v47  ;;  %v7474_v47 = vpack.c.bf16 %v4567_v5, %v4564_v17  ;;  %v4600_v17 = vld [vmem:[#allocation15 + $0xd0] sm:$0xff]  ;;  %v4603_v5 = vld [vmem:[#allocation15 + $0xe8] sm:$0xff] }
 0xa41   : > { %7455 = vmatprep.subr.bf16.mxu0 %v7454_v7  ;;  %v4418_v28 = vsel %vm4415_vm4, %v4413_v63, %v8152_v42  ;;  %v4419_v36 = vsel %vm4415_vm4, %v4414_v10, %v8153_v59  ;;  %v10981_v59 = vld [vmem:[%s9429_s0] sm:$0xff]  ;;  %v10986_v42 = vld [vmem:[%s9429_s0 + $0x8] sm:$0xff] }
 0xa42   : > { %v4607_v63 = vld [vmem:[#allocation17 + $0x8] sm:$0xff] }
 0xa44   : > { %7457 = vmatpush3.bf16.msra.mxu0 %v7454_v7  ;;  %v4590_v7 = vld [vmem:[#allocation15 + $0x80] sm:$0xff] }
 0xa45   : > { %7459 = vmatprep.subr.bf16.mxu0 %v7458_v9  ;;  %v7500_v24 = vpack.c.bf16 %v4592_v18, %v4590_v7 }
 0xa48   : > { %7461 = vmatpush3.bf16.msra.mxu0 %v7458_v9  ;;  %v4597_v9 = vld [vmem:[#allocation15 + $0xb8] sm:$0xff] }
 0xa49   : > { %7463 = vmatprep.subr.bf16.mxu0 %v7462_v29  ;;  %v7502_v43 = vpack.c.bf16 %v4597_v9, %v4595_v4 }
 0xa4c   : > { %7465 = vmatpush3.bf16.msra.mxu0 %v7462_v29  ;;  %v4594_v29 = vld [vmem:[#allocation15 + $0xa0] sm:$0xff] }
 0xa4d   : > { %7467 = vmatprep.subr.bf16.mxu0 %v7466_v45  ;;  %v7504_v50 = vpack.c.bf16 %v4596_v3, %v4594_v29 }
 0xa50   : > { %7469 = vmatpush3.bf16.msra.mxu0 %v7466_v45  ;;  %v4601_v45 = vld [vmem:[#allocation15 + $0xd8] sm:$0xff] }
 0xa51   : > { %7471 = vmatprep.subr.bf16.mxu0 %v7470_v54  ;;  %v7506_v0 = vpack.c.bf16 %v4601_v45, %v4599_v2 }
 0xa54   : > { %7473 = vmatpush3.bf16.msra.mxu0 %v7470_v54  ;;  %v4598_v54 = vld [vmem:[#allocation15 + $0xc0] sm:$0xff] }
 0xa55   : > { %7475 = vmatprep.subr.bf16.mxu0 %v7474_v47  ;;  %v7508_v16 = vpack.c.bf16 %v4600_v17, %v4598_v54 }
 0xa58   : > { %7477 = vmatpush3.bf16.msra.mxu0 %v7474_v47  ;;  %v4605_v47 = vld [vmem:[#allocation15 + $0xf8] sm:$0xff] }
 0xa59   : > { %7479 = vmatprep.subr.bf16.mxu0 %v7478_v22  ;;  %v7510_v56 = vpack.c.bf16 %v4605_v47, %v4603_v5 }
 0xa5c   : > { %7481 = vmatpush3.bf16.msra.mxu0 %v7478_v22  ;;  %v4602_v22 = vld [vmem:[#allocation15 + $0xe0] sm:$0xff] }
 0xa5d   : > { %v7512_v31 = vpack.c.bf16 %v4604_v38, %v4602_v22 }
 0xa70   : > { %v8156_v33 = vpop.permute.xlu1 %8155 }
 0xa71   : > { %v8158_v32 = vunpack.i.h.bf16 %v8156_v33  ;;  %v8157_v53 = vunpack.i.l.bf16 %v8156_v33  ;;  %v10991_v33 = vld [vmem:[%s9429_s0 + $0x10] sm:$0xff] }
 0xa73   : > { %v4423_v62 = vsel %vm4420_vm5, %v4418_v28, %v8157_v53  ;;  %v4424_v27 = vsel %vm4420_vm5, %v4419_v36, %v8158_v32  ;;  %v10996_v32 = vld [vmem:[%s9429_s0 + $0x18] sm:$0xff]  ;;  %v4606_v53 = vld [vmem:[#allocation17] sm:$0xff]  ;;  %v4608_v28 = vld [vmem:[#allocation17 + $0x10] sm:$0xff] }
 0xa74   : > { %6959 = vmatprep.mubr.f32.mxu0 %v4423_v62  ;;  %v7514_v10 = vpack.c.bf16 %v4607_v63, %v4606_v53  ;;  %v4609_v36 = vld [vmem:[#allocation17 + $0x18] sm:$0xff]  ;;  %v11313_v53 = vld [vmem:[#allocation39_spill] sm:$0xff] }
 0xa75   : > { %6960 = vmatmul.mubr.f32.gmra.mrb[28].mxu0 %v4424_v27  ;;  %v7518_v62 = vpack.c.bf16 %v4609_v36, %v4608_v28  ;;  %v4610_v27 = vld [vmem:[#allocation17 + $0x20] sm:$0xff]  ;;  %v11012_v63 = vsub.s32 1, %v11313_v53  ;;  %v4634_v58 = vsub.s32 2, %v11313_v53 }
 0xa76   : > { %7515 = vmatprep.subr.bf16.mxu0 %v7514_v10  ;;  %v7522_v14 = vpack.c.bf16 %v4611_v21, %v4610_v27 }
 0xb12   : > { %v6958_v30 = vpop.f32.mrb[26].mxu0 }
 0xb13   : > { %v4507_v49 = vpop.f32.mrb[27].mxu0 }
 0xb14   : > { %4704 = vmatmul.mubr.f32.vlgmr.msra.gmra.mrb[42].mxu1 %v4507_v49  ;;  %6994 = vmatprep.mubr.f32.mxu0 %v4507_v49  ;;  %v4617_v49 = vld [vmem:[#allocation17 + $0x58] sm:$0xff] }
 0xb15   : > { %6995 = vmatmul.mubr.f32.vlgmr.msra.gmra.mrb[30].mxu0 %v6958_v30  ;;  %4709 = vmatprep.mubr.f32.mxu1 %v11310_v26 }
 0xb16   : > { %7485 = vmatpush1.bf16.msra.mxu1 %v7484_v20  ;;  %7517 = vmatpush3.bf16.msra.mxu0 %v7514_v10  ;;  %v4616_v20 = vld [vmem:[#allocation17 + $0x50] sm:$0xff]  ;;  %v4631_v10 = vrot.slane %v11003_v41, %v11012_v63 }
 0xb17   : > { %7487 = vmatprep.subr.bf16.mxu1 %v7486_v51  ;;  %7519 = vmatprep.subr.bf16.mxu0 %v7518_v62  ;;  %v7534_v51 = vpack.c.bf16 %v4617_v49, %v4616_v20 }
 0xb18   : > { %4710 = vmatmul.mubr.f32.gmra.mrb[44].mxu1 %v6958_v30  ;;  %v7530_v30 = vpack.c.bf16 %v4615_v39, %v4614_v40 }
 0xb19   : > { %4715 = vmatprep.mubr.f32.mxu1 %v11310_v26 }
 0xb1a   : > { %7489 = vmatpush1.bf16.msra.mxu1 %v7488_v57  ;;  %7521 = vmatpush3.bf16.msra.mxu0 %v7518_v62  ;;  %v4621_v57 = vld [vmem:[#allocation17 + $0x78] sm:$0xff] }
 0xb1b   : > { %7491 = vmatprep.subr.bf16.mxu1 %v7490_v8  ;;  %7523 = vmatprep.subr.bf16.mxu0 %v7522_v14  ;;  %v7542_v8 = vpack.c.bf16 %v4621_v57, %v4620_v15 }
 0xb1e   : > { %7493 = vmatpush1.bf16.msra.mxu1 %v7492_v1  ;;  %7525 = vmatpush3.bf16.msra.mxu0 %v7522_v14 }
 0xb1f   : > { %7495 = vmatprep.subr.bf16.mxu1 %v7494_v23  ;;  %7527 = vmatprep.subr.bf16.mxu0 %v7526_v52 }
 0xb22   : > { %7497 = vmatpush1.bf16.msra.mxu1 %v7496_v12  ;;  %7529 = vmatpush3.bf16.msra.mxu0 %v7526_v52 }
 0xb23   : > { %7499 = vmatprep.subr.bf16.mxu1 %v7498_v61  ;;  %7531 = vmatprep.subr.bf16.mxu0 %v7530_v30 }
 0xb26   : > { %7501 = vmatpush1.bf16.msra.mxu1 %v7500_v24  ;;  %7533 = vmatpush3.bf16.msra.mxu0 %v7530_v30 }
 0xb27   : > { %7503 = vmatprep.subr.bf16.mxu1 %v7502_v43  ;;  %7535 = vmatprep.subr.bf16.mxu0 %v7534_v51 }
 0xb2a   : > { %7505 = vmatpush1.bf16.msra.mxu1 %v7504_v50  ;;  %7537 = vmatpush3.bf16.msra.mxu0 %v7534_v51 }
 0xb2b   : > { %7507 = vmatprep.subr.bf16.mxu1 %v7506_v0  ;;  %7539 = vmatprep.subr.bf16.mxu0 %v7538_v55 }
 0xb2e   : > { %7509 = vmatpush1.bf16.msra.mxu1 %v7508_v16  ;;  %7541 = vmatpush3.bf16.msra.mxu0 %v7538_v55  ;;  %v4635_v55 = vrot.slane %v11003_v41, %v4634_v58 }
 0xb2f   : > { %7511 = vmatprep.subr.bf16.mxu1 %v7510_v56  ;;  %7543 = vmatprep.subr.bf16.mxu0 %v7542_v8 }
 0xb32   : > { %7513 = vmatpush1.bf16.msra.mxu1 %v7512_v31  ;;  %7545 = vmatpush3.bf16.msra.mxu0 %v7542_v8 }
 0xb48   : > { %v6961_v34 = vpop.f32.mrb[28].mxu0 }
 0xb49   : > { %v4517_v6 = vpop.f32.mrb[29].mxu0 }
 0xb4a   : > { %4716 = vmatmul.mubr.f32.gmra.mrb[46].mxu1 %v4517_v6  ;;  %6997 = vmatprep.mubr.f32.mxu0 %v4517_v6 }
 0xb4b   : > { %6998 = vmatmul.mubr.f32.gmra.mrb[32].mxu0 %v6961_v34  ;;  %4721 = vmatprep.mubr.f32.mxu1 %v11310_v26 }
 0xb4e   : > { %4722 = vmatmul.mubr.f32.gmra.mrb[48].mxu1 %v6961_v34 }
 0xb4f   : > { %4877 = vmatprep.mubr.f32.mxu1 %v11310_v26 }
 0xb52   : > { %4878 = vmatmul.mubr.f32.vlgmr.msra.gmra.mrb[42].mxu1 %v10981_v59 }
 0xb53   : > { %4883 = vmatprep.mubr.f32.mxu1 %v11310_v26 }
 0xb56   : > { %4884 = vmatmul.mubr.f32.gmra.mrb[44].mxu1 %v10986_v42 }
 0xb57   : > { %4889 = vmatprep.mubr.f32.mxu1 %v11310_v26 }
 0xb5a   : > { %4890 = vmatmul.mubr.f32.gmra.mrb[46].mxu1 %v10991_v33 }
 0xb5b   : > { %4895 = vmatprep.mubr.f32.mxu1 %v11310_v26 }
 0xb5e   : > { %4896 = vmatmul.mubr.f32.gmra.mrb[48].mxu1 %v10996_v32 }
 0xb5f   : > { %5249 = vmatprep.mubr.f32.mxu1 %v11310_v26 }
 0xc25   : > { %v4879_v44 = vpop.f32.mrb[42].mxu1 }
 0xc26   : > { %v7738_v1 = vadd.f32 %v4879_v44, %v4627_v46  ;;  %v4881_v23 = vpop.f32.mrb[43].mxu1 }
 0xc27   : > { %v7739_v36 = vadd.f32 %v4881_v23, %v4631_v10 }
 0xc28   : > { %v6323_v37 = vmul.f32 -1.442695, %v7738_v1 }
 0xc29   : > { %v4885_v35 = vpop.f32.mrb[44].mxu1  ;;  %v6327_v27 = vadd.f32 -0.1, %v7739_v36  ;;  %v5146_v36 = vld [vmem:[#allocation18 + $0x28] sm:$0xff] }
 0xc2a   : > { %8231 = vpow2.f32 %v6323_v37  ;;  %v7740_v48 = vadd.f32 %v4885_v35, %v4627_v46  ;;  %v4887_v19 = vpop.f32.mrb[45].mxu1 }
 0xc2b   : > { %v7741_v28 = vadd.f32 %v4887_v19, %v4631_v10  ;;  %v6331_v25 = vmul.f32 -1.442695, %v6327_v27 }
 0xc2c   : > { %v6324_v12 = vmul.f32 -1.442695, %v7740_v48 }
 0xc2d   : > { %v4891_v61 = vpop.f32.mrb[46].mxu1  ;;  %v6328_v62 = vadd.f32 -0.1, %v7741_v28  ;;  %v5143_v28 = vld [vmem:[#allocation18 + $0x10] sm:$0xff] }
 0xc2e   : > { %8233 = vpow2.f32 %v6324_v12  ;;  %v7742_v7 = vadd.f32 %v4891_v61, %v4627_v46  ;;  %v4893_v18 = vpop.f32.mrb[47].mxu1 }
 0xc2f   : > { %v6332_v21 = vmul.f32 -1.442695, %v6328_v62  ;;  %v7743_v11 = vadd.f32 %v4893_v18, %v4631_v10  ;;  %v5148_v62 = vld [vmem:[#allocation18 + $0x38] sm:$0xff] }
 0xc30   : > { %v6325_v4 = vmul.f32 -1.442695, %v7742_v7 }
 0xc31   : > { %v4897_v9 = vpop.f32.mrb[48].mxu1  ;;  %v6329_v40 = vadd.f32 -0.1, %v7743_v11 }
 0xc32   : > { %8235 = vpow2.f32 %v6325_v4  ;;  %v7744_v24 = vadd.f32 %v4897_v9, %v4627_v46  ;;  %v4899_v43 = vpop.f32.mrb[49].mxu1 }
 0xc33   : > { %v7745_v14 = vadd.f32 %v4899_v43, %v4631_v10  ;;  %v6333_v30 = vmul.f32 -1.442695, %v6329_v40  ;;  %v5149_v40 = vld [vmem:[#allocation18 + $0x40] sm:$0xff] }
 0xc34   : > { %v8232_v29 = vpop.eup %8231  ;;  %v6326_v3 = vmul.f32 -1.442695, %v7744_v24 }
 0xc35   : > { %v4918_v2 = vadd.f32 1.0, %v8232_v29  ;;  %v6330_v52 = vadd.f32 -0.1, %v7745_v14  ;;  %v5147_v14 = vld [vmem:[#allocation18 + $0x30] sm:$0xff] }
 0xc36   : > { %8237 = vpow2.f32 %v6326_v3 }
 0xc37   : > { %8239 = vrcp.f32 %v4918_v2  ;;  %v6334_v39 = vmul.f32 -1.442695, %v6330_v52 }
 0xc38   : > { %v8234_v45 = vpop.eup %8233 }
 0xc39   : > { %v4919_v50 = vadd.f32 1.0, %v8234_v45 }
 0xc3b   : > { %8241 = vrcp.f32 %v4919_v50 }
 0xc3c   : > { %v8236_v0 = vpop.eup %8235 }
 0xc3d   : > { %v4920_v54 = vadd.f32 1.0, %v8236_v0 }
 0xc3f   : > { %8243 = vrcp.f32 %v4920_v54 }
 0xc40   : > { %v8238_v17 = vpop.eup %8237 }
 0xc41   : > { %v8240_v5 = vpop.eup %8239  ;;  %v4921_v47 = vadd.f32 1.0, %v8238_v17 }
 0xc42   : > { %v4962_v16 = vmul.f32 %v10981_v59, %v8240_v5 }
 0xc43   : > { %8245 = vrcp.f32 %v4921_v47 }
 0xc44   : > { %7032 = vmatprep.mubr.f32.mxu0 %v4962_v16  ;;  %8247 = vpow2.f32 %v6332_v21  ;;  %v5145_v21 = vld [vmem:[#allocation18 + $0x20] sm:$0xff] }
 0xc45   : > { %v8242_v56 = vpop.eup %8241  ;;  %8249 = vpow2.f32 %v6331_v25  ;;  %v5152_v25 = vld [vmem:[#allocation18 + $0x58] sm:$0xff]  ;;  %v7552_v11 = vpack.c.bf16 %v5147_v14, %v5145_v21  ;;  %v5298_v21 = vld [vmem:[#allocation20 + $0x80] sm:$0xff]  ;;  %v5299_v14 = vld [vmem:[#allocation20 + $0x88] sm:$0xff] }
 0xc46   : > { %v4963_v22 = vmul.f32 %v10986_v42, %v8242_v56  ;;  %8251 = vpow2.f32 %v6334_v39  ;;  %v5151_v39 = vld [vmem:[#allocation18 + $0x50] sm:$0xff] }
 0xc47   : > { %8253 = vpow2.f32 %v6333_v30  ;;  %v7556_v30 = vpack.c.bf16 %v5151_v39, %v5149_v40  ;;  %v5301_v40 = vld [vmem:[#allocation20 + $0x98] sm:$0xff] }
 0xc48   : > { %7033 = vmatmul.mubr.f32.vlgmr.msra.gmra.mrb[30].mxu0 %v4963_v22 }
 0xc49   : > { %v8244_v38 = vpop.eup %8243 }
 0xc4a   : > { %v4964_v31 = vmul.f32 %v10991_v33, %v8244_v38 }
 0xc4c   : > { %7035 = vmatprep.mubr.f32.mxu0 %v4964_v31  ;;  %v5142_v31 = vld [vmem:[#allocation18 + $0x8] sm:$0xff] }
 0xc4d   : > { %v8246_v34 = vpop.eup %8245 }
 0xc4e   : > { %v4965_v6 = vmul.f32 %v10996_v32, %v8246_v34  ;;  %v8248_v20 = vpop.eup %8247  ;;  %v5144_v34 = vld [vmem:[#allocation18 + $0x18] sm:$0xff] }
 0xc4f   : > { %v8250_v49 = vpop.eup %8249  ;;  %v4951_v51 = vadd.f32 1.0, %v8248_v20  ;;  %v7546_v10 = vpack.c.bf16 %v5144_v34, %v5142_v31  ;;  %v5165_v31 = vld [vmem:[#allocation18 + $0xc0] sm:$0xff]  ;;  %v5167_v34 = vld [vmem:[#allocation18 + $0xd0] sm:$0xff] }
 0xc50   : > { %7036 = vmatmul.mubr.f32.gmra.mrb[32].mxu0 %v4965_v6  ;;  %v4950_v60 = vadd.f32 1.0, %v8250_v49  ;;  %v8252_v15 = vpop.eup %8251  ;;  %v5141_v6 = vld [vmem:[#allocation18] sm:$0xff] }
 0xc51   : > { %8255 = vrcp.f32 %v4951_v51  ;;  %v8254_v57 = vpop.eup %8253  ;;  %v4953_v46 = vadd.f32 1.0, %v8252_v15  ;;  %v7548_v27 = vpack.c.bf16 %v5143_v28, %v5141_v6  ;;  %7547 = vmatprep.subr.bf16.mxu1 %v7546_v10  ;;  %v7572_v6 = vpack.c.bf16 %v5167_v34, %v5165_v31  ;;  %v5170_v10 = vld [vmem:[#allocation18 + $0xe8] sm:$0xff]  ;;  %v5172_v28 = vld [vmem:[#allocation18 + $0xf8] sm:$0xff] }
 0xc52   : > { %8257 = vrcp.f32 %v4950_v60  ;;  %v4952_v23 = vadd.f32 1.0, %v8254_v57 }
 0xc53   : > { %7549 = vmatpush1.bf16.msra.mxu1 %v7548_v27  ;;  %v5171_v27 = vld [vmem:[#allocation18 + $0xf0] sm:$0xff] }
 0xc5b   : > { %v8256_v35 = vpop.eup %8255 }
 0xc5c   : > { %v8258_v48 = vpop.eup %8257  ;;  %v5060_v41 = vsub.f32 1.0, %v8256_v35 }
 0xc5d   : > { %v5059_v18 = vsub.f32 1.0, %v8258_v48 }
 0xc5e   : > { %v5064_v43 = vmul.f32 %v10986_v42, %v5060_v41  ;;  %v5153_v41 = vld [vmem:[#allocation18 + $0x60] sm:$0xff] }
 0xc5f   : > { %v5063_v2 = vmul.f32 %v10981_v59, %v5059_v18  ;;  %v5155_v18 = vld [vmem:[#allocation18 + $0x70] sm:$0xff] }
 0xd1b   : > { %v7034_v8 = vpop.f32.mrb[30].mxu0 }
 0xd1c   : > { %v7746_v44 = vadd.f32 %v7034_v8, %v4635_v55  ;;  %v5032_v1 = vpop.f32.mrb[31].mxu0 }
 0xd1d   : > { %v7747_v37 = vadd.f32 %v5032_v1, %v4635_v55 }
 0xd1e   : > { %8259 = vtanh.f32 %v7746_v44 }
 0xd1f   : > { %8261 = vtanh.f32 %v7747_v37 }
 0xd20   : > { %8263 = vrcp.f32 %v4953_v46 }
 0xd21   : > { %8265 = vrcp.f32 %v4952_v23 }
 0xd23   : > { %v7037_v19 = vpop.f32.mrb[32].mxu0 }
 0xd24   : > { %v7748_v12 = vadd.f32 %v7037_v19, %v4635_v55  ;;  %v5042_v61 = vpop.f32.mrb[33].mxu0 }
 0xd25   : > { %v7749_v7 = vadd.f32 %v5042_v61, %v4635_v55  ;;  %v5156_v61 = vld [vmem:[#allocation18 + $0x78] sm:$0xff] }
 0xd26   : > { %8267 = vtanh.f32 %v7748_v12  ;;  %v5154_v12 = vld [vmem:[#allocation18 + $0x68] sm:$0xff] }
 0xd27   : > { %8269 = vtanh.f32 %v7749_v7  ;;  %v7558_v7 = vpack.c.bf16 %v5156_v61, %v5154_v12  ;;  %v5288_v12 = vld [vmem:[#allocation20 + $0x30] sm:$0xff]  ;;  %v5289_v61 = vld [vmem:[#allocation20 + $0x38] sm:$0xff] }
 0xd28   : > { %v8260_v4 = vpop.eup %8259 }
 0xd29   : > { %v8262_v9 = vpop.eup %8261  ;;  %v5068_v24 = vmul.f32 %v8260_v4, %v8256_v35  ;;  %v7560_v4 = vpack.c.bf16 %v5155_v18, %v5153_v41  ;;  %v5307_v41 = vld [vmem:[#allocation20 + $0xc8] sm:$0xff]  ;;  %v7592_v18 = vpack.c.bf16 %v5289_v61, %v5288_v12  ;;  %v5296_v12 = vld [vmem:[#allocation20 + $0x70] sm:$0xff]  ;;  %v5297_v61 = vld [vmem:[#allocation20 + $0x78] sm:$0xff] }
 0xd2a   : > { %v8264_v29 = vpop.eup %8263  ;;  %v5067_v3 = vmul.f32 %v8262_v9, %v8258_v48  ;;  %v5158_v9 = vld [vmem:[#allocation18 + $0x88] sm:$0xff] }
 0xd2b   : > { %v8266_v45 = vpop.eup %8265  ;;  %v11022_v50 = vadd.f32 %v5068_v24, %v5064_v43  ;;  %v5062_v54 = vsub.f32 1.0, %v8264_v29  ;;  %v5160_v24 = vld [vmem:[#allocation18 + $0x98] sm:$0xff] }
 0xd2c   : > { %v11024_v0 = vadd.f32 %v5067_v3, %v5063_v2  ;;  %v5061_v17 = vsub.f32 1.0, %v8266_v45  ;;  %v7562_v43 = vpack.c.bf16 %v5160_v24, %v5158_v9  ;;  %v5159_v3 = vld [vmem:[#allocation18 + $0x90] sm:$0xff]  ;;  %v5290_v9 = vld [vmem:[#allocation20 + $0x40] sm:$0xff]  ;;  %v5291_v24 = vld [vmem:[#allocation20 + $0x48] sm:$0xff] }
 0xd2d   : > { %5079 = vadd.xlane.f32.xlu1 %v11022_v50  ;;  %v5066_v42 = vmul.f32 %v10996_v32, %v5062_v54  ;;  %v7550_v32 = vpack.c.bf16 %v5148_v62, %v5146_v36  ;;  %v5164_v54 = vld [vmem:[#allocation18 + $0xb8] sm:$0xff]  ;;  %v5169_v36 = vld [vmem:[#allocation18 + $0xe0] sm:$0xff]  ;;  %v7574_v62 = vpack.c.bf16 %v5172_v28, %v5170_v10 }
 0xd2e   : > { %5077 = vadd.xlane.f32.xlu0 %v11024_v0  ;;  %v5065_v22 = vmul.f32 %v10991_v33, %v5061_v17  ;;  %v5150_v33 = vld [vmem:[#allocation18 + $0x48] sm:$0xff] }
 0xd2f   : > { %7551 = vmatprep.subr.bf16.mxu1 %v7550_v32  ;;  %v7554_v52 = vpack.c.bf16 %v5152_v25, %v5150_v33  ;;  %v7576_v32 = vpack.c.bf16 %v5171_v27, %v5169_v36  ;;  %v5282_v33 = vld [vmem:[#allocation20] sm:$0xff]  ;;  %v7578_v25 = vpack.c.bf16 %v5299_v14, %v5298_v21 }
 0xd30   : > { %v8268_v5 = vpop.eup %8267  ;;  %7553 = vmatpush1.bf16.msra.mxu1 %v7552_v11  ;;  %v5283_v11 = vld [vmem:[#allocation20 + $0x8] sm:$0xff] }
 0xd31   : > { %v8270_v47 = vpop.eup %8269  ;;  %v5070_v16 = vmul.f32 %v8268_v5, %v8264_v29  ;;  %7555 = vmatprep.subr.bf16.mxu1 %v7554_v52  ;;  %v5157_v29 = vld [vmem:[#allocation18 + $0x80] sm:$0xff]  ;;  %v5300_v52 = vld [vmem:[#allocation20 + $0x90] sm:$0xff]  ;;  %v7580_v39 = vpack.c.bf16 %v5283_v11, %v5282_v33  ;;  %7579 = vmatprep.subr.bf16.mxu0 %v7578_v25 }
 0xd32   : > { %v5069_v56 = vmul.f32 %v8270_v47, %v8266_v45  ;;  %v7564_v2 = vpack.c.bf16 %v5159_v3, %v5157_v29  ;;  %v5162_v45 = vld [vmem:[#allocation18 + $0xa8] sm:$0xff]  ;;  %v5161_v5 = vld [vmem:[#allocation18 + $0xa0] sm:$0xff]  ;;  %v5163_v47 = vld [vmem:[#allocation18 + $0xb0] sm:$0xff]  ;;  %v7596_v3 = vpack.c.bf16 %v5291_v24, %v5290_v9 }
 0xd33   : > { %v11030_v59 = vadd.f32 %v5070_v16, %v5066_v42  ;;  %v7566_v17 = vpack.c.bf16 %v5164_v54, %v5162_v45  ;;  %v7568_v16 = vpack.c.bf16 %v5163_v47, %v5161_v5  ;;  %v5166_v42 = vld [vmem:[#allocation18 + $0xc8] sm:$0xff]  ;;  %7581 = vmatpush3.bf16.msra.mxu0 %v7580_v39  ;;  %v5309_v29 = vld [vmem:[#allocation20 + $0xd8] sm:$0xff]  ;;  %v5292_v45 = vld [vmem:[#allocation20 + $0x50] sm:$0xff] }
 0xd34   : > { %v11032_v38 = vadd.f32 %v5069_v56, %v5065_v22  ;;  %7557 = vmatpush1.bf16.msra.mxu1 %v7556_v30  ;;  %v5168_v56 = vld [vmem:[#allocation18 + $0xd8] sm:$0xff]  ;;  %v7582_v30 = vpack.c.bf16 %v5301_v40, %v5300_v52  ;;  %v5311_v5 = vld [vmem:[#allocation20 + $0xe8] sm:$0xff]  ;;  %v6335_v33 = vld [vmem:[%s11314_s1] ss:$0 sm:$0xff]  ;;  %s5974_s1 = sshll.u32 %s971_s17, 4  ;;  %s11120_s1 = int_to_ptr.vmem [resolvable:$true] %s5974_s1 }
 0xd35   : > { %7559 = vmatprep.subr.bf16.mxu1 %v7558_v7  ;;  %v7570_v22 = vpack.c.bf16 %v5168_v56, %v5166_v42  ;;  %v5306_v7 = vld [vmem:[#allocation20 + $0xc0] sm:$0xff]  ;;  %v5293_v54 = vld [vmem:[#allocation20 + $0x58] sm:$0xff]  ;;  %s8719_s14 = scalar_lea.vmem %s11120_s1, 512 }
 0xd36   : > { %5081 = vadd.xlane.f32.xlu0 %v11032_v38  ;;  %7583 = vmatprep.subr.bf16.mxu0 %v7582_v30  ;;  %v7600_v47 = vpack.c.bf16 %v5293_v54, %v5292_v45  ;;  %v6336_v52 = vld [vmem:[%s11315_s16] ss:$0 sm:$0xff]  ;;  %v5409_v9 = vld [vmem:[#allocation21 + $0x18] sm:$0xff]  ;;  %v5415_v45 = vld [vmem:[#allocation21 + $0x48] sm:$0xff]  ;;  %s11319_s16 = sld [smem:[#allocation62_spill]]  ;;  %p8720_p11 = scmp.ne.s32.totalorder %s11120_s1, %s8719_s14 }
 0xd37   : > { %v5413_v24 = vld [vmem:[#allocation21 + $0x38] sm:$0xff]  ;;  %v5408_v54 = vld [vmem:[#allocation21 + $0x10] sm:$0xff] }
 0xd38   : > { %7561 = vmatpush1.bf16.msra.mxu1 %v7560_v4  ;;  %v7594_v4 = vpack.c.bf16 %v5307_v41, %v5306_v7  ;;  %v7608_v7 = vpack.c.bf16 %v5297_v61, %v5296_v12  ;;  %v5410_v41 = vld [vmem:[#allocation21 + $0x20] sm:$0xff]  ;;  %v5417_v61 = vld [vmem:[#allocation21 + $0x58] sm:$0xff]  ;;  %p8721_p12 = pnand %p8720_p11, %p11320_p3 }
 0xd39   : > { %7563 = vmatprep.subr.bf16.mxu1 %v7562_v43  ;;  %v5308_v43 = vld [vmem:[#allocation20 + $0xd0] sm:$0xff]  ;;  %v5414_v12 = vld [vmem:[#allocation21 + $0x40] sm:$0xff] }
 0xd3a   : > { %5083 = vadd.xlane.f32.xlu0 %v11030_v59  ;;  %p8722_p1 = pneg %p8721_p12 }
 0xd3c   : > { %7565 = vmatpush1.bf16.msra.mxu1 %v7564_v2  ;;  %v7598_v2 = vpack.c.bf16 %v5309_v29, %v5308_v43  ;;  %v5416_v43 = vld [vmem:[#allocation21 + $0x50] sm:$0xff]  ;;  %s11118_s11 = scalar_lea.hbm %s11319_s16, %s6361_s23 }
 0xd3d   : > { %7567 = vmatprep.subr.bf16.mxu1 %v7566_v17  ;;  %v5310_v17 = vld [vmem:[#allocation20 + $0xe0] sm:$0xff] }
 0xd40   : > { %7569 = vmatpush1.bf16.msra.mxu1 %v7568_v16  ;;  %v7602_v16 = vpack.c.bf16 %v5311_v5, %v5310_v17  ;;  %v5411_v17 = vld [vmem:[#allocation21 + $0x28] sm:$0xff] }
 0xd41   : > { %7571 = vmatprep.subr.bf16.mxu1 %v7570_v22  ;;  %v5419_v5 = vld [vmem:[#allocation21 + $0x68] sm:$0xff] }
 0xd44   : > { %7573 = vmatpush1.bf16.msra.mxu1 %v7572_v6 }
 0xd45   : > { %7575 = vmatprep.subr.bf16.mxu1 %v7574_v62 }
 0xd48   : > { %7577 = vmatpush1.bf16.msra.mxu1 %v7576_v32 }
 0xdba   : > { %v5080_v20 = vpop.xlane.xlu1 %5079 }
 0xdbb   : > { %v5086_v49 = vmul.f32 0.0078125, %v5080_v20  ;;  %v5078_v51 = vpop.xlane.xlu0 %5077  ;;  %v5284_v20 = vld [vmem:[#allocation20 + $0x10] sm:$0xff] }
 0xdbc   : > { %v5085_v60 = vmul.f32 0.0078125, %v5078_v51  ;;  %v5302_v51 = vld [vmem:[#allocation20 + $0xa0] sm:$0xff] }
 0xdbd   : > { %v11037_v55 = vsub.f32 %v11022_v50, %v5086_v49  ;;  %v5285_v49 = vld [vmem:[#allocation20 + $0x18] sm:$0xff] }
 0xdbe   : > { %v11040_v15 = vsub.f32 %v11024_v0, %v5085_v60  ;;  %v5303_v60 = vld [vmem:[#allocation20 + $0xa8] sm:$0xff] }
 0xdbf   : > { %v5094_v57 = vmul.f32 %v11037_v55, %v11037_v55 }
 0xdc0   : > { %v5093_v8 = vmul.f32 %v11040_v15, %v11040_v15 }
 0xdc1   : > { %5099 = vadd.xlane.f32.xlu1 %v5094_v57  ;;  %v7584_v57 = vpack.c.bf16 %v5285_v49, %v5284_v20 }
 0xdc2   : > { %5097 = vadd.xlane.f32.xlu0 %v5093_v8  ;;  %v7586_v8 = vpack.c.bf16 %v5303_v60, %v5302_v51 }
 0xdc3   : > { %v5082_v46 = vpop.xlane.xlu0 %5081  ;;  %7585 = vmatpush3.bf16.msra.mxu0 %v7584_v57 }
 0xdc4   : > { %v5087_v44 = vmul.f32 0.0078125, %v5082_v46  ;;  %v5286_v46 = vld [vmem:[#allocation20 + $0x20] sm:$0xff]  ;;  %7587 = vmatprep.subr.bf16.mxu0 %v7586_v8 }
 0xdc6   : > { %v11047_v1 = vsub.f32 %v11032_v38, %v5087_v44  ;;  %v5287_v44 = vld [vmem:[#allocation20 + $0x28] sm:$0xff] }
 0xdc7   : > { %v5084_v23 = vpop.xlane.xlu0 %5083 }
 0xdc8   : > { %v5088_v37 = vmul.f32 0.0078125, %v5084_v23  ;;  %v5095_v35 = vmul.f32 %v11047_v1, %v11047_v1  ;;  %v5304_v23 = vld [vmem:[#allocation20 + $0xb0] sm:$0xff] }
 0xdca   : > { %v11052_v48 = vsub.f32 %v11030_v59, %v5088_v37  ;;  %5101 = vadd.xlane.f32.xlu0 %v5095_v35  ;;  %v5305_v37 = vld [vmem:[#allocation20 + $0xb8] sm:$0xff]  ;;  %v7588_v35 = vpack.c.bf16 %v5287_v44, %v5286_v46  ;;  %v5294_v44 = vld [vmem:[#allocation20 + $0x60] sm:$0xff] }
 0xdcc   : > { %v5096_v19 = vmul.f32 %v11052_v48, %v11052_v48  ;;  %7589 = vmatpush3.bf16.msra.mxu0 %v7588_v35  ;;  %v5313_v35 = vld [vmem:[#allocation20 + $0xf8] sm:$0xff] }
 0xdce   : > { %5103 = vadd.xlane.f32.xlu1 %v5096_v19  ;;  %v7590_v19 = vpack.c.bf16 %v5305_v37, %v5304_v23  ;;  %v5295_v23 = vld [vmem:[#allocation20 + $0x68] sm:$0xff] }
 0xdcf   : > { %v7604_v37 = vpack.c.bf16 %v5295_v23, %v5294_v44 }
 0xdd0   : > { %7591 = vmatprep.subr.bf16.mxu0 %v7590_v19 }
 0xdd1   : > { %7593 = vmatpush3.bf16.msra.mxu0 %v7592_v18  ;;  %v5406_v18 = vld [vmem:[#allocation21] sm:$0xff] }
 0xdd2   : > { %7595 = vmatprep.subr.bf16.mxu0 %v7594_v4  ;;  %v7612_v29 = vpack.c.bf16 %v5409_v9, %v5406_v18  ;;  %v7646_v9 = vpack.c.bf16 %v5417_v61, %v5414_v12  ;;  %v5459_v12 = vld [vmem:[#allocation23 + $0x28] sm:$0xff]  ;;  %v5461_v61 = vld [vmem:[#allocation23 + $0x38] sm:$0xff] }
 0xdd5   : > { %7597 = vmatpush3.bf16.msra.mxu0 %v7596_v3  ;;  %v7614_v3 = vpack.c.bf16 %v5416_v43, %v5413_v24  ;;  %v5420_v43 = vld [vmem:[#allocation21 + $0x70] sm:$0xff] }
 0xdd6   : > { %7599 = vmatprep.subr.bf16.mxu0 %v7598_v2  ;;  %v5412_v2 = vld [vmem:[#allocation21 + $0x30] sm:$0xff] }
 0xdd9   : > { %7601 = vmatpush3.bf16.msra.mxu0 %v7600_v47  ;;  %v5422_v47 = vld [vmem:[#allocation21 + $0x80] sm:$0xff] }
 0xdda   : > { %7603 = vmatprep.subr.bf16.mxu0 %v7602_v16  ;;  %v7616_v16 = vpack.c.bf16 %v5415_v45, %v5412_v2 }
 0xddd   : > { %7605 = vmatpush3.bf16.msra.mxu0 %v7604_v37 }
 0xe4e   : > { %v5100_v42 = vpop.xlane.xlu1 %5099 }
 0xe4f   : > { %v5106_v56 = vmul.f32 0.0078125, %v5100_v42  ;;  %v5098_v22 = vpop.xlane.xlu0 %5097  ;;  %v11070_v42 = vpack.c.bf16 %v5411_v17, %v5408_v54 }
 0xe50   : > { %v5105_v31 = vmul.f32 0.0078125, %v5098_v22  ;;  %v5418_v22 = vld [vmem:[#allocation21 + $0x60] sm:$0xff] }
 0xe51   : > { %v5110_v34 = vadd.f32 1e-05, %v5106_v56  ;;  %v7618_v56 = vpack.c.bf16 %v5422_v47, %v5419_v5 }
 0xe52   : > { %v5109_v6 = vadd.f32 1e-05, %v5105_v31  ;;  %v5421_v31 = vld [vmem:[#allocation21 + $0x78] sm:$0xff] }
 0xe53   : > { %8271 = vrsqrt.f32 %v5110_v34  ;;  %v5425_v34 = vld [vmem:[#allocation21 + $0x98] sm:$0xff] }
 0xe54   : > { %8273 = vrsqrt.f32 %v5109_v6  ;;  %v5428_v6 = vld [vmem:[#allocation21 + $0xb0] sm:$0xff] }
 0xe57   : > { %v5102_v10 = vpop.xlane.xlu0 %5101 }
 0xe58   : > { %v5107_v28 = vmul.f32 0.0078125, %v5102_v10  ;;  %v7620_v10 = vpack.c.bf16 %v5421_v31, %v5418_v22 }
 0xe5a   : > { %v5111_v36 = vadd.f32 1e-05, %v5107_v28  ;;  %v7622_v28 = vpack.c.bf16 %v5428_v6, %v5425_v34 }
 0xe5b   : > { %v5104_v62 = vpop.xlane.xlu1 %5103 }
 0xe5c   : > { %8275 = vrsqrt.f32 %v5111_v36  ;;  %v5108_v27 = vmul.f32 0.0078125, %v5104_v62  ;;  %v5424_v36 = vld [vmem:[#allocation21 + $0x90] sm:$0xff]  ;;  %v5427_v62 = vld [vmem:[#allocation21 + $0xa8] sm:$0xff] }
 0xe5d   : > { %v8272_v32 = vpop.eup %8271 }
 0xe5e   : > { %v8274_v21 = vpop.eup %8273  ;;  %v5112_v14 = vadd.f32 1e-05, %v5108_v27  ;;  %v5118_v11 = vmul.f32 %v8272_v32, %v11037_v55  ;;  %v5431_v27 = vld [vmem:[#allocation21 + $0xc8] sm:$0xff]  ;;  %v5434_v32 = vld [vmem:[#allocation21 + $0xe0] sm:$0xff] }
 0xe5f   : > { %v5117_v25 = vmul.f32 %v8274_v21, %v11040_v15  ;;  %v7624_v21 = vpack.c.bf16 %v5427_v62, %v5424_v36  ;;  %v5435_v62 = vld [vmem:[#allocation21 + $0xe8] sm:$0xff] }
 0xe60   : > { %8277 = vrsqrt.f32 %v5112_v14  ;;  %v5128_v30 = vmul.f32 %v6335_v33, %v5118_v11  ;;  %v7626_v14 = vpack.c.bf16 %v5434_v32, %v5431_v27  ;;  %v5437_v11 = vld [vmem:[#allocation21 + $0xf8] sm:$0xff] }
 0xe61   : > { %v5127_v40 = vmul.f32 %v6335_v33, %v5117_v25  ;;  %v5433_v25 = vld [vmem:[#allocation21 + $0xd8] sm:$0xff] }
 0xe62   : > { %v5138_v49 = vadd.f32 %v6336_v52, %v5128_v30  ;;  %v5436_v30 = vld [vmem:[#allocation21 + $0xf0] sm:$0xff] }
 0xe63   : > { %v5137_v39 = vadd.f32 %v6336_v52, %v5127_v40 }
 0xe65   : > { %5250 = vmatmul.mubr.f32.vlgmr.msra.gmra.mrb[50].mxu1 %v5137_v39 }
 0xe66   : > { %v8276_v20 = vpop.eup %8275  ;;  %5255 = vmatprep.mubr.f32.mxu1 %v11310_v26 }
 0xe67   : > { %v5119_v51 = vmul.f32 %v8276_v20, %v11047_v1  ;;  %v5312_v1 = vld [vmem:[#allocation20 + $0xf0] sm:$0xff]  ;;  %v5439_v20 = vld [vmem:[#allocation21 + $0x108] sm:$0xff] }
 0xe68   : > { %v7606_v19 = vpack.c.bf16 %v5313_v35, %v5312_v1 }
 0xe69   : > { %5256 = vmatmul.mubr.f32.gmra.mrb[52].mxu1 %v5138_v49  ;;  %v5129_v60 = vmul.f32 %v6335_v33, %v5119_v51  ;;  %v5443_v49 = vld [vmem:[#allocation21 + $0x128] sm:$0xff]  ;;  %v5446_v51 = vld [vmem:[#allocation21 + $0x140] sm:$0xff] }
 0xe6a   : > { %v8278_v15 = vpop.eup %8277  ;;  %5261 = vmatprep.mubr.f32.mxu1 %v11310_v26  ;;  %7607 = vmatprep.subr.bf16.mxu0 %v7606_v19 }
 0xe6b   : > { %v5139_v55 = vadd.f32 %v6336_v52, %v5129_v60  ;;  %v5120_v57 = vmul.f32 %v8278_v15, %v11052_v48  ;;  %7609 = vmatpush3.bf16.msra.mxu0 %v7608_v7  ;;  %v5407_v48 = vld [vmem:[#allocation21 + $0x8] sm:$0xff]  ;;  %v7632_v60 = vpack.c.bf16 %v5439_v20, %v5436_v30  ;;  %v7634_v15 = vpack.c.bf16 %v5446_v51, %v5443_v49  ;;  %v5444_v20 = vld [vmem:[#allocation21 + $0x130] sm:$0xff] }
 0xe6c   : > { %v7610_v4 = vpack.c.bf16 %v5410_v41, %v5407_v48  ;;  %7643 = vmatprep.subr.bf16.mxu0 %v11070_v42  ;;  %v5451_v30 = vld [vmem:[#allocation21 + $0x168] sm:$0xff] }
 0xe6d   : > { %5262 = vmatmul.mubr.f32.gmra.mrb[54].mxu1 %v5139_v55  ;;  %v5130_v8 = vmul.f32 %v6335_v33, %v5120_v57  ;;  %v5430_v33 = vld [vmem:[#allocation21 + $0xc0] sm:$0xff]  ;;  %v5445_v57 = vld [vmem:[#allocation21 + $0x138] sm:$0xff]  ;;  %v5447_v51 = vld [vmem:[#allocation21 + $0x148] sm:$0xff] }
 0xe6e   : > { %5267 = vmatprep.mubr.f32.mxu1 %v11310_v26  ;;  %7611 = vmatprep.subr.bf16.mxu1 %v7610_v4  ;;  %v7628_v40 = vpack.c.bf16 %v5433_v25, %v5430_v33  ;;  %v5442_v55 = vld [vmem:[#allocation21 + $0x120] sm:$0xff]  ;;  %v5441_v33 = vld [vmem:[#allocation21 + $0x118] sm:$0xff] }
 0xe6f   : > { %v5140_v46 = vadd.f32 %v6336_v52, %v5130_v8  ;;  %7613 = vmatpush1.bf16.msra.mxu1 %v7612_v29  ;;  %v5440_v52 = vld [vmem:[#allocation21 + $0x110] sm:$0xff]  ;;  %v7636_v8 = vpack.c.bf16 %v5445_v57, %v5442_v55  ;;  %v5423_v29 = vld [vmem:[#allocation21 + $0x88] sm:$0xff]  ;;  %v5457_v55 = vld [vmem:[#allocation23 + $0x18] sm:$0xff] }
 0xe70   : > { %7615 = vmatprep.subr.bf16.mxu1 %v7614_v3  ;;  %v7630_v39 = vpack.c.bf16 %v5440_v52, %v5437_v11  ;;  %v7650_v5 = vpack.c.bf16 %v5423_v29, %v5420_v43  ;;  %v5449_v11 = vld [vmem:[#allocation21 + $0x158] sm:$0xff]  ;;  %v5452_v52 = vld [vmem:[#allocation21 + $0x170] sm:$0xff]  ;;  %v5463_v29 = vld [vmem:[#allocation23 + $0x48] sm:$0xff] }
 0xe71   : > { %5268 = vmatmul.mubr.f32.gmra.mrb[56].mxu1 %v5140_v46  ;;  %v5173_v46 = vld [vmem:[%s11316_s24] sm:$0x3]  ;;  %s8723_s24 = sshll.u32 %s8852_s3, 4  ;;  %s8724_s24 = int_to_ptr.vmem [resolvable:$false] %s8723_s24 }
 0xe72   : > { %5583 = vmatprep.mubr.f32.mxu1 %v11310_v26  ;;  %v5178_v44 = vrot.slane %v5173_v46, %v11312_v13  ;;  %v5182_v23 = vrot.slane %v5173_v46, %v11012_v63  ;;  %v5453_v46 = vld [vmem:[#allocation21 + $0x178] sm:$0xff]  ;;  %s8725_s7 = scalar_lea.vmem %s8724_s24, 1024  ;;  %p8726_p13 = scmp.lt.s32.totalorder %s11120_s1, %s8724_s24 }
 0xe73   : > { %7617 = vmatpush1.bf16.msra.mxu1 %v7616_v16  ;;  %v5426_v16 = vld [vmem:[#allocation21 + $0xa0] sm:$0xff]  ;;  %p8727_p0 = scmp.lt.s32.totalorder %s8725_s7, %s8719_s14 }
 0xe74   : > { %7619 = vmatprep.subr.bf16.mxu1 %v7618_v56  ;;  %v5429_v56 = vld [vmem:[#allocation21 + $0xb8] sm:$0xff] }
 0xe75   : > { %p8728_p6 = por %p8727_p0, %p8726_p13 }
 0xe77   : > { %7621 = vmatpush1.bf16.msra.mxu1 %v7620_v10  ;;  %p8729_p2 = pnand %p8728_p6, %p8722_p1 }
 0xe78   : > { %7623 = vmatprep.subr.bf16.mxu1 %v7622_v28  ;;  %v7654_v28 = vpack.c.bf16 %v5429_v56, %v5426_v16  ;;  %v5464_v16 = vld [vmem:[#allocation23 + $0x50] sm:$0xff] }
 0xe7b   : > { %7625 = vmatpush1.bf16.msra.mxu1 %v7624_v21 }
 0xe7c   : > { %7627 = vmatprep.subr.bf16.mxu1 %v7626_v14  ;;  %v5438_v14 = vld [vmem:[#allocation21 + $0x100] sm:$0xff] }
 0xe7d   : > { %v7662_v25 = vpack.c.bf16 %v5441_v33, %v5438_v14 }
 0xe7f   : > { %7629 = vmatpush1.bf16.msra.mxu1 %v7628_v40  ;;  %v7638_v40 = vpack.c.bf16 %v5452_v52, %v5449_v11  ;;  %v5470_v52 = vld [vmem:[#allocation23 + $0x80] sm:$0xff] }
 0xe80   : > { %7631 = vmatprep.subr.bf16.mxu1 %v7630_v39  ;;  %v5448_v39 = vld [vmem:[#allocation21 + $0x150] sm:$0xff] }
 0xe81   : > { %v7640_v49 = vpack.c.bf16 %v5451_v30, %v5448_v39  ;;  %v5475_v39 = vld [vmem:[#allocation23 + $0xa8] sm:$0xff]  ;;  %v5477_v30 = vld [vmem:[#allocation23 + $0xb8] sm:$0xff] }
 0xe83   : > { %7633 = vmatpush1.bf16.msra.mxu1 %v7632_v60  ;;  %v7666_v60 = vpack.c.bf16 %v5447_v51, %v5444_v20  ;;  %v5474_v51 = vld [vmem:[#allocation23 + $0xa0] sm:$0xff] }
 0xe84   : > { %7635 = vmatprep.subr.bf16.mxu1 %v7634_v15  ;;  %v5455_v15 = vld [vmem:[#allocation23 + $0x8] sm:$0xff] }
 0xe85   : > { %v7674_v57 = vpack.c.bf16 %v5457_v55, %v5455_v15  ;;  %v5479_v15 = vld [vmem:[#allocation23 + $0xc8] sm:$0xff]  ;;  %v5481_v55 = vld [vmem:[#allocation23 + $0xd8] sm:$0xff] }
 0xe87   : > { %7637 = vmatpush1.bf16.msra.mxu1 %v7636_v8  ;;  %v5450_v8 = vld [vmem:[#allocation21 + $0x160] sm:$0xff] }
 0xe88   : > { %7639 = vmatprep.subr.bf16.mxu1 %v7638_v40  ;;  %v5472_v40 = vld [vmem:[#allocation23 + $0x90] sm:$0xff] }
 0xe89   : > { %v7692_v20 = vpack.c.bf16 %v5472_v40, %v5470_v52 }
 0xe8b   : > { %7641 = vmatpush1.bf16.msra.mxu1 %v7640_v49  ;;  %v7694_v49 = vpack.c.bf16 %v5477_v30, %v5475_v39 }
 0xe8c   : > { %7675 = vmatprep.subr.bf16.mxu1 %v7674_v57 }
 0xf38   : > { %v5251_v37 = vpop.f32.mrb[50].mxu1 }
 0xf39   : > { %v5252_v1 = vadd.f32 %v5251_v37, %v5178_v44  ;;  %v5253_v35 = vpop.f32.mrb[51].mxu1  ;;  %v5454_v37 = vld [vmem:[#allocation23] sm:$0xff] }
 0xf3a   : > { %v5254_v19 = vadd.f32 %v5253_v35, %v5182_v23  ;;  %v6337_v35 = vld [vmem:[%s11317_s30] ss:$0 sm:$0xff] }
 0xf3b   : > { %v5274_v41 = vmax.f32 %v5252_v1, 0.0  ;;  %v5456_v1 = vld [vmem:[#allocation23 + $0x10] sm:$0xff] }
 0xf3c   : > { %v5275_v7 = vmax.f32 %v5254_v19, 0.0  ;;  %v5257_v48 = vpop.f32.mrb[52].mxu1 }
 0xf3d   : > { %v5258_v18 = vadd.f32 %v5257_v48, %v5178_v44  ;;  %v5259_v4 = vpop.f32.mrb[53].mxu1  ;;  %v7676_v48 = vpack.c.bf16 %v5456_v1, %v5454_v37  ;;  %v5485_v37 = vld [vmem:[#allocation23 + $0xf8] sm:$0xff] }
 0xf3e   : > { %v5260_v24 = vadd.f32 %v5259_v4, %v5182_v23  ;;  %5385 = vmatprep.mubr.f32.mxu0 %v5275_v7  ;;  %v7678_v4 = vpack.c.bf16 %v5461_v61, %v5459_v12  ;;  %v5484_v12 = vld [vmem:[#allocation23 + $0xf0] sm:$0xff] }
 0xf3f   : > { %5386 = vmatmul.mubr.f32.vlgmr.msra.gmra.mrb[34].mxu0 %v5274_v41  ;;  %v5276_v45 = vmax.f32 %v5258_v18, 0.0 }
 0xf40   : > { %v5277_v3 = vmax.f32 %v5260_v24, 0.0  ;;  %v5263_v2 = vpop.f32.mrb[54].mxu1  ;;  %7645 = vmatpush3.bf16.msra.mxu0 %v11070_v42  ;;  %v5432_v42 = vld [vmem:[#allocation21 + $0xd0] sm:$0xff] }
 0xf41   : > { %v5264_v54 = vadd.f32 %v5263_v2, %v5178_v44  ;;  %v5265_v17 = vpop.f32.mrb[55].mxu1  ;;  %7647 = vmatprep.subr.bf16.mxu0 %v7646_v9  ;;  %v7658_v21 = vpack.c.bf16 %v5435_v62, %v5432_v42  ;;  %v5460_v24 = vld [vmem:[#allocation23 + $0x30] sm:$0xff]  ;;  %v5466_v42 = vld [vmem:[#allocation23 + $0x60] sm:$0xff] }
 0xf42   : > { %v5266_v47 = vadd.f32 %v5265_v17, %v5182_v23  ;;  %5390 = vmatprep.mubr.f32.mxu0 %v5277_v3  ;;  %v5465_v3 = vld [vmem:[#allocation23 + $0x58] sm:$0xff]  ;;  %v5468_v62 = vld [vmem:[#allocation23 + $0x70] sm:$0xff] }
 0xf43   : > { %5391 = vmatmul.mubr.f32.gmra.mrb[36].mxu0 %v5276_v45  ;;  %v5278_v34 = vmax.f32 %v5264_v54, 0.0  ;;  %v7688_v33 = vpack.c.bf16 %v5468_v62, %v5466_v42 }
 0xf44   : > { %v5279_v22 = vmax.f32 %v5266_v47, 0.0  ;;  %v5269_v31 = vpop.f32.mrb[56].mxu1  ;;  %7649 = vmatpush3.bf16.msra.mxu0 %v7646_v9  ;;  %v5458_v9 = vld [vmem:[#allocation23 + $0x20] sm:$0xff] }
 0xf45   : > { %v5270_v6 = vadd.f32 %v5269_v31, %v5178_v44  ;;  %v5271_v10 = vpop.f32.mrb[57].mxu1  ;;  %7651 = vmatprep.subr.bf16.mxu0 %v7650_v5  ;;  %v7670_v44 = vpack.c.bf16 %v5453_v46, %v5450_v8  ;;  %v7680_v45 = vpack.c.bf16 %v5460_v24, %v5458_v9  ;;  %v5462_v47 = vld [vmem:[#allocation23 + $0x40] sm:$0xff]  ;;  %v5469_v31 = vld [vmem:[#allocation23 + $0x78] sm:$0xff]  ;;  %v7698_v8 = vpack.c.bf16 %v5481_v55, %v5479_v15 }
 0xf46   : > { %v5272_v36 = vadd.f32 %v5271_v10, %v5182_v23  ;;  %5395 = vmatprep.mubr.f32.mxu0 %v5279_v22  ;;  %v5467_v22 = vld [vmem:[#allocation23 + $0x68] sm:$0xff]  ;;  %v5478_v46 = vld [vmem:[#allocation23 + $0xc0] sm:$0xff] }
 0xf47   : > { %5396 = vmatmul.mubr.f32.gmra.mrb[38].mxu0 %v5278_v34  ;;  %v5280_v32 = vmax.f32 %v5270_v6, 0.0  ;;  %v7684_v6 = vpack.c.bf16 %v5464_v16, %v5462_v47  ;;  %v5490_v24 = vld [vmem:[#allocation24 + $0x20] sm:$0xff]  ;;  %v5497_v47 = vld [vmem:[#allocation24 + $0x58] sm:$0xff] }
 0xf48   : > { %v5281_v27 = vmax.f32 %v5272_v36, 0.0  ;;  %7653 = vmatpush3.bf16.msra.mxu0 %v7650_v5  ;;  %v7682_v5 = vpack.c.bf16 %v5465_v3, %v5463_v29  ;;  %v7686_v36 = vpack.c.bf16 %v5469_v31, %v5467_v22  ;;  %v5492_v3 = vld [vmem:[#allocation24 + $0x30] sm:$0xff]  ;;  %v5499_v22 = vld [vmem:[#allocation24 + $0x68] sm:$0xff] }
 0xf49   : > { %7655 = vmatprep.subr.bf16.mxu0 %v7654_v28 }
 0xf4a   : > { %5400 = vmatprep.mubr.f32.mxu0 %v5281_v27 }
 0xf4b   : > { %5401 = vmatmul.mubr.f32.gmra.mrb[40].mxu0 %v5280_v32  ;;  %v5471_v32 = vld [vmem:[#allocation23 + $0x88] sm:$0xff] }
 0xf4c   : > { %7657 = vmatpush3.bf16.msra.mxu0 %v7654_v28 }
 0xf4d   : > { %7659 = vmatprep.subr.bf16.mxu0 %v7658_v21 }
 0xf50   : > { %7661 = vmatpush3.bf16.msra.mxu0 %v7658_v21  ;;  %v5473_v21 = vld [vmem:[#allocation23 + $0x98] sm:$0xff] }
 0xf51   : > { %7663 = vmatprep.subr.bf16.mxu0 %v7662_v25  ;;  %v7690_v11 = vpack.c.bf16 %v5473_v21, %v5471_v32 }
 0xf54   : > { %7665 = vmatpush3.bf16.msra.mxu0 %v7662_v25 }
 0xf55   : > { %7667 = vmatprep.subr.bf16.mxu0 %v7666_v60 }
 0xf58   : > { %7669 = vmatpush3.bf16.msra.mxu0 %v7666_v60  ;;  %v5476_v60 = vld [vmem:[#allocation23 + $0xb0] sm:$0xff] }
 0xf59   : > { %7671 = vmatprep.subr.bf16.mxu0 %v7670_v44  ;;  %v7696_v57 = vpack.c.bf16 %v5476_v60, %v5474_v51 }
 0xf5c   : > { %7673 = vmatpush3.bf16.msra.mxu0 %v7670_v44  ;;  %v5480_v44 = vld [vmem:[#allocation23 + $0xd0] sm:$0xff] }
 0xf5d   : > { %v7700_v1 = vpack.c.bf16 %v5480_v44, %v5478_v46 }
0x1012   : > { %v6602_v23 = vpop.f32.mrb[34].mxu0 }
0x1013   : > { %v6603_v19 = vpop.f32.mrb[35].mxu0 }
0x1014   : > { %v6604_v7 = vadd.f32 %v6603_v19, %v6602_v23  ;;  %v5483_v23 = vld [vmem:[#allocation23 + $0xe8] sm:$0xff]  ;;  %v5482_v19 = vld [vmem:[#allocation23 + $0xe0] sm:$0xff] }
0x1015   : > { %v7704_v61 = vpack.c.bf16 %v5484_v12, %v5482_v19 }
0x1016   : > { %v5388_v41 = vadd.f32 %v6604_v7, %v6337_v35  ;;  %v6605_v18 = vpop.f32.mrb[36].mxu0  ;;  %v5486_v7 = vld [vmem:[#allocation24] sm:$0xff] }
0x1017   : > { %v6606_v43 = vpop.f32.mrb[37].mxu0 }
0x1018   : > { %v6607_v2 = vadd.f32 %v6606_v43, %v6605_v18  ;;  %5584 = vmatmul.mubr.f32.vlgmr.msra.gmra.mrb[58].mxu1 %v5388_v41  ;;  %7070 = vmatprep.mubr.f32.mxu0 %v5388_v41  ;;  %v5488_v18 = vld [vmem:[#allocation24 + $0x10] sm:$0xff]  ;;  %v5491_v43 = vld [vmem:[#allocation24 + $0x28] sm:$0xff] }
0x1019   : > { %7677 = vmatpush1.bf16.msra.mxu1 %v7676_v48  ;;  %5589 = vmatprep.mubr.f32.mxu1 %v11310_v26  ;;  %v5487_v48 = vld [vmem:[#allocation24 + $0x8] sm:$0xff]  ;;  %v7714_v29 = vpack.c.bf16 %v5491_v43, %v5490_v24 }
0x101a   : > { %v5393_v54 = vadd.f32 %v6607_v2, %v6337_v35  ;;  %v6608_v17 = vpop.f32.mrb[38].mxu0  ;;  %7679 = vmatprep.subr.bf16.mxu1 %v7678_v4  ;;  %v7706_v41 = vpack.c.bf16 %v5487_v48, %v5486_v7  ;;  %v5489_v4 = vld [vmem:[#allocation24 + $0x18] sm:$0xff] }
0x101b   : > { %v6609_v56 = vpop.f32.mrb[39].mxu0  ;;  %v7710_v9 = vpack.c.bf16 %v5489_v4, %v5488_v18  ;;  %v5493_v2 = vld [vmem:[#allocation24 + $0x38] sm:$0xff] }
0x101c   : > { %v6610_v34 = vadd.f32 %v6609_v56, %v6608_v17  ;;  %5590 = vmatmul.mubr.f32.gmra.mrb[60].mxu1 %v5393_v54  ;;  %7071 = vmatmul.mubr.f32.vlgmr.msra.gmra.mrb[42].mxu0 %v5393_v54  ;;  %v5495_v54 = vld [vmem:[#allocation24 + $0x48] sm:$0xff]  ;;  %v5498_v56 = vld [vmem:[#allocation24 + $0x60] sm:$0xff] }
0x101d   : > { %7681 = vmatpush1.bf16.msra.mxu1 %v7680_v45  ;;  %5595 = vmatprep.mubr.f32.mxu1 %v11310_v26  ;;  %v5494_v45 = vld [vmem:[#allocation24 + $0x40] sm:$0xff]  ;;  %v7730_v31 = vpack.c.bf16 %v5499_v22, %v5498_v56 }
0x101e   : > { %v5398_v10 = vadd.f32 %v6610_v34, %v6337_v35  ;;  %v6611_v28 = vpop.f32.mrb[40].mxu0  ;;  %7683 = vmatprep.subr.bf16.mxu1 %v7682_v5  ;;  %7707 = vmatprep.subr.bf16.mxu0 %v7706_v41  ;;  %v7722_v17 = vpack.c.bf16 %v5495_v54, %v5494_v45  ;;  %v5496_v5 = vld [vmem:[#allocation24 + $0x50] sm:$0xff] }
0x101f   : > { %v6612_v27 = vpop.f32.mrb[41].mxu0  ;;  %7709 = vmatpush3.bf16.msra.mxu0 %v7706_v41  ;;  %v7726_v16 = vpack.c.bf16 %v5497_v47, %v5496_v5  ;;  %v5500_v34 = vld [vmem:[#allocation24 + $0x70] sm:$0xff] }
0x1020   : > { %v6613_v14 = vadd.f32 %v6612_v27, %v6611_v28  ;;  %5596 = vmatmul.mubr.f32.gmra.mrb[62].mxu1 %v5398_v10  ;;  %7073 = vmatprep.mubr.f32.mxu0 %v5398_v10  ;;  %v11096_v28 = vld [vmem:[%s11318_s29] sm:$0x7] }
0x1021   : > { %7685 = vmatpush1.bf16.msra.mxu1 %v7684_v6  ;;  %5601 = vmatprep.mubr.f32.mxu1 %v11310_v26  ;;  %v5501_v6 = vld [vmem:[#allocation24 + $0x78] sm:$0xff]  ;;  %v5511_v48 = vrot.slane %v11096_v28, %v11012_v63 }
0x1022   : > { %v5403_v25 = vadd.f32 %v6613_v14, %v6337_v35  ;;  %7687 = vmatprep.subr.bf16.mxu1 %v7686_v36  ;;  %v7702_v35 = vpack.c.bf16 %v5485_v37, %v5483_v23  ;;  %7711 = vmatprep.subr.bf16.mxu0 %v7710_v9  ;;  %v7734_v10 = vpack.c.bf16 %v5501_v6, %v5500_v34 }
0x1023   : > { %7713 = vmatpush3.bf16.msra.mxu0 %v7710_v9  ;;  %v5507_v36 = vrot.slane %v11096_v28, %v11312_v13 }
0x1024   : > { %5602 = vmatmul.mubr.f32.gmra.mrb[64].mxu1 %v5403_v25  ;;  %7074 = vmatmul.mubr.f32.gmra.mrb[44].mxu0 %v5403_v25 }
0x1025   : > { %7689 = vmatpush1.bf16.msra.mxu1 %v7688_v33  ;;  %5757 = vmatprep.mubr.f32.mxu1 %v11310_v26 }
0x1026   : > { %7691 = vmatprep.subr.bf16.mxu1 %v7690_v11  ;;  %7715 = vmatprep.subr.bf16.mxu0 %v7714_v29 }
0x1027   : > { %7717 = vmatpush3.bf16.msra.mxu0 %v7714_v29 }
0x1029   : > { %7693 = vmatpush1.bf16.msra.mxu1 %v7692_v20 }
0x102a   : > { %7695 = vmatprep.subr.bf16.mxu1 %v7694_v49 }
0x102d   : > { %7697 = vmatpush1.bf16.msra.mxu1 %v7696_v57 }
0x102e   : > { %7699 = vmatprep.subr.bf16.mxu1 %v7698_v8 }
0x1031   : > { %7701 = vmatpush1.bf16.msra.mxu1 %v7700_v1 }
0x1032   : > { %7703 = vmatprep.subr.bf16.mxu1 %v7702_v35 }
0x1035   : > { %7705 = vmatpush1.bf16.msra.mxu1 %v7704_v61 }
0x1038   : > { %5758 = vmatmul.mubr.f32.vlgmr.msra.gmra.mrb[58].mxu1 %v11024_v0 }
0x1039   : > { %5763 = vmatprep.mubr.f32.mxu1 %v11310_v26 }
0x103c   : > { %5764 = vmatmul.mubr.f32.gmra.mrb[60].mxu1 %v11022_v50 }
0x103d   : > { %5769 = vmatprep.mubr.f32.mxu1 %v11310_v26 }
0x1040   : > { %5770 = vmatmul.mubr.f32.gmra.mrb[62].mxu1 %v11032_v38 }
0x1041   : > { %5775 = vmatprep.mubr.f32.mxu1 %v11310_v26  ;;  %v7718_v26 = vpack.c.bf16 %v5493_v2, %v5492_v3 }
0x1043   : > { %7719 = vmatprep.subr.bf16.mxu0 %v7718_v26 }
0x1044   : > { %5776 = vmatmul.mubr.f32.gmra.mrb[64].mxu1 %v11030_v59  ;;  %7721 = vmatpush3.bf16.msra.mxu0 %v7718_v26 }
0x1045   : > { %7723 = vmatprep.subr.bf16.mxu0 %v7722_v17 }
0x1048   : > { %7725 = vmatpush3.bf16.msra.mxu0 %v7722_v17 }
0x1049   : > { %7727 = vmatprep.subr.bf16.mxu0 %v7726_v16 }
0x104c   : > { %7729 = vmatpush3.bf16.msra.mxu0 %v7726_v16  ;;  %v5515_v16 = vrot.slane %v11096_v28, %v4634_v58 }
0x104d   : > { %7731 = vmatprep.subr.bf16.mxu0 %v7730_v31 }
0x1050   : > { %7733 = vmatpush3.bf16.msra.mxu0 %v7730_v31 }
0x1051   : > { %7735 = vmatprep.subr.bf16.mxu0 %v7734_v10 }
0x1054   : > { %7737 = vmatpush3.bf16.msra.mxu0 %v7734_v10 }
0x110b   : > { %v5759_v42 = vpop.f32.mrb[58].mxu1 }
0x110c   : > { %v7750_v62 = vadd.f32 %v5759_v42, %v5507_v36  ;;  %v5761_v27 = vpop.f32.mrb[59].mxu1 }
0x110d   : > { %v7751_v18 = vadd.f32 %v5761_v27, %v5511_v48 }
0x110e   : > { %v6338_v32 = vmul.f32 -1.442695, %v7750_v62 }
0x110f   : > { %v5765_v21 = vpop.f32.mrb[60].mxu1  ;;  %v6342_v9 = vadd.f32 -0.1, %v7751_v18 }
0x1110   : > { %8279 = vpow2.f32 %v6338_v32  ;;  %v7752_v14 = vadd.f32 %v5765_v21, %v5507_v36  ;;  %v5767_v33 = vpop.f32.mrb[61].mxu1 }
0x1111   : > { %v7753_v41 = vadd.f32 %v5767_v33, %v5511_v48  ;;  %v6346_v29 = vmul.f32 -1.442695, %v6342_v9 }
0x1112   : > { %v6339_v25 = vmul.f32 -1.442695, %v7752_v14 }
0x1113   : > { %v5771_v11 = vpop.f32.mrb[62].mxu1  ;;  %v6343_v4 = vadd.f32 -0.1, %v7753_v41 }
0x1114   : > { %8281 = vpow2.f32 %v6339_v25  ;;  %v7754_v52 = vadd.f32 %v5771_v11, %v5507_v36  ;;  %v5773_v40 = vpop.f32.mrb[63].mxu1 }
0x1115   : > { %v6347_v24 = vmul.f32 -1.442695, %v6343_v4  ;;  %v7755_v3 = vadd.f32 %v5773_v40, %v5511_v48 }
0x1116   : > { %v6340_v39 = vmul.f32 -1.442695, %v7754_v52 }
0x1117   : > { %v5777_v30 = vpop.f32.mrb[64].mxu1  ;;  %v6344_v26 = vadd.f32 -0.1, %v7755_v3 }
0x1118   : > { %8283 = vpow2.f32 %v6340_v39  ;;  %v7756_v20 = vadd.f32 %v5777_v30, %v5507_v36  ;;  %v5779_v49 = vpop.f32.mrb[65].mxu1 }
0x1119   : > { %v7757_v43 = vadd.f32 %v5779_v49, %v5511_v48  ;;  %v6348_v54 = vmul.f32 -1.442695, %v6344_v26 }
0x111a   : > { %v8280_v51 = vpop.eup %8279  ;;  %v6341_v13 = vmul.f32 -1.442695, %v7756_v20 }
0x111b   : > { %v5798_v60 = vadd.f32 1.0, %v8280_v51  ;;  %v6345_v2 = vadd.f32 -0.1, %v7757_v43 }
0x111c   : > { %8285 = vpow2.f32 %v6341_v13 }
0x111d   : > { %8287 = vrcp.f32 %v5798_v60  ;;  %v6349_v45 = vmul.f32 -1.442695, %v6345_v2 }
0x111e   : > { %v8282_v15 = vpop.eup %8281 }
0x111f   : > { %v5799_v55 = vadd.f32 1.0, %v8282_v15 }
0x1121   : > { %8289 = vrcp.f32 %v5799_v55 }
0x1122   : > { %v8284_v57 = vpop.eup %8283 }
0x1123   : > { %v5800_v8 = vadd.f32 1.0, %v8284_v57 }
0x1125   : > { %8291 = vrcp.f32 %v5800_v8 }
0x1126   : > { %v8286_v46 = vpop.eup %8285 }
0x1127   : > { %v8288_v44 = vpop.eup %8287  ;;  %v5801_v23 = vadd.f32 1.0, %v8286_v46 }
0x1128   : > { %v5842_v37 = vmul.f32 %v8288_v44, %v11024_v0 }
0x1129   : > { %8293 = vrcp.f32 %v5801_v23 }
0x112a   : > { %7108 = vmatprep.mubr.f32.mxu0 %v5842_v37  ;;  %8295 = vpow2.f32 %v6347_v24 }
0x112b   : > { %v8290_v1 = vpop.eup %8289  ;;  %8297 = vpow2.f32 %v6346_v29 }
0x112c   : > { %v5843_v35 = vmul.f32 %v8290_v1, %v11022_v50  ;;  %8299 = vpow2.f32 %v6349_v45 }
0x112d   : > { %8301 = vpow2.f32 %v6348_v54 }
0x112e   : > { %7109 = vmatmul.mubr.f32.vlgmr.msra.gmra.mrb[42].mxu0 %v5843_v35 }
0x112f   : > { %v8292_v19 = vpop.eup %8291 }
0x1130   : > { %v5844_v12 = vmul.f32 %v8292_v19, %v11032_v38 }
0x1132   : > { %7111 = vmatprep.mubr.f32.mxu0 %v5844_v12 }
0x1133   : > { %v8294_v61 = vpop.eup %8293 }
0x1134   : > { %v5845_v7 = vmul.f32 %v8294_v61, %v11030_v59  ;;  %v8296_v17 = vpop.eup %8295 }
0x1135   : > { %v8298_v5 = vpop.eup %8297  ;;  %v5831_v47 = vadd.f32 1.0, %v8296_v17 }
0x1136   : > { %7112 = vmatmul.mubr.f32.gmra.mrb[44].mxu0 %v5845_v7  ;;  %v5830_v63 = vadd.f32 1.0, %v8298_v5  ;;  %v8300_v56 = vpop.eup %8299 }
0x1137   : > { %8303 = vrcp.f32 %v5831_v47  ;;  %v8302_v22 = vpop.eup %8301  ;;  %v5833_v34 = vadd.f32 1.0, %v8300_v56 }
0x1138   : > { %8305 = vrcp.f32 %v5830_v63  ;;  %v5832_v36 = vadd.f32 1.0, %v8302_v22 }
0x1141   : > { %v8304_v62 = vpop.eup %8303 }
0x1142   : > { %v8306_v27 = vpop.eup %8305  ;;  %v5940_v14 = vsub.f32 1.0, %v8304_v62 }
0x1143   : > { %v5939_v28 = vsub.f32 1.0, %v8306_v27 }
0x1144   : > { %v5944_v11 = vmul.f32 %v5940_v14, %v11022_v50 }
0x1145   : > { %v5943_v39 = vmul.f32 %v5939_v28, %v11024_v0 }
0x1201   : > { %v7110_v31 = vpop.f32.mrb[42].mxu0 }
0x1202   : > { %v7758_v6 = vadd.f32 %v7110_v31, %v5515_v16  ;;  %v5912_v10 = vpop.f32.mrb[43].mxu0 }
0x1203   : > { %v7759_v42 = vadd.f32 %v5912_v10, %v5515_v16 }
0x1204   : > { %8307 = vtanh.f32 %v7758_v6 }
0x1205   : > { %8309 = vtanh.f32 %v7759_v42 }
0x1206   : > { %8311 = vrcp.f32 %v5833_v34 }
0x1207   : > { %8313 = vrcp.f32 %v5832_v36 }
0x1209   : > { %v7113_v32 = vpop.f32.mrb[44].mxu0 }
0x120a   : > { %v7760_v21 = vadd.f32 %v7113_v32, %v5515_v16  ;;  %v5922_v53 = vpop.f32.mrb[45].mxu0 }
0x120b   : > { %v7761_v58 = vadd.f32 %v5922_v53, %v5515_v16 }
0x120c   : > { %8315 = vtanh.f32 %v7760_v21 }
0x120d   : > { %8317 = vtanh.f32 %v7761_v58 }
0x120e   : > { %v8308_v33 = vpop.eup %8307 }
0x120f   : > { %v8310_v25 = vpop.eup %8309  ;;  %v5948_v52 = vmul.f32 %v8308_v33, %v8304_v62 }
0x1210   : > { %v8312_v40 = vpop.eup %8311  ;;  %v5947_v30 = vmul.f32 %v8310_v25, %v8306_v27 }
0x1211   : > { %v8314_v20 = vpop.eup %8313  ;;  %v5952_v49 = vadd.f32 %v5948_v52, %v5944_v11  ;;  %v5942_v13 = vsub.f32 1.0, %v8312_v40 }
0x1212   : > { %v5951_v51 = vadd.f32 %v5947_v30, %v5943_v39  ;;  %v5941_v60 = vsub.f32 1.0, %v8314_v20 }
0x1213   : > { %5956 = vst [vmem:[%s971_s17 + $0x8] sm:$0xff] %v5952_v49  ;;  %v5946_v50 = vmul.f32 %v5942_v13, %v11030_v59 }
0x1214   : > { %5955 = vst [vmem:[%s971_s17] sm:$0xff] %v5951_v51  ;;  %v5945_v0 = vmul.f32 %v5941_v60, %v11032_v38 }
0x1216   : > { %v8316_v15 = vpop.eup %8315 }
0x1217   : > { %v8318_v55 = vpop.eup %8317  ;;  %v5950_v57 = vmul.f32 %v8316_v15, %v8312_v40 }
0x1218   : > { %v5949_v8 = vmul.f32 %v8318_v55, %v8314_v20 }
0x1219   : > { %v5954_v46 = vadd.f32 %v5950_v57, %v5946_v50 }
0x121a   : > { %v5953_v44 = vadd.f32 %v5949_v8, %v5945_v0 }
0x121b   : > { %5958 = vst [vmem:[%s971_s17 + $0x18] sm:$0xff] %v5954_v46 }
0x121c   : > { %5957 = vst [vmem:[%s971_s17 + $0x10] sm:$0xff] %v5953_v44 }
0x121d   : > { %8732 = shalt.err (!%p8729_p2)
}
0x121e   : > { %s8733_s2 = scalar_lea.hbm %s11118_s11, 512  ;;  %s8737_s4 = scalar_lea.hbm %s11319_s16, 1024 }
0x121f   : > { %p8734_p4 = scmp.ne.s32.totalorder %s11118_s11, %s8733_s2  ;;  %p8738_p7 = scmp.lt.u32.totalorder %s11118_s11, %s11319_s16 }
0x1220   : > { %p8739_p9 = scmp.lt.u32.totalorder %s8737_s4, %s8733_s2  ;;  %p8741_p11 = scmp.lt.u32.totalorder %s8733_s2, %s11118_s11 }
0x1221   : > { %p8735_p10 = pnand %p8734_p4, %p11320_p3 }
0x1222   : > { %p8740_p8 = por %p8739_p9, %p8738_p7 }
0x1223   : > { %p8736_p5 = pneg %p8735_p10 }
0x1224   : > { %p8742_p12 = por %p8741_p11, %p8740_p8 }
0x1226   : > { %p8743_p1 = pnand %p8742_p12, %p8736_p5 }
0x1228   : > { %8746 = shalt.err (!%p8743_p1)
}
0x1229   : > { %s8853_s23 = smov 128   ;;  %s8854_s18 = smov 8  }
0x122a   : > { %7838 = dma.vmem_to_hbm [thread:$0]  (%p11320_p3), %s11120_s1, 512, %s11118_s11, %s5960_s15, %s8853_s23, %s8853_s23, %s8854_s18  }
0x122b PF: > { %s5989_s9 = sand.u32 1, %s8805_s5   ;;  %p11321_p13 = scmp.ne.s32.totalorder %s11268_s19, 0 }
0x122c   : > { %p11322_p0 = scmp.ge.s32.totalorder %s8817_s28, 2  ;;  %s5990_s14 = scalar_lea.sflag [#allocation5], %s5989_s9 }
0x122e   : > { %p7885_p6 = pnand %p11322_p0, %p11321_p13 }
0x1230   : > { %8800 = dma.done.wait (!%p7885_p6), %s5990_s14, 512  }
0x1231   : > { %8802 = vsyncadd (!%p7885_p6), %s5990_s14, 4294966784  ;;  %p46_p2 = scmp.ge.s32.totalorder %s9300_s6, 4   ;;  %s11323_s5 = smov %s8809_s26 }
0x1232   : > { %s11324_s26 = smov %s8813_s27  ;;  %s11325_s27 = smov %s9311_s25 }
0x1233   : > { %s11326_s28 = smov %s9300_s6  ;;  %48 = sbr.rel (!%p46_p2) target bundleno = 36 (0x24), region = 222 }
0x123a   :  { %5995 = vsyncpa [#allocation4], 1 }
0x123b   :  { %5997 = vsyncpa [#allocation4 + $0x1], 1 }
0x123c   :  { %5998 = vsyncpa [#allocation7], 1 }
0x123d   :  { %6000 = vsyncpa [#allocation7 + $0x1], 1 }
0x123e   :  { %6001 = vsyncpa [#allocation10], 1 }
0x123f   :  { %6002 = vsyncpa [#allocation13], 1 }
0x1240   :  { %6003 = vsyncpa [#allocation16], 1 }
0x1241   :  { %6004 = vsyncpa [#allocation19], 1 }
0x1242   :  { %6005 = vsyncpa [#allocation22], 1 }
0x1243   :  { %6006 = vsyncpa [#allocation25], 1 }
0x1244   :  { %6007 = vsyncpa [#allocation5], 1 }
0x1245   :  { %6009 = vsyncpa [#allocation5 + $0x1], 1 }

</bundles_post_ra>
